<compile_context>
chip_gen: v7x
topology: tpu7x:2x2x1
jax: 0.10.0
libtpu: 0.0.40
codegen_flags: <defaults>
</compile_context>

<pallas_src>
import math

import jax
import jax.numpy as jnp
from jax import lax
from jax.experimental import pallas as pl
from jax.experimental.pallas import tpu as pltpu


CR_PAD = 8  # low-path-1 channel count padded to one sublane group for aligned slicing


# ----------------------------------------------------------------------------
# Pallas kernels (hot path) -- transposed layout: blocks are (channels, pixels)
# ----------------------------------------------------------------------------
def _make_chain_kernel(n_stages):
    """A chain of Conv_blocks (first block may be kxk, later blocks are 1x1).

    Per stage:  full = [Wl1 ; 0 ; Wh]^T @ cur + [bl1;0;bh]
                low  = full[:8]  * inv ;  low = Wl2^T @ low + bl2
                high = full[8:]
                cur  = relu(high * m + low * inv)            (stored bf16)
    """

    def kernel(*refs):
        x_ref = refs[0]
        m_ref = refs[1 + 4 * n_stages]
        o_ref = refs[2 + 4 * n_stages]

        m = m_ref[...]              # (1, T) f32
        inv = 1.0 - m               # mask is exactly {0,1}
        cur = x_ref[...]            # (P, T) bf16

        for si in range(n_stages):
            w1 = refs[1 + 4 * si][...]   # (CR_PAD + cout, Pin) bf16
            b1 = refs[2 + 4 * si][...]   # (CR_PAD + cout, 1)  f32
            w2 = refs[3 + 4 * si][...]   # (cout, CR_PAD)      bf16
            b2 = refs[4 + 4 * si][...]   # (cout, 1)           f32

            full = jnp.dot(w1, cur, preferred_element_type=jnp.float32) + b1
            low = full[:CR_PAD, :] * inv                       # sublane-aligned slice
            high = full[CR_PAD:, :]
            low = jnp.dot(w2, low.astype(jnp.bfloat16),
                          preferred_element_type=jnp.float32) + b2
            y = jnp.maximum(high * m + low * inv, 0.0)         # relu follows every block
            cur = y.astype(jnp.bfloat16)

        o_ref[...] = cur

    return kernel


def _tconv_kernel(x_ref, wh_ref, bh_ref, wl_ref, bl_ref, m_ref, o_ref):
    """Fused Tconv_block (sub-pixel form): y = (Wh@X + bh)*m + (Wlow@X + blow)*(1-m)."""
    x = x_ref[...]                                             # (P, T) bf16
    m = m_ref[...]
    inv = 1.0 - m
    high = jnp.dot(wh_ref[...], x, preferred_element_type=jnp.float32) + bh_ref[...]
    low = jnp.dot(wl_ref[...], x, preferred_element_type=jnp.float32) + bl_ref[...]
    o_ref[...] = high * m + low * inv                          # (G, T) f32, lane-dense


# ----------------------------------------------------------------------------
# Glue: channels-first im2col, mask creation, tiling helpers (plain JAX)
# ----------------------------------------------------------------------------
def extract_patches_cf(x, ky, kx, pad_y, pad_x):
    """x: (C, B, H, W) -> im2col^T of shape (ky*kx*C, B*Ho*Wo); columns ordered (b,h,w)."""
    C, B, H, W = x.shape
    xp = jnp.pad(x, ((0, 0), (0, 0), pad_y, pad_x))
    Hp, Wp = xp.shape[2], xp.shape[3]
    Ho, Wo = Hp - ky + 1, Wp - kx + 1
    slabs = []
    for dy in range(ky):
        for dx in range(kx):
            slabs.append(lax.slice(xp, (0, 0, dy, dx), (C, B, dy + Ho, dx + Wo)))
    pat = jnp.stack(slabs, axis=0)                 # (ky*kx, C, B, Ho, Wo)
    return pat.reshape(ky * kx * C, B * Ho * Wo)


def create_mask_nchw(x, th, dilker=3, dilation=True):
    """avg_pool(3x3, count_include_pad=False) -> (loss >= th) -> max_pool dilation."""
    win = (1, 1, 3, 3)
    strides = (1, 1, 1, 1)
    pads = ((0, 0), (0, 0), (1, 1), (1, 1))
    s = lax.reduce_window(x, 0.0, lax.add, win, strides, pads)
    c = lax.reduce_window(jnp.ones_like(x), 0.0, lax.add, win, strides, pads)
    blur = s / c
    loss = jnp.abs(x - blur)
    mask = (loss >= th).astype(jnp.float32)
    if dilation:
        p = dilker // 2
        mask = lax.reduce_window(mask, -jnp.inf, lax.max,
                                 (1, 1, dilker, dilker), strides,
                                 ((0, 0), (0, 0), (p, p), (p, p)))
    return mask, 1.0 - mask


def _tile_cols(n, p_rows, out_rows, budget_bytes=6 * 1024 * 1024):
    """Lane tile (multiple of 128): as large as the VMEM budget allows (amortize the
    ~0.35us/step overhead, wide unmasked stores) while keeping >=2 grid steps whenever
    n > 128 so megacore can shard the parallel axis."""
    cols_total = pl.cdiv(n, 128)
    # double-buffered bf16 patches + (conservatively) double-buffered f32 output per column
    per_col_bytes = 128 * (2 * 2 * p_rows + 2 * 4 * out_rows)
    max_cols = max(1, min(32, budget_bytes // max(per_col_bytes, 1)))
    cols = min(max_cols, max(1, (cols_total + 1) // 2)) if cols_total >= 2 else 1
    tile = cols * 128
    n_pad = pl.cdiv(n, tile) * tile
    return tile, n_pad


def _pad_cols(a, n_pad):
    n = a.shape[1]
    if n_pad == n:
        return a
    return jnp.pad(a, ((0, 0), (0, n_pad - n)))


# ----------------------------------------------------------------------------
# Pallas call wrappers
# ----------------------------------------------------------------------------
def conv_chain_forward(x_cbhw, stages, mask_row):
    """Run a fused chain of Conv_blocks. x: (Cin, B, H, W) bf16 -> (Cout_last, B, H, W) bf16."""
    C, B, H, W = x_cbhw.shape
    k = stages[0]["ker"]
    pad = (k // 2, k // 2)
    Xp = extract_patches_cf(x_cbhw.astype(jnp.bfloat16), k, k, pad, pad)
    P, N = Xp.shape
    cout_last = stages[-1]["cout"]
    tile, n_pad = _tile_cols(N, P, cout_last)
    Xp = _pad_cols(Xp, n_pad)
    m = _pad_cols(mask_row, n_pad)
    grid = n_pad // tile

    in_specs = [pl.BlockSpec((P, tile), lambda i: (0, i))]
    args = [Xp]
    for st in stages:
        for name in ("w1", "b1", "w2", "b2"):
            a = st[name]
            in_specs.append(pl.BlockSpec(a.shape, lambda i: (0, 0)))
            args.append(a)
    in_specs.append(pl.BlockSpec((1, tile), lambda i: (0, i)))
    args.append(m)

    out = pl.pallas_call(
        _make_chain_kernel(len(stages)),
        out_shape=jax.ShapeDtypeStruct((cout_last, n_pad), jnp.bfloat16),
        grid=(grid,),
        in_specs=in_specs,
        out_specs=pl.BlockSpec((cout_last, tile), lambda i: (0, i)),
        compiler_params=pltpu.CompilerParams(dimension_semantics=("parallel",)),
    )(*args)
    return out[:, :N].reshape(cout_last, B, H, W)


def tconv_forward(x_cbhw, tp, mask_row):
    """Fused Tconv_block (sub-pixel form). x: (Cin,B,H,W) bf16 -> (B, Cout, H*s, W*s) f32."""
    C, B, H, W = x_cbhw.shape
    s, cout = tp["scale"], tp["cout"]
    # ones-channel carries low_par1's bias through the transposed conv (border-exact)
    xin = jnp.concatenate(
        [x_cbhw.astype(jnp.bfloat16), jnp.ones((1, B, H, W), jnp.bfloat16)], axis=0)
    win, pad = tp["win"], (tp["pad_lo"], tp["pad_hi"])
    Xp = extract_patches_cf(xin, win, win, pad, pad)
    P, N = Xp.shape
    G = tp["w_high"].shape[0]           # s*s*cout output rows (all phases at once)
    tile, n_pad = _tile_cols(N, P, G)
    Xp = _pad_cols(Xp, n_pad)
    m = _pad_cols(mask_row, n_pad)      # per-phase mask == low-res mask (NN upsample)
    grid = n_pad // tile

    out = pl.pallas_call(
        _tconv_kernel,
        out_shape=jax.ShapeDtypeStruct((G, n_pad), jnp.float32),
        grid=(grid,),
        in_specs=[
            pl.BlockSpec((P, tile), lambda i: (0, i)),
            pl.BlockSpec(tp["w_high"].shape, lambda i: (0, 0)),
            pl.BlockSpec(tp["b_high"].shape, lambda i: (0, 0)),
            pl.BlockSpec(tp["w_low"].shape, lambda i: (0, 0)),
            pl.BlockSpec(tp["b_low"].shape, lambda i: (0, 0)),
            pl.BlockSpec((1, tile), lambda i: (0, i)),
        ],
        out_specs=pl.BlockSpec((G, tile), lambda i: (0, i)),
        compiler_params=pltpu.CompilerParams(dimension_semantics=("parallel",)),
    )(Xp, tp["w_high"], tp["b_high"], tp["w_low"], tp["b_low"], m)

    yu = out[:, :N].reshape(s, s, cout, B, H, W)
    # sub-pixel assembly: out[b, c, h*s+py, w*s+px] = yu[py, px, c, b, h, w]
    return jnp.transpose(yu, (3, 2, 4, 0, 5, 1)).reshape(B, cout, H * s, W * s)


# ----------------------------------------------------------------------------
# Parameter init (matches the PyTorch init scheme) + one-time matrix preparation
# ----------------------------------------------------------------------------
def _conv_w(key, cout, cin, k):
    std = math.sqrt(2.0 / (cout * k * k))
    return std * jax.random.normal(key, (cout, cin, k, k), jnp.float32)


def init_conv_block(key, cin, cout, ker, r):
    k1, k2, k3 = jax.random.split(key, 3)
    return dict(ker=ker, cin=cin, cout=cout,
                wh=_conv_w(k1, cout, cin, ker), bh=jnp.zeros((cout,), jnp.float32),
                wl1=_conv_w(k2, cout // r, cin, ker),
                bl1=jnp.zeros((cout // r,), jnp.float32),
                wl2=_conv_w(k3, cout, cout // r, 1), bl2=jnp.zeros((cout,), jnp.float32))


def init_tconv_block(key, scale, cin, cout, ker, r):
    k1, k2, k3 = jax.random.split(key, 3)
    return dict(ker=ker, scale=scale, cin=cin, cout=cout,
                wh_t=0.001 * jax.random.normal(k1, (cin, cout, ker, ker), jnp.float32),
                bh=jnp.zeros((cout,), jnp.float32),
                wl1=_conv_w(k2, cin // r, cin, 1),
                bl1=jnp.zeros((cin // r,), jnp.float32),
                wl2_t=0.001 * jax.random.normal(k3, (cin // r, cout, ker, ker), jnp.float32),
                bl2=jnp.zeros((cout,), jnp.float32))


def init_net_raw(key, scale, im_c=1, fn=16, dfn=32, r=4):
    ks = jax.random.split(key, 8)
    return dict(
        scale=scale,
        first=init_conv_block(ks[0], im_c, dfn, 5, r),
        reduction=init_conv_block(ks[1], dfn, fn, 1, r),
        mid1=init_conv_block(ks[2], fn, fn, 3, r),
        mid2=init_conv_block(ks[3], fn, fn, 3, r),
        mid3=init_conv_block(ks[4], fn, fn, 3, r),
        mid4=init_conv_block(ks[5], fn, fn, 3, r),
        expansion=init_conv_block(ks[6], fn, dfn, 1, r),
        last=init_tconv_block(ks[7], scale, dfn, im_c, 9, r),
    )


def _conv_to_rowmat(w):
    # (Cout, Cin, K, K) -> (Cout, K*K*Cin), column order (dy, dx, cin)
    cout, cin, k, _ = w.shape
    return jnp.transpose(w, (0, 2, 3, 1)).reshape(cout, k * k * cin)


def prepare_conv_stage(blk):
    cout, ker, cin = blk["cout"], blk["ker"], blk["cin"]
    cr = blk["wl1"].shape[0]
    assert cr <= CR_PAD
    P = ker * ker * cin
    whT = _conv_to_rowmat(blk["wh"])             # (cout, P)
    wl1T = _conv_to_rowmat(blk["wl1"])           # (cr,  P)
    w1 = jnp.zeros((CR_PAD + cout, P), jnp.float32)
    w1 = w1.at[:cr].set(wl1T).at[CR_PAD:].set(whT)
    b1 = jnp.zeros((CR_PAD + cout, 1), jnp.float32)
    b1 = b1.at[:cr, 0].set(blk["bl1"]).at[CR_PAD:, 0].set(blk["bh"])
    w2 = jnp.zeros((cout, CR_PAD), jnp.float32).at[:, :cr].set(blk["wl2"][:, :, 0, 0])
    b2 = blk["bl2"].reshape(cout, 1)
    return dict(ker=ker, cout=cout,
                w1=w1.astype(jnp.bfloat16), b1=b1,
                w2=w2.astype(jnp.bfloat16), b2=b2)


def _phase_taps(K, s, p):
    """Per output phase pi: list of (conv-tap d, input offset) for a stride-s tconv."""
    base = K - 1 - p
    phases = []
    for pi in range(s):
        taps = []
        for d in range(K):
            if (pi + d - base) % s == 0:
                taps.append((d, (pi + d - base) // s))
        phases.append(taps)
    offs = [o for taps in phases for (_, o) in taps]
    return phases, min(offs), max(offs)


def prepare_tconv(blk):
    """Build the unified sub-pixel weights for the Tconv_block (high + composed low)."""
    wh_t, wl1, wl2_t = blk["wh_t"], blk["wl1"], blk["wl2_t"]
    bh, bl1, bl2 = blk["bh"], blk["bl1"], blk["bl2"]
    s, K = blk["scale"], blk["ker"]
    p = K // 2
    cin, cout = wh_t.shape[0], wh_t.shape[1]
    phases, off_min, off_max = _phase_taps(K, s, p)
    win = off_max - off_min + 1
    # conv-equivalent kernels: flip spatially + swap in/out channels
    wc_h = jnp.transpose(wh_t[:, :, ::-1, ::-1], (1, 0, 2, 3))    # (cout, cin, K, K)
    wc_l = jnp.transpose(wl2_t[:, :, ::-1, ::-1], (1, 0, 2, 3))   # (cout, cr,  K, K)
    wl1m = wl1[:, :, 0, 0]                                        # (cr, cin)
    wc_low = jnp.einsum('oryx,rc->ocyx', wc_l, wl1m)              # low1 composed into low2
    wc_ones = jnp.einsum('oryx,r->oyx', wc_l, bl1)                # low1 bias pass-through

    cin1 = cin + 1                                                # + ones channel
    wh_u = jnp.zeros((s, s, cout, win, win, cin1), jnp.float32)
    wl_u = jnp.zeros((s, s, cout, win, win, cin1), jnp.float32)
    for py in range(s):
        for px in range(s):
            for (dy, oy) in phases[py]:
                for (dx, ox) in phases[px]:
                    ty, tx = oy - off_min, ox - off_min
                    wh_u = wh_u.at[py, px, :, ty, tx, :cin].set(wc_h[:, :, dy, dx])
                    wl_u = wl_u.at[py, px, :, ty, tx, :cin].set(wc_low[:, :, dy, dx])
                    wl_u = wl_u.at[py, px, :, ty, tx, cin].set(wc_ones[:, dy, dx])
    G = s * s * cout
    P = win * win * cin1
    b_high = jnp.tile(bh.reshape(1, cout), (s * s, 1)).reshape(G, 1)
    b_low = jnp.tile(bl2.reshape(1, cout), (s * s, 1)).reshape(G, 1)
    return dict(win=win, pad_lo=-off_min, pad_hi=off_max, scale=s, cout=cout,
                w_high=wh_u.reshape(G, P).astype(jnp.bfloat16), b_high=b_high,
                w_low=wl_u.reshape(G, P).astype(jnp.bfloat16), b_low=b_low)


def prepare_params(raw):
    chains = [
        [prepare_conv_stage(raw["first"]), prepare_conv_stage(raw["reduction"])],
        [prepare_conv_stage(raw["mid1"])],
        [prepare_conv_stage(raw["mid2"])],
        [prepare_conv_stage(raw["mid3"])],
        [prepare_conv_stage(raw["mid4"]), prepare_conv_stage(raw["expansion"])],
    ]
    return dict(scale=raw["scale"], chains=chains, tconv=prepare_tconv(raw["last"]))


# ----------------------------------------------------------------------------
# Net.forward (eval=False path)
# ----------------------------------------------------------------------------
def net_forward(params, x_nchw, th, dilker=3, dilation=True):
    x = x_nchw.astype(jnp.float32)                       # (B, 1, H, W)
    mask, _ = create_mask_nchw(x, th, dilker, dilation)
    B, _, H, W = x.shape
    mask_row = mask[:, 0].reshape(1, B * H * W)          # pixel order (b, h, w)

    h = jnp.transpose(x, (1, 0, 2, 3)).astype(jnp.bfloat16)   # (C, B, H, W)
    for chain in params["chains"]:
        h = conv_chain_forward(h, chain, mask_row)
    return tconv_forward(h, params["tconv"], mask_row)   # (B, 1, H*s, W*s)


# ----------------------------------------------------------------------------
# Pure-JAX reference of the original PyTorch forward (for the self-check only)
# ----------------------------------------------------------------------------
def _conv2d_ref(x, w, b, pad):
    y = lax.conv_general_dilated(
        x, w, window_strides=(1, 1), padding=((pad, pad), (pad, pad)),
        dimension_numbers=('NCHW', 'OIHW', 'NCHW'), precision=lax.Precision.HIGHEST)
    return y + b.reshape(1, -1, 1, 1)


def _tconv2d_ref(x, w_t, b, stride, pad, outpad):
    K = w_t.shape[2]
    w = jnp.transpose(w_t, (1, 0, 2, 3))[:, :, ::-1, ::-1]
    y = lax.conv_general_dilated(
        x, w, window_strides=(1, 1),
        padding=((K - 1 - pad, K - 1 - pad + outpad), (K - 1 - pad, K - 1 - pad + outpad)),
        lhs_dilation=(stride, stride),
        dimension_numbers=('NCHW', 'OIHW', 'NCHW'), precision=lax.Precision.HIGHEST)
    return y + b.reshape(1, -1, 1, 1)


def _conv_block_ref(blk, x, mask, inv):
    p = blk["ker"] // 2
    x1 = _conv2d_ref(x, blk["wh"], blk["bh"], p) * mask
    x2 = _conv2d_ref(x, blk["wl1"], blk["bl1"], p) * inv
    x2 = _conv2d_ref(x2, blk["wl2"], blk["bl2"], 0) * inv
    return x1 + x2


def net_forward_reference(raw, x, th, dilker=3, dilation=True):
    x = x.astype(jnp.float32)
    mask, inv = create_mask_nchw(x, th, dilker, dilation)
    h = x
    for name in ("first", "reduction", "mid1", "mid2", "mid3", "mid4", "expansion"):
        h = jax.nn.relu(_conv_block_ref(raw[name], h, mask, inv))
    s = raw["scale"]
    blk = raw["last"]
    mask_up = jnp.repeat(jnp.repeat(mask, s, axis=2), s, axis=3)
    inv_up = 1.0 - mask_up
    p = blk["ker"] // 2
    x1 = _tconv2d_ref(h, blk["wh_t"], blk["bh"], s, p, s - 1) * mask_up
    x2 = _conv2d_ref(h, blk["wl1"], blk["bl1"], 0)
    x2 = _tconv2d_ref(x2, blk["wl2_t"], blk["bl2"], s, p, s - 1) * inv_up
    return x1 + x2


if __name__ == "__main__":
    key = jax.random.PRNGKey(0)
    pkey, xkey = jax.random.split(key)
    scale = 2
    raw = init_net_raw(pkey, scale=scale, im_c=1, fn=16, dfn=32, r=4)
    params = prepare_params(raw)

    x = jax.random.uniform(xkey, (2, 1, 16, 16), jnp.float32)   # NCHW, im_c=1
    th = jnp.float32(0.04)

    @jax.jit
    def fwd(inp, thr):
        return net_forward(params, inp, thr, dilker=3, dilation=True)

    y = jax.block_until_ready(fwd(x, th))
    assert y.shape == (2, 1, 16 * scale, 16 * scale), y.shape
    assert bool(jnp.all(jnp.isfinite(y)))

    # Cross-check against the pure-JAX (f32 lax.conv) reference of the original module.
    y_ref = jax.block_until_ready(
        jax.jit(lambda inp, thr: net_forward_reference(raw, inp, thr))(x, th))
    rel = float(jnp.max(jnp.abs(y - y_ref)) / (jnp.max(jnp.abs(y_ref)) + 1e-12))
    assert rel < 0.1, rel   # bf16 kernel vs f32 reference; observed ~1e-2

    print("KERNEL_OK")
</pallas_src>

<mosaic_0001>
module attributes {stable_mosaic.version = 11 : i64} {
  func.func @kernel(%arg0: i32, %arg1: memref<25x256xbf16, #tpu.memory_space<vmem>>, %arg2: memref<40x25xbf16, #tpu.memory_space<vmem>>, %arg3: memref<40x1xf32, #tpu.memory_space<vmem>>, %arg4: memref<32x8xbf16, #tpu.memory_space<vmem>>, %arg5: memref<32x1xf32, #tpu.memory_space<vmem>>, %arg6: memref<24x32xbf16, #tpu.memory_space<vmem>>, %arg7: memref<24x1xf32, #tpu.memory_space<vmem>>, %arg8: memref<16x8xbf16, #tpu.memory_space<vmem>>, %arg9: memref<16x1xf32, #tpu.memory_space<vmem>>, %arg10: memref<1x256xf32, #tpu.memory_space<vmem>>, %arg11: memref<16x256xbf16, #tpu.memory_space<vmem>>) attributes {dimension_semantics = [#tpu.dimension_semantics<parallel>], iteration_bounds = array<i64: 2>, scalar_prefetch = 0 : i64, scratch_operands = 0 : i64, tpu.core_type = #tpu.core_type<tc>, window_params = [{transform_indices = @transform_0, window_bounds = array<i64: 25, 256>}, {pipeline_mode = #tpu.pipeline_mode<synchronous>, transform_indices = @transform_1, window_bounds = array<i64: 40, 25>}, {pipeline_mode = #tpu.pipeline_mode<synchronous>, transform_indices = @transform_2, window_bounds = array<i64: 40, 1>}, {pipeline_mode = #tpu.pipeline_mode<synchronous>, transform_indices = @transform_3, window_bounds = array<i64: 32, 8>}, {pipeline_mode = #tpu.pipeline_mode<synchronous>, transform_indices = @transform_4, window_bounds = array<i64: 32, 1>}, {pipeline_mode = #tpu.pipeline_mode<synchronous>, transform_indices = @transform_5, window_bounds = array<i64: 24, 32>}, {pipeline_mode = #tpu.pipeline_mode<synchronous>, transform_indices = @transform_6, window_bounds = array<i64: 24, 1>}, {pipeline_mode = #tpu.pipeline_mode<synchronous>, transform_indices = @transform_7, window_bounds = array<i64: 16, 8>}, {pipeline_mode = #tpu.pipeline_mode<synchronous>, transform_indices = @transform_8, window_bounds = array<i64: 16, 1>}, {transform_indices = @transform_9, window_bounds = array<i64: 1, 256>}, {transform_indices = @transform_10, window_bounds = array<i64: 16, 256>}]} {
    %c0 = arith.constant 0 : index
    %c0_0 = arith.constant 0 : index
    %0 = vector.load %arg10[%c0, %c0_0] : memref<1x256xf32, #tpu.memory_space<vmem>>, vector<1x256xf32>
    %cst = arith.constant 1.000000e+00 : f32
    %1 = vector.broadcast %cst : f32 to vector<1x256xf32>
    %2 = arith.subf %1, %0 : vector<1x256xf32>
    %c0_1 = arith.constant 0 : index
    %c0_2 = arith.constant 0 : index
    %3 = vector.load %arg1[%c0_1, %c0_2] : memref<25x256xbf16, #tpu.memory_space<vmem>>, vector<25x256xbf16>
    %c0_3 = arith.constant 0 : index
    %c0_4 = arith.constant 0 : index
    %4 = vector.load %arg2[%c0_3, %c0_4] : memref<40x25xbf16, #tpu.memory_space<vmem>>, vector<40x25xbf16>
    %c0_5 = arith.constant 0 : index
    %c0_6 = arith.constant 0 : index
    %5 = vector.load %arg3[%c0_5, %c0_6] : memref<40x1xf32, #tpu.memory_space<vmem>>, vector<40x1xf32>
    %c0_7 = arith.constant 0 : index
    %c0_8 = arith.constant 0 : index
    %6 = vector.load %arg4[%c0_7, %c0_8] : memref<32x8xbf16, #tpu.memory_space<vmem>>, vector<32x8xbf16>
    %c0_9 = arith.constant 0 : index
    %c0_10 = arith.constant 0 : index
    %7 = vector.load %arg5[%c0_9, %c0_10] : memref<32x1xf32, #tpu.memory_space<vmem>>, vector<32x1xf32>
    %cst_11 = arith.constant dense<0.000000e+00> : vector<40x256xf32>
    %8 = tpu.matmul %4, %3, %cst_11 {dimension_numbers = #tpu.dot_dimension_numbers<[1], [0], [0], [1], [0, 0, 1, 1], [], []>} : vector<40x25xbf16>, vector<25x256xbf16>, vector<40x256xf32> -> vector<40x256xf32>
    %9 = vector.broadcast %5 : vector<40x1xf32> to vector<40x256xf32>
    %10 = arith.addf %8, %9 : vector<40x256xf32>
    %11 = vector.extract_strided_slice %10 {offsets = [0, 0], sizes = [8, 256], strides = [1, 1]} : vector<40x256xf32> to vector<8x256xf32>
    %12 = vector.broadcast %2 : vector<1x256xf32> to vector<8x256xf32>
    %13 = arith.mulf %11, %12 : vector<8x256xf32>
    %14 = vector.extract_strided_slice %10 {offsets = [8, 0], sizes = [32, 256], strides = [1, 1]} : vector<40x256xf32> to vector<32x256xf32>
    %15 = arith.truncf %13 : vector<8x256xf32> to vector<8x256xbf16>
    %cst_12 = arith.constant dense<0.000000e+00> : vector<32x256xf32>
    %16 = tpu.matmul %6, %15, %cst_12 {dimension_numbers = #tpu.dot_dimension_numbers<[1], [0], [0], [1], [0, 0, 1, 1], [], []>} : vector<32x8xbf16>, vector<8x256xbf16>, vector<32x256xf32> -> vector<32x256xf32>
    %17 = vector.broadcast %7 : vector<32x1xf32> to vector<32x256xf32>
    %18 = arith.addf %16, %17 : vector<32x256xf32>
    %19 = vector.broadcast %0 : vector<1x256xf32> to vector<32x256xf32>
    %20 = arith.mulf %14, %19 : vector<32x256xf32>
    %21 = vector.broadcast %2 : vector<1x256xf32> to vector<32x256xf32>
    %22 = arith.mulf %18, %21 : vector<32x256xf32>
    %23 = arith.addf %20, %22 : vector<32x256xf32>
    %cst_13 = arith.constant 0.000000e+00 : f32
    %24 = vector.broadcast %cst_13 : f32 to vector<32x256xf32>
    %25 = arith.maximumf %23, %24 : vector<32x256xf32>
    %26 = arith.truncf %25 : vector<32x256xf32> to vector<32x256xbf16>
    %c0_14 = arith.constant 0 : index
    %c0_15 = arith.constant 0 : index
    %27 = vector.load %arg6[%c0_14, %c0_15] : memref<24x32xbf16, #tpu.memory_space<vmem>>, vector<24x32xbf16>
    %c0_16 = arith.constant 0 : index
    %c0_17 = arith.constant 0 : index
    %28 = vector.load %arg7[%c0_16, %c0_17] : memref<24x1xf32, #tpu.memory_space<vmem>>, vector<24x1xf32>
    %c0_18 = arith.constant 0 : index
    %c0_19 = arith.constant 0 : index
    %29 = vector.load %arg8[%c0_18, %c0_19] : memref<16x8xbf16, #tpu.memory_space<vmem>>, vector<16x8xbf16>
    %c0_20 = arith.constant 0 : index
    %c0_21 = arith.constant 0 : index
    %30 = vector.load %arg9[%c0_20, %c0_21] : memref<16x1xf32, #tpu.memory_space<vmem>>, vector<16x1xf32>
    %cst_22 = arith.constant dense<0.000000e+00> : vector<24x256xf32>
    %31 = tpu.matmul %27, %26, %cst_22 {dimension_numbers = #tpu.dot_dimension_numbers<[1], [0], [0], [1], [0, 0, 1, 1], [], []>} : vector<24x32xbf16>, vector<32x256xbf16>, vector<24x256xf32> -> vector<24x256xf32>
    %32 = vector.broadcast %28 : vector<24x1xf32> to vector<24x256xf32>
    %33 = arith.addf %31, %32 : vector<24x256xf32>
    %34 = vector.extract_strided_slice %33 {offsets = [0, 0], sizes = [8, 256], strides = [1, 1]} : vector<24x256xf32> to vector<8x256xf32>
    %35 = vector.broadcast %2 : vector<1x256xf32> to vector<8x256xf32>
    %36 = arith.mulf %34, %35 : vector<8x256xf32>
    %37 = vector.extract_strided_slice %33 {offsets = [8, 0], sizes = [16, 256], strides = [1, 1]} : vector<24x256xf32> to vector<16x256xf32>
    %38 = arith.truncf %36 : vector<8x256xf32> to vector<8x256xbf16>
    %cst_23 = arith.constant dense<0.000000e+00> : vector<16x256xf32>
    %39 = tpu.matmul %29, %38, %cst_23 {dimension_numbers = #tpu.dot_dimension_numbers<[1], [0], [0], [1], [0, 0, 1, 1], [], []>} : vector<16x8xbf16>, vector<8x256xbf16>, vector<16x256xf32> -> vector<16x256xf32>
    %40 = vector.broadcast %30 : vector<16x1xf32> to vector<16x256xf32>
    %41 = arith.addf %39, %40 : vector<16x256xf32>
    %42 = vector.broadcast %0 : vector<1x256xf32> to vector<16x256xf32>
    %43 = arith.mulf %37, %42 : vector<16x256xf32>
    %44 = vector.broadcast %2 : vector<1x256xf32> to vector<16x256xf32>
    %45 = arith.mulf %41, %44 : vector<16x256xf32>
    %46 = arith.addf %43, %45 : vector<16x256xf32>
    %cst_24 = arith.constant 0.000000e+00 : f32
    %47 = vector.broadcast %cst_24 : f32 to vector<16x256xf32>
    %48 = arith.maximumf %46, %47 : vector<16x256xf32>
    %49 = arith.truncf %48 : vector<16x256xf32> to vector<16x256xbf16>
    %c0_25 = arith.constant 0 : index
    %c0_26 = arith.constant 0 : index
    %50 = vector.load %arg11[%c0_25, %c0_26] : memref<16x256xbf16, #tpu.memory_space<vmem>>, vector<16x256xbf16>
    tpu.vector_store %arg11[%c0_25, %c0_26], %49 {strides = array<i32>} : memref<16x256xbf16, #tpu.memory_space<vmem>>, vector<16x256xbf16>,
    return
  }
  func.func @transform_0(%arg0: i32) -> (i32, i32) {
    %c0_i32 = arith.constant 0 : i32
    %c0_i32_0 = arith.constant 0 : i32
    return %c0_i32, %arg0 : i32, i32
  }
  func.func @transform_1(%arg0: i32) -> (i32, i32) {
    %c0_i32 = arith.constant 0 : i32
    %c0_i32_0 = arith.constant 0 : i32
    %c0_i32_1 = arith.constant 0 : i32
    return %c0_i32, %c0_i32_0 : i32, i32
  }
  func.func @transform_2(%arg0: i32) -> (i32, i32) {
    %c0_i32 = arith.constant 0 : i32
    %c0_i32_0 = arith.constant 0 : i32
    %c0_i32_1 = arith.constant 0 : i32
    return %c0_i32, %c0_i32_0 : i32, i32
  }
  func.func @transform_3(%arg0: i32) -> (i32, i32) {
    %c0_i32 = arith.constant 0 : i32
    %c0_i32_0 = arith.constant 0 : i32
    %c0_i32_1 = arith.constant 0 : i32
    return %c0_i32, %c0_i32_0 : i32, i32
  }
  func.func @transform_4(%arg0: i32) -> (i32, i32) {
    %c0_i32 = arith.constant 0 : i32
    %c0_i32_0 = arith.constant 0 : i32
    %c0_i32_1 = arith.constant 0 : i32
    return %c0_i32, %c0_i32_0 : i32, i32
  }
  func.func @transform_5(%arg0: i32) -> (i32, i32) {
    %c0_i32 = arith.constant 0 : i32
    %c0_i32_0 = arith.constant 0 : i32
    %c0_i32_1 = arith.constant 0 : i32
    return %c0_i32, %c0_i32_0 : i32, i32
  }
  func.func @transform_6(%arg0: i32) -> (i32, i32) {
    %c0_i32 = arith.constant 0 : i32
    %c0_i32_0 = arith.constant 0 : i32
    %c0_i32_1 = arith.constant 0 : i32
    return %c0_i32, %c0_i32_0 : i32, i32
  }
  func.func @transform_7(%arg0: i32) -> (i32, i32) {
    %c0_i32 = arith.constant 0 : i32
    %c0_i32_0 = arith.constant 0 : i32
    %c0_i32_1 = arith.constant 0 : i32
    return %c0_i32, %c0_i32_0 : i32, i32
  }
  func.func @transform_8(%arg0: i32) -> (i32, i32) {
    %c0_i32 = arith.constant 0 : i32
    %c0_i32_0 = arith.constant 0 : i32
    %c0_i32_1 = arith.constant 0 : i32
    return %c0_i32, %c0_i32_0 : i32, i32
  }
  func.func @transform_9(%arg0: i32) -> (i32, i32) {
    %c0_i32 = arith.constant 0 : i32
    %c0_i32_0 = arith.constant 0 : i32
    return %c0_i32, %arg0 : i32, i32
  }
  func.func @transform_10(%arg0: i32) -> (i32, i32) {
    %c0_i32 = arith.constant 0 : i32
    %c0_i32_0 = arith.constant 0 : i32
    return %c0_i32, %arg0 : i32, i32
  }
}

module attributes {stable_mosaic.version = 11 : i64} {
  func.func @kernel(%arg0: i32, %arg1: memref<144x256xbf16, #tpu.memory_space<vmem>>, %arg2: memref<24x144xbf16, #tpu.memory_space<vmem>>, %arg3: memref<24x1xf32, #tpu.memory_space<vmem>>, %arg4: memref<16x8xbf16, #tpu.memory_space<vmem>>, %arg5: memref<16x1xf32, #tpu.memory_space<vmem>>, %arg6: memref<1x256xf32, #tpu.memory_space<vmem>>, %arg7: memref<16x256xbf16, #tpu.memory_space<vmem>>) attributes {dimension_semantics = [#tpu.dimension_semantics<parallel>], iteration_bounds = array<i64: 2>, scalar_prefetch = 0 : i64, scratch_operands = 0 : i64, tpu.core_type = #tpu.core_type<tc>, window_params = [{transform_indices = @transform_0, window_bounds = array<i64: 144, 256>}, {pipeline_mode = #tpu.pipeline_mode<synchronous>, transform_indices = @transform_1, window_bounds = array<i64: 24, 144>}, {pipeline_mode = #tpu.pipeline_mode<synchronous>, transform_indices = @transform_2, window_bounds = array<i64: 24, 1>}, {pipeline_mode = #tpu.pipeline_mode<synchronous>, transform_indices = @transform_3, window_bounds = array<i64: 16, 8>}, {pipeline_mode = #tpu.pipeline_mode<synchronous>, transform_indices = @transform_4, window_bounds = array<i64: 16, 1>}, {transform_indices = @transform_5, window_bounds = array<i64: 1, 256>}, {transform_indices = @transform_6, window_bounds = array<i64: 16, 256>}]} {
    %c0 = arith.constant 0 : index
    %c0_0 = arith.constant 0 : index
    %0 = vector.load %arg6[%c0, %c0_0] : memref<1x256xf32, #tpu.memory_space<vmem>>, vector<1x256xf32>
    %cst = arith.constant 1.000000e+00 : f32
    %1 = vector.broadcast %cst : f32 to vector<1x256xf32>
    %2 = arith.subf %1, %0 : vector<1x256xf32>
    %c0_1 = arith.constant 0 : index
    %c0_2 = arith.constant 0 : index
    %3 = vector.load %arg1[%c0_1, %c0_2] : memref<144x256xbf16, #tpu.memory_space<vmem>>, vector<144x256xbf16>
    %c0_3 = arith.constant 0 : index
    %c0_4 = arith.constant 0 : index
    %4 = vector.load %arg2[%c0_3, %c0_4] : memref<24x144xbf16, #tpu.memory_space<vmem>>, vector<24x144xbf16>
    %c0_5 = arith.constant 0 : index
    %c0_6 = arith.constant 0 : index
    %5 = vector.load %arg3[%c0_5, %c0_6] : memref<24x1xf32, #tpu.memory_space<vmem>>, vector<24x1xf32>
    %c0_7 = arith.constant 0 : index
    %c0_8 = arith.constant 0 : index
    %6 = vector.load %arg4[%c0_7, %c0_8] : memref<16x8xbf16, #tpu.memory_space<vmem>>, vector<16x8xbf16>
    %c0_9 = arith.constant 0 : index
    %c0_10 = arith.constant 0 : index
    %7 = vector.load %arg5[%c0_9, %c0_10] : memref<16x1xf32, #tpu.memory_space<vmem>>, vector<16x1xf32>
    %cst_11 = arith.constant dense<0.000000e+00> : vector<24x256xf32>
    %8 = tpu.matmul %4, %3, %cst_11 {dimension_numbers = #tpu.dot_dimension_numbers<[1], [0], [0], [1], [0, 0, 1, 1], [], []>} : vector<24x144xbf16>, vector<144x256xbf16>, vector<24x256xf32> -> vector<24x256xf32>
    %9 = vector.broadcast %5 : vector<24x1xf32> to vector<24x256xf32>
    %10 = arith.addf %8, %9 : vector<24x256xf32>
    %11 = vector.extract_strided_slice %10 {offsets = [0, 0], sizes = [8, 256], strides = [1, 1]} : vector<24x256xf32> to vector<8x256xf32>
    %12 = vector.broadcast %2 : vector<1x256xf32> to vector<8x256xf32>
    %13 = arith.mulf %11, %12 : vector<8x256xf32>
    %14 = vector.extract_strided_slice %10 {offsets = [8, 0], sizes = [16, 256], strides = [1, 1]} : vector<24x256xf32> to vector<16x256xf32>
    %15 = arith.truncf %13 : vector<8x256xf32> to vector<8x256xbf16>
    %cst_12 = arith.constant dense<0.000000e+00> : vector<16x256xf32>
    %16 = tpu.matmul %6, %15, %cst_12 {dimension_numbers = #tpu.dot_dimension_numbers<[1], [0], [0], [1], [0, 0, 1, 1], [], []>} : vector<16x8xbf16>, vector<8x256xbf16>, vector<16x256xf32> -> vector<16x256xf32>
    %17 = vector.broadcast %7 : vector<16x1xf32> to vector<16x256xf32>
    %18 = arith.addf %16, %17 : vector<16x256xf32>
    %19 = vector.broadcast %0 : vector<1x256xf32> to vector<16x256xf32>
    %20 = arith.mulf %14, %19 : vector<16x256xf32>
    %21 = vector.broadcast %2 : vector<1x256xf32> to vector<16x256xf32>
    %22 = arith.mulf %18, %21 : vector<16x256xf32>
    %23 = arith.addf %20, %22 : vector<16x256xf32>
    %cst_13 = arith.constant 0.000000e+00 : f32
    %24 = vector.broadcast %cst_13 : f32 to vector<16x256xf32>
    %25 = arith.maximumf %23, %24 : vector<16x256xf32>
    %26 = arith.truncf %25 : vector<16x256xf32> to vector<16x256xbf16>
    %c0_14 = arith.constant 0 : index
    %c0_15 = arith.constant 0 : index
    %27 = vector.load %arg7[%c0_14, %c0_15] : memref<16x256xbf16, #tpu.memory_space<vmem>>, vector<16x256xbf16>
    tpu.vector_store %arg7[%c0_14, %c0_15], %26 {strides = array<i32>} : memref<16x256xbf16, #tpu.memory_space<vmem>>, vector<16x256xbf16>,
    return
  }
  func.func @transform_0(%arg0: i32) -> (i32, i32) {
    %c0_i32 = arith.constant 0 : i32
    %c0_i32_0 = arith.constant 0 : i32
    return %c0_i32, %arg0 : i32, i32
  }
  func.func @transform_1(%arg0: i32) -> (i32, i32) {
    %c0_i32 = arith.constant 0 : i32
    %c0_i32_0 = arith.constant 0 : i32
    %c0_i32_1 = arith.constant 0 : i32
    return %c0_i32, %c0_i32_0 : i32, i32
  }
  func.func @transform_2(%arg0: i32) -> (i32, i32) {
    %c0_i32 = arith.constant 0 : i32
    %c0_i32_0 = arith.constant 0 : i32
    %c0_i32_1 = arith.constant 0 : i32
    return %c0_i32, %c0_i32_0 : i32, i32
  }
  func.func @transform_3(%arg0: i32) -> (i32, i32) {
    %c0_i32 = arith.constant 0 : i32
    %c0_i32_0 = arith.constant 0 : i32
    %c0_i32_1 = arith.constant 0 : i32
    return %c0_i32, %c0_i32_0 : i32, i32
  }
  func.func @transform_4(%arg0: i32) -> (i32, i32) {
    %c0_i32 = arith.constant 0 : i32
    %c0_i32_0 = arith.constant 0 : i32
    %c0_i32_1 = arith.constant 0 : i32
    return %c0_i32, %c0_i32_0 : i32, i32
  }
  func.func @transform_5(%arg0: i32) -> (i32, i32) {
    %c0_i32 = arith.constant 0 : i32
    %c0_i32_0 = arith.constant 0 : i32
    return %c0_i32, %arg0 : i32, i32
  }
  func.func @transform_6(%arg0: i32) -> (i32, i32) {
    %c0_i32 = arith.constant 0 : i32
    %c0_i32_0 = arith.constant 0 : i32
    return %c0_i32, %arg0 : i32, i32
  }
}

module attributes {stable_mosaic.version = 11 : i64} {
  func.func @kernel(%arg0: i32, %arg1: memref<144x256xbf16, #tpu.memory_space<vmem>>, %arg2: memref<24x144xbf16, #tpu.memory_space<vmem>>, %arg3: memref<24x1xf32, #tpu.memory_space<vmem>>, %arg4: memref<16x8xbf16, #tpu.memory_space<vmem>>, %arg5: memref<16x1xf32, #tpu.memory_space<vmem>>, %arg6: memref<40x16xbf16, #tpu.memory_space<vmem>>, %arg7: memref<40x1xf32, #tpu.memory_space<vmem>>, %arg8: memref<32x8xbf16, #tpu.memory_space<vmem>>, %arg9: memref<32x1xf32, #tpu.memory_space<vmem>>, %arg10: memref<1x256xf32, #tpu.memory_space<vmem>>, %arg11: memref<32x256xbf16, #tpu.memory_space<vmem>>) attributes {dimension_semantics = [#tpu.dimension_semantics<parallel>], iteration_bounds = array<i64: 2>, scalar_prefetch = 0 : i64, scratch_operands = 0 : i64, tpu.core_type = #tpu.core_type<tc>, window_params = [{transform_indices = @transform_0, window_bounds = array<i64: 144, 256>}, {pipeline_mode = #tpu.pipeline_mode<synchronous>, transform_indices = @transform_1, window_bounds = array<i64: 24, 144>}, {pipeline_mode = #tpu.pipeline_mode<synchronous>, transform_indices = @transform_2, window_bounds = array<i64: 24, 1>}, {pipeline_mode = #tpu.pipeline_mode<synchronous>, transform_indices = @transform_3, window_bounds = array<i64: 16, 8>}, {pipeline_mode = #tpu.pipeline_mode<synchronous>, transform_indices = @transform_4, window_bounds = array<i64: 16, 1>}, {pipeline_mode = #tpu.pipeline_mode<synchronous>, transform_indices = @transform_5, window_bounds = array<i64: 40, 16>}, {pipeline_mode = #tpu.pipeline_mode<synchronous>, transform_indices = @transform_6, window_bounds = array<i64: 40, 1>}, {pipeline_mode = #tpu.pipeline_mode<synchronous>, transform_indices = @transform_7, window_bounds = array<i64: 32, 8>}, {pipeline_mode = #tpu.pipeline_mode<synchronous>, transform_indices = @transform_8, window_bounds = array<i64: 32, 1>}, {transform_indices = @transform_9, window_bounds = array<i64: 1, 256>}, {transform_indices = @transform_10, window_bounds = array<i64: 32, 256>}]} {
    %c0 = arith.constant 0 : index
    %c0_0 = arith.constant 0 : index
    %0 = vector.load %arg10[%c0, %c0_0] : memref<1x256xf32, #tpu.memory_space<vmem>>, vector<1x256xf32>
    %cst = arith.constant 1.000000e+00 : f32
    %1 = vector.broadcast %cst : f32 to vector<1x256xf32>
    %2 = arith.subf %1, %0 : vector<1x256xf32>
    %c0_1 = arith.constant 0 : index
    %c0_2 = arith.constant 0 : index
    %3 = vector.load %arg1[%c0_1, %c0_2] : memref<144x256xbf16, #tpu.memory_space<vmem>>, vector<144x256xbf16>
    %c0_3 = arith.constant 0 : index
    %c0_4 = arith.constant 0 : index
    %4 = vector.load %arg2[%c0_3, %c0_4] : memref<24x144xbf16, #tpu.memory_space<vmem>>, vector<24x144xbf16>
    %c0_5 = arith.constant 0 : index
    %c0_6 = arith.constant 0 : index
    %5 = vector.load %arg3[%c0_5, %c0_6] : memref<24x1xf32, #tpu.memory_space<vmem>>, vector<24x1xf32>
    %c0_7 = arith.constant 0 : index
    %c0_8 = arith.constant 0 : index
    %6 = vector.load %arg4[%c0_7, %c0_8] : memref<16x8xbf16, #tpu.memory_space<vmem>>, vector<16x8xbf16>
    %c0_9 = arith.constant 0 : index
    %c0_10 = arith.constant 0 : index
    %7 = vector.load %arg5[%c0_9, %c0_10] : memref<16x1xf32, #tpu.memory_space<vmem>>, vector<16x1xf32>
    %cst_11 = arith.constant dense<0.000000e+00> : vector<24x256xf32>
    %8 = tpu.matmul %4, %3, %cst_11 {dimension_numbers = #tpu.dot_dimension_numbers<[1], [0], [0], [1], [0, 0, 1, 1], [], []>} : vector<24x144xbf16>, vector<144x256xbf16>, vector<24x256xf32> -> vector<24x256xf32>
    %9 = vector.broadcast %5 : vector<24x1xf32> to vector<24x256xf32>
    %10 = arith.addf %8, %9 : vector<24x256xf32>
    %11 = vector.extract_strided_slice %10 {offsets = [0, 0], sizes = [8, 256], strides = [1, 1]} : vector<24x256xf32> to vector<8x256xf32>
    %12 = vector.broadcast %2 : vector<1x256xf32> to vector<8x256xf32>
    %13 = arith.mulf %11, %12 : vector<8x256xf32>
    %14 = vector.extract_strided_slice %10 {offsets = [8, 0], sizes = [16, 256], strides = [1, 1]} : vector<24x256xf32> to vector<16x256xf32>
    %15 = arith.truncf %13 : vector<8x256xf32> to vector<8x256xbf16>
    %cst_12 = arith.constant dense<0.000000e+00> : vector<16x256xf32>
    %16 = tpu.matmul %6, %15, %cst_12 {dimension_numbers = #tpu.dot_dimension_numbers<[1], [0], [0], [1], [0, 0, 1, 1], [], []>} : vector<16x8xbf16>, vector<8x256xbf16>, vector<16x256xf32> -> vector<16x256xf32>
    %17 = vector.broadcast %7 : vector<16x1xf32> to vector<16x256xf32>
    %18 = arith.addf %16, %17 : vector<16x256xf32>
    %19 = vector.broadcast %0 : vector<1x256xf32> to vector<16x256xf32>
    %20 = arith.mulf %14, %19 : vector<16x256xf32>
    %21 = vector.broadcast %2 : vector<1x256xf32> to vector<16x256xf32>
    %22 = arith.mulf %18, %21 : vector<16x256xf32>
    %23 = arith.addf %20, %22 : vector<16x256xf32>
    %cst_13 = arith.constant 0.000000e+00 : f32
    %24 = vector.broadcast %cst_13 : f32 to vector<16x256xf32>
    %25 = arith.maximumf %23, %24 : vector<16x256xf32>
    %26 = arith.truncf %25 : vector<16x256xf32> to vector<16x256xbf16>
    %c0_14 = arith.constant 0 : index
    %c0_15 = arith.constant 0 : index
    %27 = vector.load %arg6[%c0_14, %c0_15] : memref<40x16xbf16, #tpu.memory_space<vmem>>, vector<40x16xbf16>
    %c0_16 = arith.constant 0 : index
    %c0_17 = arith.constant 0 : index
    %28 = vector.load %arg7[%c0_16, %c0_17] : memref<40x1xf32, #tpu.memory_space<vmem>>, vector<40x1xf32>
    %c0_18 = arith.constant 0 : index
    %c0_19 = arith.constant 0 : index
    %29 = vector.load %arg8[%c0_18, %c0_19] : memref<32x8xbf16, #tpu.memory_space<vmem>>, vector<32x8xbf16>
    %c0_20 = arith.constant 0 : index
    %c0_21 = arith.constant 0 : index
    %30 = vector.load %arg9[%c0_20, %c0_21] : memref<32x1xf32, #tpu.memory_space<vmem>>, vector<32x1xf32>
    %cst_22 = arith.constant dense<0.000000e+00> : vector<40x256xf32>
    %31 = tpu.matmul %27, %26, %cst_22 {dimension_numbers = #tpu.dot_dimension_numbers<[1], [0], [0], [1], [0, 0, 1, 1], [], []>} : vector<40x16xbf16>, vector<16x256xbf16>, vector<40x256xf32> -> vector<40x256xf32>
    %32 = vector.broadcast %28 : vector<40x1xf32> to vector<40x256xf32>
    %33 = arith.addf %31, %32 : vector<40x256xf32>
    %34 = vector.extract_strided_slice %33 {offsets = [0, 0], sizes = [8, 256], strides = [1, 1]} : vector<40x256xf32> to vector<8x256xf32>
    %35 = vector.broadcast %2 : vector<1x256xf32> to vector<8x256xf32>
    %36 = arith.mulf %34, %35 : vector<8x256xf32>
    %37 = vector.extract_strided_slice %33 {offsets = [8, 0], sizes = [32, 256], strides = [1, 1]} : vector<40x256xf32> to vector<32x256xf32>
    %38 = arith.truncf %36 : vector<8x256xf32> to vector<8x256xbf16>
    %cst_23 = arith.constant dense<0.000000e+00> : vector<32x256xf32>
    %39 = tpu.matmul %29, %38, %cst_23 {dimension_numbers = #tpu.dot_dimension_numbers<[1], [0], [0], [1], [0, 0, 1, 1], [], []>} : vector<32x8xbf16>, vector<8x256xbf16>, vector<32x256xf32> -> vector<32x256xf32>
    %40 = vector.broadcast %30 : vector<32x1xf32> to vector<32x256xf32>
    %41 = arith.addf %39, %40 : vector<32x256xf32>
    %42 = vector.broadcast %0 : vector<1x256xf32> to vector<32x256xf32>
    %43 = arith.mulf %37, %42 : vector<32x256xf32>
    %44 = vector.broadcast %2 : vector<1x256xf32> to vector<32x256xf32>
    %45 = arith.mulf %41, %44 : vector<32x256xf32>
    %46 = arith.addf %43, %45 : vector<32x256xf32>
    %cst_24 = arith.constant 0.000000e+00 : f32
    %47 = vector.broadcast %cst_24 : f32 to vector<32x256xf32>
    %48 = arith.maximumf %46, %47 : vector<32x256xf32>
    %49 = arith.truncf %48 : vector<32x256xf32> to vector<32x256xbf16>
    %c0_25 = arith.constant 0 : index
    %c0_26 = arith.constant 0 : index
    %50 = vector.load %arg11[%c0_25, %c0_26] : memref<32x256xbf16, #tpu.memory_space<vmem>>, vector<32x256xbf16>
    tpu.vector_store %arg11[%c0_25, %c0_26], %49 {strides = array<i32>} : memref<32x256xbf16, #tpu.memory_space<vmem>>, vector<32x256xbf16>,
    return
  }
  func.func @transform_0(%arg0: i32) -> (i32, i32) {
    %c0_i32 = arith.constant 0 : i32
    %c0_i32_0 = arith.constant 0 : i32
    return %c0_i32, %arg0 : i32, i32
  }
  func.func @transform_1(%arg0: i32) -> (i32, i32) {
    %c0_i32 = arith.constant 0 : i32
    %c0_i32_0 = arith.constant 0 : i32
    %c0_i32_1 = arith.constant 0 : i32
    return %c0_i32, %c0_i32_0 : i32, i32
  }
  func.func @transform_2(%arg0: i32) -> (i32, i32) {
    %c0_i32 = arith.constant 0 : i32
    %c0_i32_0 = arith.constant 0 : i32
    %c0_i32_1 = arith.constant 0 : i32
    return %c0_i32, %c0_i32_0 : i32, i32
  }
  func.func @transform_3(%arg0: i32) -> (i32, i32) {
    %c0_i32 = arith.constant 0 : i32
    %c0_i32_0 = arith.constant 0 : i32
    %c0_i32_1 = arith.constant 0 : i32
    return %c0_i32, %c0_i32_0 : i32, i32
  }
  func.func @transform_4(%arg0: i32) -> (i32, i32) {
    %c0_i32 = arith.constant 0 : i32
    %c0_i32_0 = arith.constant 0 : i32
    %c0_i32_1 = arith.constant 0 : i32
    return %c0_i32, %c0_i32_0 : i32, i32
  }
  func.func @transform_5(%arg0: i32) -> (i32, i32) {
    %c0_i32 = arith.constant 0 : i32
    %c0_i32_0 = arith.constant 0 : i32
    %c0_i32_1 = arith.constant 0 : i32
    return %c0_i32, %c0_i32_0 : i32, i32
  }
  func.func @transform_6(%arg0: i32) -> (i32, i32) {
    %c0_i32 = arith.constant 0 : i32
    %c0_i32_0 = arith.constant 0 : i32
    %c0_i32_1 = arith.constant 0 : i32
    return %c0_i32, %c0_i32_0 : i32, i32
  }
  func.func @transform_7(%arg0: i32) -> (i32, i32) {
    %c0_i32 = arith.constant 0 : i32
    %c0_i32_0 = arith.constant 0 : i32
    %c0_i32_1 = arith.constant 0 : i32
    return %c0_i32, %c0_i32_0 : i32, i32
  }
  func.func @transform_8(%arg0: i32) -> (i32, i32) {
    %c0_i32 = arith.constant 0 : i32
    %c0_i32_0 = arith.constant 0 : i32
    %c0_i32_1 = arith.constant 0 : i32
    return %c0_i32, %c0_i32_0 : i32, i32
  }
  func.func @transform_9(%arg0: i32) -> (i32, i32) {
    %c0_i32 = arith.constant 0 : i32
    %c0_i32_0 = arith.constant 0 : i32
    return %c0_i32, %arg0 : i32, i32
  }
  func.func @transform_10(%arg0: i32) -> (i32, i32) {
    %c0_i32 = arith.constant 0 : i32
    %c0_i32_0 = arith.constant 0 : i32
    return %c0_i32, %arg0 : i32, i32
  }
}

module attributes {stable_mosaic.version = 11 : i64} {
  func.func @_tconv_kernel(%arg0: i32, %arg1: memref<825x256xbf16, #tpu.memory_space<vmem>>, %arg2: memref<4x825xbf16, #tpu.memory_space<vmem>>, %arg3: memref<4x1xf32, #tpu.memory_space<vmem>>, %arg4: memref<4x825xbf16, #tpu.memory_space<vmem>>, %arg5: memref<4x1xf32, #tpu.memory_space<vmem>>, %arg6: memref<1x256xf32, #tpu.memory_space<vmem>>, %arg7: memref<4x256xf32, #tpu.memory_space<vmem>>) attributes {dimension_semantics = [#tpu.dimension_semantics<parallel>], iteration_bounds = array<i64: 2>, scalar_prefetch = 0 : i64, scratch_operands = 0 : i64, tpu.core_type = #tpu.core_type<tc>, window_params = [{transform_indices = @transform_0, window_bounds = array<i64: 825, 256>}, {pipeline_mode = #tpu.pipeline_mode<synchronous>, transform_indices = @transform_1, window_bounds = array<i64: 4, 825>}, {pipeline_mode = #tpu.pipeline_mode<synchronous>, transform_indices = @transform_2, window_bounds = array<i64: 4, 1>}, {pipeline_mode = #tpu.pipeline_mode<synchronous>, transform_indices = @transform_3, window_bounds = array<i64: 4, 825>}, {pipeline_mode = #tpu.pipeline_mode<synchronous>, transform_indices = @transform_4, window_bounds = array<i64: 4, 1>}, {transform_indices = @transform_5, window_bounds = array<i64: 1, 256>}, {transform_indices = @transform_6, window_bounds = array<i64: 4, 256>}]} {
    %c0 = arith.constant 0 : index
    %c0_0 = arith.constant 0 : index
    %0 = vector.load %arg1[%c0, %c0_0] : memref<825x256xbf16, #tpu.memory_space<vmem>>, vector<825x256xbf16>
    %c0_1 = arith.constant 0 : index
    %c0_2 = arith.constant 0 : index
    %1 = vector.load %arg6[%c0_1, %c0_2] : memref<1x256xf32, #tpu.memory_space<vmem>>, vector<1x256xf32>
    %cst = arith.constant 1.000000e+00 : f32
    %2 = vector.broadcast %cst : f32 to vector<1x256xf32>
    %3 = arith.subf %2, %1 : vector<1x256xf32>
    %c0_3 = arith.constant 0 : index
    %c0_4 = arith.constant 0 : index
    %4 = vector.load %arg2[%c0_3, %c0_4] : memref<4x825xbf16, #tpu.memory_space<vmem>>, vector<4x825xbf16>
    %cst_5 = arith.constant dense<0.000000e+00> : vector<4x256xf32>
    %5 = tpu.matmul %4, %0, %cst_5 {dimension_numbers = #tpu.dot_dimension_numbers<[1], [0], [0], [1], [0, 0, 1, 1], [], []>} : vector<4x825xbf16>, vector<825x256xbf16>, vector<4x256xf32> -> vector<4x256xf32>
    %c0_6 = arith.constant 0 : index
    %c0_7 = arith.constant 0 : index
    %6 = vector.load %arg3[%c0_6, %c0_7] : memref<4x1xf32, #tpu.memory_space<vmem>>, vector<4x1xf32>
    %7 = vector.broadcast %6 : vector<4x1xf32> to vector<4x256xf32>
    %8 = arith.addf %5, %7 : vector<4x256xf32>
    %c0_8 = arith.constant 0 : index
    %c0_9 = arith.constant 0 : index
    %9 = vector.load %arg4[%c0_8, %c0_9] : memref<4x825xbf16, #tpu.memory_space<vmem>>, vector<4x825xbf16>
    %cst_10 = arith.constant dense<0.000000e+00> : vector<4x256xf32>
    %10 = tpu.matmul %9, %0, %cst_10 {dimension_numbers = #tpu.dot_dimension_numbers<[1], [0], [0], [1], [0, 0, 1, 1], [], []>} : vector<4x825xbf16>, vector<825x256xbf16>, vector<4x256xf32> -> vector<4x256xf32>
    %c0_11 = arith.constant 0 : index
    %c0_12 = arith.constant 0 : index
    %11 = vector.load %arg5[%c0_11, %c0_12] : memref<4x1xf32, #tpu.memory_space<vmem>>, vector<4x1xf32>
    %12 = vector.broadcast %11 : vector<4x1xf32> to vector<4x256xf32>
    %13 = arith.addf %10, %12 : vector<4x256xf32>
    %14 = vector.broadcast %1 : vector<1x256xf32> to vector<4x256xf32>
    %15 = arith.mulf %8, %14 : vector<4x256xf32>
    %16 = vector.broadcast %3 : vector<1x256xf32> to vector<4x256xf32>
    %17 = arith.mulf %13, %16 : vector<4x256xf32>
    %18 = arith.addf %15, %17 : vector<4x256xf32>
    %c0_13 = arith.constant 0 : index
    %c0_14 = arith.constant 0 : index
    %19 = vector.load %arg7[%c0_13, %c0_14] : memref<4x256xf32, #tpu.memory_space<vmem>>, vector<4x256xf32>
    tpu.vector_store %arg7[%c0_13, %c0_14], %18 {strides = array<i32>} : memref<4x256xf32, #tpu.memory_space<vmem>>, vector<4x256xf32>,
    return
  }
  func.func @transform_0(%arg0: i32) -> (i32, i32) {
    %c0_i32 = arith.constant 0 : i32
    %c0_i32_0 = arith.constant 0 : i32
    return %c0_i32, %arg0 : i32, i32
  }
  func.func @transform_1(%arg0: i32) -> (i32, i32) {
    %c0_i32 = arith.constant 0 : i32
    %c0_i32_0 = arith.constant 0 : i32
    %c0_i32_1 = arith.constant 0 : i32
    return %c0_i32, %c0_i32_0 : i32, i32
  }
  func.func @transform_2(%arg0: i32) -> (i32, i32) {
    %c0_i32 = arith.constant 0 : i32
    %c0_i32_0 = arith.constant 0 : i32
    %c0_i32_1 = arith.constant 0 : i32
    return %c0_i32, %c0_i32_0 : i32, i32
  }
  func.func @transform_3(%arg0: i32) -> (i32, i32) {
    %c0_i32 = arith.constant 0 : i32
    %c0_i32_0 = arith.constant 0 : i32
    %c0_i32_1 = arith.constant 0 : i32
    return %c0_i32, %c0_i32_0 : i32, i32
  }
  func.func @transform_4(%arg0: i32) -> (i32, i32) {
    %c0_i32 = arith.constant 0 : i32
    %c0_i32_0 = arith.constant 0 : i32
    %c0_i32_1 = arith.constant 0 : i32
    return %c0_i32, %c0_i32_0 : i32, i32
  }
  func.func @transform_5(%arg0: i32) -> (i32, i32) {
    %c0_i32 = arith.constant 0 : i32
    %c0_i32_0 = arith.constant 0 : i32
    return %c0_i32, %arg0 : i32, i32
  }
  func.func @transform_6(%arg0: i32) -> (i32, i32) {
    %c0_i32 = arith.constant 0 : i32
    %c0_i32_0 = arith.constant 0 : i32
    return %c0_i32, %arg0 : i32, i32
  }
}

</mosaic_0001>

<bundles_post_ra>
// kernel: squeeze.1
= control target key start
LH: loop header
LB: loop body
LE: loop exit
PB: predicated region body
PF: predicated region fallthrough
CT: control target
= control target key end

     0   :  { %s89_s8 = smov 112   ;;  %s90_s11 = smov 80   ;;  %vm3_vm0 = vcmask 130048   ;;  %vm9_vm1 = vcmask 1048448   ;;  %vm15_vm2 = vcmask 917248   ;;  %vm21_vm3 = vcmask 786048   ;;  %s142_s0 = inlined_call_operand.vmem [shape: f32[2,1,16,16], index: 0, kind: input, shape index: {}]   ;;  %s143_s1 = inlined_call_operand.vmem [shape: f32[1,512], index: 1, kind: output, shape index: {}]  }
   0x1   :  { %v72_v0 = vld [vmem:[%s142_s0 + $0x7] ss:$8 sm:$0xf]   ;;  %v74_v1 = vld [vmem:[%s142_s0 + $0x5] ss:$8 sm:$0xf]  }
   0x2   :  { %7 = vrot.lane.b32.xlu0 %v72_v0, %s89_s8  ;;  %19 = vrot.lane.b32.xlu1 %v74_v1, %s90_s11  ;;  %v73_v2 = vld [vmem:[%s142_s0 + $0x6] ss:$8 sm:$0xf]   ;;  %v75_v3 = vld [vmem:[%s142_s0 + $0x4] ss:$8 sm:$0xf]  }
   0x3   :  { %s91_s16 = smov 96   ;;  %v2_v4 = vld [vmem:[%s142_s0] ss:$8 sm:$0xf]   ;;  %s92_s19 = smov 64   ;;  %vm27_vm4 = vcmask 654848  }
   0x4   :  { %v76_v5 = vld [vmem:[%s142_s0 + $0x3] ss:$8 sm:$0xf]   ;;  %4 = vst.msk [vmem:[#allocation0] ss:$8 sm:$0xf] %vm3_vm0, %v2_v4  }
   0x5   :  { %v77_v6 = vld [vmem:[%s142_s0 + $0x2] ss:$8 sm:$0xf]   ;;  %s93_s24 = smov 48   ;;  %s94_s25 = smov 32   ;;  %vm33_vm5 = vcmask 523648  }
   0x6   :  { %13 = vrot.lane.b32.xlu0 %v73_v2, %s91_s16  ;;  %25 = vrot.lane.b32.xlu1 %v75_v3, %s92_s19  ;;  %v78_v7 = vld [vmem:[%s142_s0 + $0x1] ss:$8 sm:$0xf]   ;;  %s95_s0 = smov 16   ;;  %vm39_vm6 = vcmask 392448   ;;  %vm45_vm7 = vcmask 261248  }
   0xa   :  { %31 = vrot.lane.b32.xlu0 %v76_v5, %s93_s24  ;;  %37 = vrot.lane.b32.xlu1 %v77_v6, %s94_s25 }
   0xe   :  { %43 = vrot.lane.b32.xlu0 %v78_v7, %s95_s0 }
  0x74   :  { %v8_v8 = vpop.permute.xlu0 %7   ;;  %v20_v9 = vpop.permute.xlu1 %19  }
  0x75   :  { %10 = vst.msk [vmem:[#allocation0] ss:$8 sm:$0xf] %vm9_vm1, %v8_v8  }
  0x78   :  { %v14_v10 = vpop.permute.xlu0 %13   ;;  %v26_v11 = vpop.permute.xlu1 %25  }
  0x79   :  { %16 = vst.msk [vmem:[#allocation0] ss:$8 sm:$0xf] %vm15_vm2, %v14_v10  }
  0x7a   :  { %22 = vst.msk [vmem:[#allocation0] ss:$8 sm:$0xf] %vm21_vm3, %v20_v9  }
  0x7b   :  { %28 = vst.msk [vmem:[#allocation0] ss:$8 sm:$0xf] %vm27_vm4, %v26_v11  }
  0x7c   :  { %v32_v12 = vpop.permute.xlu0 %31   ;;  %v38_v13 = vpop.permute.xlu1 %37  }
  0x7d   :  { %34 = vst.msk [vmem:[#allocation0] ss:$8 sm:$0xf] %vm33_vm5, %v32_v12  }
  0x7e   :  { %40 = vst.msk [vmem:[#allocation0] ss:$8 sm:$0xf] %vm39_vm6, %v38_v13  }
  0x80   :  { %v44_v14 = vpop.permute.xlu0 %43  }
  0x81   :  { %46 = vst.msk [vmem:[#allocation0] ss:$8 sm:$0xf] %vm45_vm7, %v44_v14  }
  0x88   :  { %v50_v15 = vld [vmem:[#allocation0] sm:$0x1]  ;;  %v54_v16 = vld [vmem:[#allocation0 + $0x8] sm:$0x1]  ;;  %v59_v17 = vld [vmem:[#allocation0 + $0x10] sm:$0x1] }
  0x89   :  { %52 = vst [vmem:[%s143_s1] sm:$0x1] %v50_v15  ;;  %79 = vst [vmem:[%s143_s1 + $0x1] sm:$0x1] %v54_v16  ;;  %v65_v18 = vld [vmem:[#allocation0 + $0x18] sm:$0x1] }
  0x8a   :  { %80 = vst [vmem:[%s143_s1 + $0x2] sm:$0x1] %v59_v17  ;;  %81 = vst [vmem:[%s143_s1 + $0x3] sm:$0x1] %v65_v18 }

// kernel: fwd.6
= control target key start
LH: loop header
LB: loop body
LE: loop exit
PB: predicated region body
PF: predicated region fallthrough
CT: control target
= control target key end

     0   :  { %s1800_s0 = inlined_call_operand.vmem [shape: bf16[25,512], index: 0, kind: input, shape index: {}]   ;;  %s1801_s1 = inlined_call_operand.hbm [shape: bf16[40,25], index: 1, kind: input, shape index: {}]   ;;  %s1802_s2 = inlined_call_operand.vmem [shape: f32[40,1], index: 2, kind: input, shape index: {}]   ;;  %s1803_s3 = inlined_call_operand.hbm [shape: bf16[32,8], index: 3, kind: input, shape index: {}]   ;;  %s1804_s4 = inlined_call_operand.vmem [shape: f32[32,1], index: 4, kind: input, shape index: {}]   ;;  %s1805_s5 = inlined_call_operand.hbm [shape: bf16[24,32], index: 5, kind: input, shape index: {}]   ;;  %s1806_s6 = inlined_call_operand.vmem [shape: f32[24,1], index: 6, kind: input, shape index: {}]   ;;  %s1807_s7 = inlined_call_operand.hbm [shape: bf16[16,8], index: 7, kind: input, shape index: {}]   ;;  %s1808_s8 = inlined_call_operand.vmem [shape: f32[16,1], index: 8, kind: input, shape index: {}]   ;;  %s1809_s9 = inlined_call_operand.vmem [shape: f32[1,512], index: 9, kind: input, shape index: {}]   ;;  %s1810_s10 = inlined_call_operand.vmem [shape: bf16[16,512], index: 10, kind: output, shape index: {}]  }
   0x1   :  { %1816 = sst [smem:[#allocation17_spill]] %s1809_s9 }
   0x2   :  { %1817 = sst [smem:[#allocation18_spill]] %s1810_s10 }
   0x3   :  { %15 = vsyncpa [#allocation4], 0 }
   0x4   :  { %16 = vsyncpa [#allocation6], 0 }
   0x5   :  { %17 = vsyncpa [#allocation9], 0  ;;  %s1493_s13 = smov 0   ;;  %s1495_s14 = smov 0  }
   0x6   :  { %s1497_s15 = smov 0  }
   0x7 LB: > { %s1509_s16 = sadd.s32 4294967295, %s1428_s15   ;;  %s1512_s17 = sadd.s32 1, %s1428_s15   ;;  %s1428_s15 = sphi %s1497_s15, %s1838_s15   ;;  %s1424_s14 = sphi %s1495_s14, %s1841_s14   ;;  %s1420_s13 = sphi %s1493_s13, %s1840_s13  }
   0x8   : > { %1818 = sst [smem:[#allocation14_spill]] %s1512_s17  ;;  %s27_s18 = ssub.s32 %s1428_s15, %s1512_s17 }
   0x9   : > { %s30_s19 = sadd.s32 1, %s1424_s14  ;;  %p28_p0 = scmp.eq.s32.totalorder %s27_s18, 0 }
   0xa   : > { %p37_p1 = scmp.ne.s32.totalorder %s1424_s14, %s1420_s13  ;;  %p38_p2 = scmp.eq.s32.totalorder %s1428_s15, 0 }
   0xb   : > { %p261_p3 = scmp.eq.s32.totalorder %s1509_s16, 1  ;;  %p1147_p6 = scmp.ge.s32.totalorder %s1428_s15, 1 }
   0xc   : > { %s1522_s20 = scalar_select %p28_p0, %s1424_s14, %s30_s19  }
   0xd   : > { %p1524_p4 = por %p38_p2, %p37_p1  ;;  %p1528_p5 = por %p261_p3, %p37_p1 }
   0xe   : > { %1819 = sst [smem:[#allocation15_spill]] %s1522_s20  ;;  %p274_p7 = scmp.lt.s32.totalorder %s1428_s15, 3 }
   0xf   : > { %s1820_s21 = scalar_select %p1524_p4, 1, 0 }
  0x10   : > { %s1821_s22 = scalar_select %p1528_p5, 1, 0 }
  0x11   : > { %p1811_p8 = scmp.eq.s32.totalorder %s1509_s16, 0  ;;  %p1535_p9 = pnand %p1147_p6, %p274_p7 }
  0x12   : > { %1822 = sst [smem:[#allocation16_spill]] %s1821_s22  ;;  %s1430_s24 = smov [#allocation5]  }
  0x13   : > { %s1823_s23 = scalar_select %p1535_p9, 1, 0 }
  0x14   : > { %p1213_p10 = pneg %p1535_p9  ;;  %s302_s25 = sshll.u32 %s1430_s24, 4  ;;  %s1541_s25 = int_to_ptr.vmem [resolvable:$true] %s302_s25 }
  0x15   : > { %s1431_s27 = smov [#allocation3]   ;;  %s1432_s29 = smov [#allocation7]  }
  0x16   : > { %p1545_p11 = pnand %p1811_p8, %p1213_p10  ;;  %s286_s28 = sshll.u32 %s1431_s27, 4  ;;  %s1549_s28 = int_to_ptr.vmem [resolvable:$true] %s286_s28 }
  0x17   : > { %s1551_s30 = sshll.u32 %s1432_s29, 4  ;;  %s1282_s18 = scalar_lea.hbm %s1803_s3, 256  ;;  %s319_s30 = int_to_ptr.vmem [resolvable:$true] %s1551_s30 }
  0x18   : > { %p1283_p12 = scmp.ne.s32.totalorder %s1803_s3, %s1282_s18  ;;  %p1561_p13 = pneg %p1545_p11 }
  0x19   : > { %p1289_p2 = scmp.lt.u32.totalorder %s1282_s18, %s1803_s3 }
  0x1a   : > { %p1285_p0 = pnand %p1561_p13, %p1283_p12 }
  0x1c   : > { %p1286_p1 = pneg %p1285_p0 }
  0x1e   : > { %p1291_p3 = pnand %p1289_p2, %p1286_p1 }
  0x20   : > { %1294 = shalt.err (!%p1291_p3)
}
  0x21   : > { %s1295_s11 = scalar_lea.vmem %s1541_s25, 256  ;;  %p1303_p8 = scmp.lt.s32.totalorder %s1541_s25, %s1541_s25 }
  0x22   : > { %p1296_p6 = scmp.ne.s32.totalorder %s1541_s25, %s1295_s11  ;;  %p1304_p5 = scmp.lt.s32.totalorder %s1295_s11, %s1295_s11 }
  0x24   : > { %p1298_p7 = pnand %p1296_p6, %p1561_p13  ;;  %p1305_p12 = por %p1304_p5, %p1303_p8 }
  0x26   : > { %p1299_p10 = pneg %p1298_p7 }
  0x28   : > { %p1306_p0 = pnand %p1305_p12, %p1299_p10 }
  0x2a   : > { %1309 = shalt.err (!%p1306_p0)
}
  0x2b   : > { %s1433_s12 = smov 64   ;;  %s1434_s18 = smov 4  }
  0x2c   : > { %1219 = dma.hbm_to_vmem [thread:$0]  (!%p1545_p11), %s1803_s3, 256, %s1541_s25, [#allocation6], %s1433_s12, %s1433_s12, %s1434_s18  }
  0x2d   : > { %s1310_s11 = scalar_lea.hbm %s1801_s1, 320 }
  0x2e   : > { %p1311_p5 = scmp.ne.s32.totalorder %s1801_s1, %s1310_s11  ;;  %p1317_p2 = scmp.lt.u32.totalorder %s1310_s11, %s1801_s1 }
  0x30   : > { %p1313_p8 = pnand %p1311_p5, %p1561_p13 }
  0x32   : > { %p1314_p1 = pneg %p1313_p8 }
  0x34   : > { %p1319_p3 = pnand %p1317_p2, %p1314_p1 }
  0x36   : > { %1322 = shalt.err (!%p1319_p3)
}
  0x37   : > { %s1323_s25 = scalar_lea.vmem %s1549_s28, 320  ;;  %p1331_p12 = scmp.lt.s32.totalorder %s1549_s28, %s1549_s28 }
  0x38   : > { %p1324_p6 = scmp.ne.s32.totalorder %s1549_s28, %s1323_s25  ;;  %p1332_p0 = scmp.lt.s32.totalorder %s1323_s25, %s1323_s25 }
  0x3a   : > { %p1326_p7 = pnand %p1324_p6, %p1561_p13  ;;  %p1333_p5 = por %p1332_p0, %p1331_p12 }
  0x3c   : > { %p1327_p10 = pneg %p1326_p7 }
  0x3e   : > { %p1334_p8 = pnand %p1333_p5, %p1327_p10 }
  0x40   : > { %1337 = shalt.err (!%p1334_p8)
}
  0x41   : > { %1216 = dma.hbm_to_vmem [thread:$0]  (!%p1545_p11), %s1801_s1, 320, %s1549_s28, [#allocation4], %s1433_s12, %s1433_s12, %s1434_s18  }
  0x42   : > { %s1338_s19 = scalar_lea.hbm %s1805_s5, 192 }
  0x43   : > { %p1339_p1 = scmp.ne.s32.totalorder %s1805_s5, %s1338_s19  ;;  %p1345_p6 = scmp.lt.u32.totalorder %s1338_s19, %s1805_s5 }
  0x45   : > { %p1341_p2 = pnand %p1339_p1, %p1561_p13 }
  0x47   : > { %p1342_p3 = pneg %p1341_p2 }
  0x49   : > { %p1347_p7 = pnand %p1345_p6, %p1342_p3 }
  0x4b   : > { %1350 = shalt.err (!%p1347_p7)
}
  0x4c   : > { %s1351_s25 = scalar_lea.vmem %s319_s30, 192  ;;  %p1359_p5 = scmp.lt.s32.totalorder %s319_s30, %s319_s30 }
  0x4d   : > { %p1352_p10 = scmp.ne.s32.totalorder %s319_s30, %s1351_s25  ;;  %p1360_p8 = scmp.lt.s32.totalorder %s1351_s25, %s1351_s25 }
  0x4f   : > { %p1354_p12 = pnand %p1352_p10, %p1561_p13  ;;  %p1361_p9 = por %p1360_p8, %p1359_p5 }
  0x51   : > { %p1355_p0 = pneg %p1354_p12 }
  0x53   : > { %p1362_p4 = pnand %p1361_p9, %p1355_p0 }
  0x55   : > { %1365 = shalt.err (!%p1362_p4)
}
  0x56   : > { %1222 = dma.hbm_to_vmem [thread:$0]  (!%p1545_p11), %s1805_s5, 192, %s319_s30, [#allocation6], %s1433_s12, %s1433_s12, %s1434_s18  }
  0x57   : > { %s1435_s10 = smov [#allocation8]   ;;  %s1366_s24 = scalar_lea.hbm %s1807_s7, 128 }
  0x58   : > { %s334_s17 = sshll.u32 %s1435_s10, 4  ;;  %p1367_p4 = scmp.ne.s32.totalorder %s1807_s7, %s1366_s24  ;;  %s335_s17 = int_to_ptr.vmem [resolvable:$true] %s334_s17 }
  0x59   : > { %p1373_p2 = scmp.lt.u32.totalorder %s1366_s24, %s1807_s7 }
  0x5a   : > { %p1369_p9 = pnand %p1367_p4, %p1561_p13 }
  0x5c   : > { %p1370_p1 = pneg %p1369_p9 }
  0x5e   : > { %p1375_p3 = pnand %p1373_p2, %p1370_p1 }
  0x60   : > { %1378 = shalt.err (!%p1375_p3)
}
  0x61   : > { %s1379_s30 = scalar_lea.vmem %s335_s17, 128  ;;  %p1387_p12 = scmp.lt.s32.totalorder %s335_s17, %s335_s17 }
  0x62   : > { %p1380_p6 = scmp.ne.s32.totalorder %s335_s17, %s1379_s30  ;;  %p1388_p0 = scmp.lt.s32.totalorder %s1379_s30, %s1379_s30 }
  0x64   : > { %p1382_p7 = pnand %p1380_p6, %p1561_p13  ;;  %p1389_p5 = por %p1388_p0, %p1387_p12 }
  0x66   : > { %p1383_p10 = pneg %p1382_p7 }
  0x68   : > { %p1390_p8 = pnand %p1389_p5, %p1383_p10 }
  0x6a   : > { %1393 = shalt.err (!%p1390_p8)
}
  0x6b   : > { %1225 = dma.hbm_to_vmem [thread:$0]  (!%p1545_p11), %s1807_s7, 128, %s335_s17, [#allocation9], %s1433_s12, %s1433_s12, %s1434_s18  }
  0x6c   : > { %p1152_p4 = scmp.ge.s32.totalorder %s1428_s15, 2 }
  0x6d   : > { %p1826_p13 = scmp.ne.s32.totalorder (!%p1152_p4), %s1820_s21, 0 }
  0x6e   : > { %347 = sbr.rel (%p1152_p4) target bundleno = 124 (0x7c), region = 48 }
  0x75   : > { %350 = sbr.rel (!%p1826_p13) target bundleno = 124 (0x7c), region = 52  ;;  %s352_s20 = sand.u32 (%p1826_p13), 1, %s1424_s14  }
  0x76   : > { %s1193_s10 = sshll.u32 (%p1826_p13), %s1428_s15, 3  ;;  %s1153_s22 = sshll.u32 (%p1826_p13), %s352_s20, 5 }
  0x77   : > { %s357_s24 = scalar_lea.vmem (%p1826_p13), %s1800_s0, %s1193_s10  ;;  %s354_s27 = scalar_lea.vmem (%p1826_p13), [#allocation2], %s1153_s22 }
  0x78   : > { %v391_v0 = vld [vmem:[%s357_s24] sm:$0xff] (%p1826_p13)  ;;  %v393_v1 = vld [vmem:[%s357_s24 + $0x10] sm:$0xff] (%p1826_p13) }
  0x79   : > { %v395_v2 = vld [vmem:[%s357_s24 + $0x20] sm:$0xff] (%p1826_p13)  ;;  %392 = vst [vmem:[%s354_s27] sm:$0xff] (%p1826_p13), %v391_v0  ;;  %394 = vst [vmem:[%s354_s27 + $0x8] sm:$0xff] (%p1826_p13), %v393_v1  ;;  %v397_v3 = vld [vmem:[%s357_s24 + $0x30] sm:$0xff] (%p1826_p13) }
  0x7a   : > { %396 = vst [vmem:[%s354_s27 + $0x10] sm:$0xff] (%p1826_p13), %v395_v2  ;;  %398 = vst [vmem:[%s354_s27 + $0x18] sm:$0xff] (%p1826_p13), %v397_v3 }
  0x7c PF: > { %p1827_p11 = scmp.ne.s32.totalorder %s1823_s23, 0 }
  0x7d   : > { %s418_s15 = sand.u32 (!%p1827_p11), 1, %s1420_s13   ;;  %p1828_p9 = scmp.eq.s32.totalorder (!%p1827_p11), %s1509_s16, 0 }
  0x7e   : > { %415 = sbr.rel (%p1827_p11) target bundleno = 1069 (0x42d), region = 94  ;;  %s1157_s21 = sshll.u32 (!%p1827_p11), %s418_s15, 5 }
  0x7f   : > { %s420_s12 = scalar_lea.vmem (!%p1827_p11), [#allocation2], %s1157_s21 }
  0x85   : > { %1407 = dma.done.wait (%p1828_p9), [#allocation4], 320   ;;  %p1829_p1 = pmov %p1828_p9 }
  0x87   : > { %1409 = vsyncadd (%p1829_p1), [#allocation4], 4294966976  ;;  %p1830_p2 = pmov %p1829_p1 }
  0x88   : > { %p1831_p3 = pmov %p1829_p1 }
  0x89   : > { %1411 = dma.done.wait (%p1830_p2), [#allocation6], 448  }
  0x8a   : > { %1413 = vsyncadd (%p1831_p3), [#allocation6], 4294966848  ;;  %p1832_p6 = pmov %p1829_p1 }
  0x8b   : > { %p1833_p7 = pmov %p1829_p1 }
  0x8c   : > { %1415 = dma.done.wait (%p1832_p6), [#allocation9], 128  }
  0x8d   : > { %1417 = vsyncadd (%p1833_p7), [#allocation9], 4294967168  ;;  %v1436_v4 = vmov 0   ;;  %vm572_vm0 = vcmask 1043456   ;;  %vm573_vm1 = vcmask 1044480   ;;  %v1437_v5 = vmov 65535  }
  0x8e   : > { %614 = vmatprep.mubr.bf16.mxu0 %v1436_v4  ;;  %1266 = vset.pattern.permute.xlu0 %v1436_v4  ;;  %v574_v6 = vsel %vm572_vm0, 4294967295, %v1437_v5  ;;  %v1268_v7 = vld [vmem:[%s420_s12 + $0x4] ss:$8 sps:$4 sm:$0xff]   ;;  %v1270_v8 = vld [vmem:[%s420_s12] ss:$8 sps:$4 sm:$0xff]   ;;  %vm562_vm2 = vcmask 203776   ;;  %v644_v31 = vlaneseq }
  0x8f   : > { %733 = vmatprep.mubr.bf16.mxu1 %v1436_v4  ;;  %1267 = vset.pattern.permute.xlu1 %v1436_v4  ;;  %v575_v9 = vsel %vm573_vm1, %v574_v6, 0  ;;  %v1271_v10 = vld [vmem:[%s420_s12 + $0x14] ss:$8 sps:$4 sm:$0x1f]   ;;  %v493_v14 = vld [vmem:[%s1802_s2] sm:$0xff]  ;;  %v494_v16 = vld [vmem:[%s1802_s2 + $0x8] sm:$0xff] }
  0x90   : > { %582 = vmatprep.subr.bf16.mxu0 %v1268_v7  ;;  %v1273_v11 = vld [vmem:[%s420_s12 + $0x10] ss:$8 sps:$4 sm:$0x1f]   ;;  %v580_v12 = vand.u32 %v1271_v10, %v575_v9  ;;  %v1274_v15 = vld [vmem:[#allocation3] sm:$0xff]   ;;  %508 = vperm.xlu0 %1266, %v493_v14   ;;  %v503_v17 = vld [vmem:[%s1804_s4 + $0x8] sm:$0xff]  ;;  %s1163_s10 = sshll.u32 %s1509_s16, 1 }
  0x91   : > { %583 = vmatpush1.bf16.msra.mxu0 %v1270_v8  ;;  %v577_v13 = vand.u32 %v1273_v11, %v575_v9  ;;  %v1275_v18 = vld [vmem:[#allocation3 + $0x8] sm:$0xff]   ;;  %v497_v19 = vld [vmem:[%s1802_s2 + $0x20] sm:$0xff]  ;;  %v505_v20 = vld [vmem:[%s1804_s4 + $0x18] sm:$0xff]  ;;  %p476_p10 = scmp.lt.s32.totalorder %s1163_s10, 3  ;;  %s1834_s26 = sld [smem:[#allocation17_spill]]  ;;  %v645_v32 = vshrl.u32 %v644_v31, 7 }
  0x92   : > { %584 = vmatprep.subr.bf16.mxu0 %v580_v12  ;;  %v1276_v21 = vld [vmem:[#allocation3 + $0x10] ss:$0 sps:$4 sm:$0xff]   ;;  %v805_v22 = vld [vmem:[%s1806_s6 + $0x8] sm:$0xff]  ;;  %v809_v23 = vld [vmem:[%s1808_s8] sm:$0xff]  ;;  %vm688_vm3 = vcmask 64512   ;;  %vm834_vm4 = vcmask 261120  }
  0x93   : > { %v495_v24 = vld [vmem:[%s1802_s2 + $0x10] sm:$0xff]  ;;  %v502_v25 = vld [vmem:[%s1804_s4] sm:$0xff]  ;;  %v496_v26 = vld [vmem:[%s1802_s2 + $0x18] sm:$0xff]  ;;  %s1843_s10 = smov (!%p476_p10, %s1163_s10), 3  ;;  %v646_v35 = vsub.s32 0, %v645_v32  ;;  %v650_v36 = vsub.s32 1, %v645_v32 }
  0x94   : > { %513 = vperm.xlu0 %1266, %v494_v16   ;;  %518 = vperm.xlu1 %1267, %v495_v24   ;;  %v504_v27 = vld [vmem:[%s1804_s4 + $0x10] sm:$0xff]  ;;  %v804_v28 = vld [vmem:[%s1806_s6] sm:$0xff]  ;;  %v810_v30 = vld [vmem:[%s1808_s8 + $0x8] sm:$0xff]  ;;  %s1162_s27 = sshll.u32 %s418_s15, 4  ;;  %s1835_s12 = sld [smem:[#allocation16_spill]] }
  0x95   : > { %585 = vmatpush1.bf16.msra.mxu0 %v577_v13  ;;  %v806_v29 = vld [vmem:[%s1806_s6 + $0x10] sm:$0xff]  ;;  %v1278_v57 = vld [vmem:[#allocation5 + $0x8] sm:$0xff]   ;;  %s473_s21 = scalar_lea.vmem [#allocation10], %s1162_s27 }
  0x96   : > { %v1277_v52 = vld [vmem:[#allocation5] sm:$0xff]  }
  0x97   : > { %s478_s24 = scalar_lea.vmem %s1834_s26, %s1843_s10 }
  0x98   : > { %1171 = vmatmul.mubr.msk.bf16.vlgmr.msra.gmra.mrb[0].mxu0 %vm562_vm2, %v1274_v15  ;;  %665 = vperm.xlu0 %1266, %v503_v17   ;;  %v482_v33 = vld [vmem:[%s478_s24] sm:$0x3] }
  0x99   : > { %624 = vmatprep.mubr.bf16.mxu0 %v1436_v4  ;;  %660 = vperm.xlu1 %1267, %v502_v25   ;;  %v483_v34 = vsub.f32 1.0, %v482_v33  ;;  %v1748_v2 = vrot.slane %v482_v33, %v646_v35  ;;  %v1750_v5 = vrot.slane %v482_v33, %v650_v36 }
  0x9a   : > { %p1836_p12 = scmp.ne.s32.totalorder %s1835_s12, 0 }
  0x9b   : > { %v1736_v37 = vrot.slane %v483_v34, %v646_v35  ;;  %v1738_v40 = vrot.slane %v483_v34, %v650_v36  ;;  %s1196_s13 = sshll.u32 (%p1836_p12), %s1509_s16, 3  ;;  %s1837_s18 = sld [smem:[#allocation18_spill]] (%p1836_p12) }
  0x9c   : > { %528 = vperm.xlu0 %1266, %v497_v19  }
  0x9d   : > { %523 = vperm.xlu1 %1267, %v496_v26  }
  0xa0   : > { %1172 = vmatmul.mubr.msk.bf16.gmra.mrb[4].mxu0 %vm562_vm2, %v1275_v18  ;;  %675 = vperm.xlu0 %1266, %v505_v20  }
  0xa1   : > { %634 = vmatprep.mubr.bf16.mxu0 %v1436_v4  ;;  %670 = vperm.xlu1 %1267, %v504_v27   ;;  %s1002_s17 = scalar_lea.vmem (%p1836_p12), %s1837_s18, %s1196_s13 }
  0xa4   : > { %818 = vperm.xlu0 %1266, %v805_v22  }
  0xa5   : > { %813 = vperm.xlu1 %1267, %v804_v28  }
  0xa8   : > { %1173 = vmatmul.mubr.msk.bf16.gmra.mrb[8].mxu0 %vm562_vm2, %v1276_v21  ;;  %898 = vperm.xlu0 %1266, %v809_v23  }
  0xa9   : > { %952 = vmatprep.mubr.bf16.mxu0 %v1436_v4  ;;  %823 = vperm.xlu1 %1267, %v806_v29  }
  0xad   : > { %903 = vperm.xlu1 %1267, %v810_v30  }
 0x10f   : > { %v509_v38 = vpop.permute.xlu0 %508 }
 0x113   : > { %v519_v61 = vpop.permute.xlu1 %518  ;;  %v514_v62 = vpop.permute.xlu0 %513 }
 0x117   : > { %v666_v0 = vpop.permute.xlu0 %665 }
 0x118   : > { %v661_v63 = vpop.permute.xlu1 %660 }
 0x11b   : > { %v529_v18 = vpop.permute.xlu0 %528 }
 0x11c   : > { %v524_v11 = vpop.permute.xlu1 %523 }
 0x120   : > { %v671_v31 = vpop.permute.xlu1 %670 }
 0x16b   : > { %v616_v39 = vpop.f32.mrb[0].mxu0 }
 0x16c   : > { %v617_v41 = vadd.f32 %v616_v39, %v509_v38  ;;  %v618_v42 = vpop.f32.mrb[1].mxu0 }
 0x16d   : > { %v619_v43 = vadd.f32 %v618_v42, %v509_v38  ;;  %v620_v44 = vpop.f32.mrb[2].mxu0 }
 0x16e   : > { %v654_v45 = vmul.f32 %v1736_v37, %v617_v41  ;;  %v622_v46 = vpop.f32.mrb[3].mxu0  ;;  %v621_v1 = vadd.f32 %v620_v44, %v514_v62  ;;  %v676_v41 = vpop.permute.xlu0 %675 }
 0x16f   : > { %v655_v47 = vmul.f32 %v1738_v40, %v619_v43  ;;  %v623_v3 = vadd.f32 %v622_v46, %v514_v62 }
 0x170   : > { %v656_v48 = vpack.c.bf16 %v654_v45, %v654_v45  ;;  %v765_v14 = vmul.f32 %v1748_v2, %v621_v1 }
 0x171   : > { %v657_v49 = vpack.c.bf16 %v655_v47, %v655_v47  ;;  %v766_v19 = vmul.f32 %v1750_v5, %v623_v3 }
 0x172   : > { %v696_v50 = vsel %vm572_vm0, %v656_v48, 0 }
 0x173   : > { %1176 = vmatprep.subr.msk.bf16.mxu1 %vm572_vm0, %v657_v49  ;;  %v626_v51 = vpop.f32.mrb[4].mxu0 }
 0x174   : > { %702 = vmatpush1.bf16.msra.mxu1 %v696_v50  ;;  %v628_v53 = vpop.f32.mrb[5].mxu0  ;;  %v627_v7 = vadd.f32 %v626_v51, %v519_v61 }
 0x175   : > { %v630_v54 = vpop.f32.mrb[6].mxu0  ;;  %v629_v10 = vadd.f32 %v628_v53, %v519_v61 }
 0x176   : > { %v632_v55 = vpop.f32.mrb[7].mxu0  ;;  %v767_v22 = vmul.f32 %v1748_v2, %v627_v7  ;;  %v631_v28 = vadd.f32 %v630_v54, %v524_v11 }
 0x177   : > { %1177 = vmatmul.mubr.msk.bf16.vlgmr.msra.gmra.mrb[0].mxu1 %vm688_vm3, %v1277_v52  ;;  %v768_v25 = vmul.f32 %v1750_v5, %v629_v10  ;;  %v633_v30 = vadd.f32 %v632_v55, %v524_v11  ;;  %v1280_v10 = vld [vmem:[#allocation7 + $0x8] ss:$0 sps:$4 sm:$0xff]   ;;  %v814_v11 = vpop.permute.xlu1 %813 }
 0x178   : > { %743 = vmatprep.mubr.bf16.mxu1 %v1436_v4  ;;  %v769_v47 = vmul.f32 %v1748_v2, %v631_v28 }
 0x179   : > { %v770_v52 = vmul.f32 %v1750_v5, %v633_v30 }
 0x17b   : > { %v636_v56 = vpop.f32.mrb[8].mxu0  ;;  %v824_v28 = vpop.permute.xlu1 %823 }
 0x17c   : > { %v638_v58 = vpop.f32.mrb[9].mxu0  ;;  %v637_v34 = vadd.f32 %v636_v56, %v529_v18 }
 0x17d   : > { %v640_v59 = vpop.f32.mrb[10].mxu0  ;;  %v639_v42 = vadd.f32 %v638_v58, %v529_v18 }
 0x17e   : > { %v641_v60 = vpop.f32.mrb[11].mxu0  ;;  %v771_v56 = vmul.f32 %v1748_v2, %v637_v34 }
 0x17f   : > { %1178 = vmatmul.mubr.msk.bf16.gmra.mrb[4].mxu1 %vm688_vm3, %v1278_v57  ;;  %v772_v59 = vmul.f32 %v1750_v5, %v639_v42 }
 0x180   : > { %873 = vmatprep.mubr.bf16.mxu1 %v1436_v4 }
 0x24a   : > { %v735_v6 = vpop.f32.mrb[0].mxu1 }
 0x24b   : > { %v736_v8 = vadd.f32 %v735_v6, %v661_v63  ;;  %v737_v9 = vpop.f32.mrb[1].mxu1 }
 0x24c   : > { %v738_v12 = vadd.f32 %v737_v9, %v661_v63  ;;  %v739_v13 = vpop.f32.mrb[2].mxu1  ;;  %v1279_v9 = vld [vmem:[#allocation7] sm:$0xff]  }
 0x24d   : > { %v773_v15 = vmul.f32 %v736_v8, %v1736_v37  ;;  %v740_v16 = vadd.f32 %v739_v13, %v666_v0  ;;  %v741_v17 = vpop.f32.mrb[3].mxu1 }
 0x24e   : > { %v774_v20 = vmul.f32 %v738_v12, %v1738_v40  ;;  %v742_v21 = vadd.f32 %v741_v17, %v666_v0 }
 0x24f   : > { %v781_v23 = vadd.f32 %v773_v15, %v765_v14  ;;  %v775_v24 = vmul.f32 %v740_v16, %v1736_v37 }
 0x250   : > { %v782_v26 = vadd.f32 %v774_v20, %v766_v19  ;;  %v776_v27 = vmul.f32 %v742_v21, %v1738_v40 }
 0x251   : > { %v783_v29 = vadd.f32 %v775_v24, %v767_v22  ;;  %v789_v35 = vmax.f32 %v781_v23, 0.0 }
 0x252   : > { %v784_v32 = vadd.f32 %v776_v27, %v768_v25  ;;  %v745_v33 = vpop.f32.mrb[4].mxu1  ;;  %v790_v43 = vmax.f32 %v782_v26, 0.0  ;;  %v819_v27 = vpop.permute.xlu0 %818 }
 0x253   : > { %v791_v36 = vmax.f32 %v783_v29, 0.0  ;;  %v746_v38 = vadd.f32 %v745_v33, %v671_v31  ;;  %v747_v39 = vpop.f32.mrb[5].mxu1 }
 0x254   : > { %v792_v44 = vmax.f32 %v784_v32, 0.0  ;;  %v748_v45 = vadd.f32 %v747_v39, %v671_v31  ;;  %v749_v46 = vpop.f32.mrb[6].mxu1 }
 0x255   : > { %v797_v48 = vpack.c.bf16 %v791_v36, %v789_v35  ;;  %v777_v49 = vmul.f32 %v746_v38, %v1736_v37  ;;  %v750_v50 = vadd.f32 %v749_v46, %v676_v41  ;;  %v751_v51 = vpop.f32.mrb[7].mxu1  ;;  %v904_v36 = vpop.permute.xlu1 %903 }
 0x256   : > { %v778_v53 = vmul.f32 %v748_v45, %v1738_v40  ;;  %v752_v54 = vadd.f32 %v751_v51, %v676_v41  ;;  %v798_v55 = vpack.c.bf16 %v792_v44, %v790_v43  ;;  %v899_v30 = vpop.permute.xlu0 %898 }
 0x257   : > { %v785_v57 = vadd.f32 %v777_v49, %v769_v47  ;;  %v779_v58 = vmul.f32 %v750_v50, %v1736_v37 }
 0x258   : > { %v786_v60 = vadd.f32 %v778_v53, %v770_v52  ;;  %v780_v61 = vmul.f32 %v752_v54, %v1738_v40  ;;  %841 = vmatprep.subr.bf16.mxu1 %v798_v55 }
 0x259   : > { %v787_v62 = vadd.f32 %v779_v58, %v771_v56  ;;  %842 = vmatpush1.bf16.msra.mxu1 %v797_v48  ;;  %v793_v0 = vmax.f32 %v785_v57, 0.0 }
 0x25a   : > { %v788_v63 = vadd.f32 %v780_v61, %v772_v59  ;;  %v794_v3 = vmax.f32 %v786_v60, 0.0 }
 0x25b   : > { %v795_v1 = vmax.f32 %v787_v62, 0.0 }
 0x25c   : > { %v796_v6 = vmax.f32 %v788_v63, 0.0 }
 0x25d   : > { %v799_v7 = vpack.c.bf16 %v795_v1, %v793_v0 }
 0x25e   : > { %v800_v8 = vpack.c.bf16 %v796_v6, %v794_v3 }
 0x260   : > { %843 = vmatprep.subr.bf16.mxu1 %v800_v8 }
 0x261   : > { %844 = vmatpush1.bf16.msra.mxu1 %v799_v7 }
 0x264   : > { %1181 = vmatmul.mubr.msk.bf16.vlgmr.msra.gmra.mrb[8].mxu1 %vm834_vm4, %v1279_v9 }
 0x265   : > { %883 = vmatprep.mubr.bf16.mxu1 %v1436_v4  ;;  %v1281_v4 = vld [vmem:[#allocation8] sm:$0xff]  }
 0x26c   : > { %1182 = vmatmul.mubr.msk.bf16.gmra.mrb[12].mxu1 %vm834_vm4, %v1280_v10 }
 0x337   : > { %v875_v12 = vpop.f32.mrb[8].mxu1 }
 0x338   : > { %v876_v13 = vadd.f32 %v875_v12, %v814_v11  ;;  %v877_v14 = vpop.f32.mrb[9].mxu1 }
 0x339   : > { %v878_v15 = vadd.f32 %v877_v14, %v814_v11  ;;  %v879_v16 = vpop.f32.mrb[10].mxu1 }
 0x33a   : > { %v892_v17 = vmul.f32 %v876_v13, %v1736_v37  ;;  %v881_v18 = vpop.f32.mrb[11].mxu1  ;;  %v880_v29 = vadd.f32 %v879_v16, %v819_v27 }
 0x33b   : > { %v893_v19 = vmul.f32 %v878_v15, %v1738_v40  ;;  %v882_v31 = vadd.f32 %v881_v18, %v819_v27 }
 0x33c   : > { %v894_v20 = vpack.c.bf16 %v892_v17, %v892_v17  ;;  %v963_v42 = vmul.f32 %v880_v29, %v1748_v2 }
 0x33d   : > { %v895_v21 = vpack.c.bf16 %v893_v19, %v893_v19  ;;  %v964_v46 = vmul.f32 %v882_v31, %v1750_v5 }
 0x33e   : > { %v915_v22 = vsel %vm572_vm0, %v894_v20, 0 }
 0x33f   : > { %v885_v23 = vpop.f32.mrb[12].mxu1  ;;  %1184 = vmatprep.subr.msk.bf16.mxu0 %vm572_vm0, %v895_v21 }
 0x340   : > { %v887_v24 = vpop.f32.mrb[13].mxu1  ;;  %921 = vmatpush1.bf16.msra.mxu0 %v915_v22  ;;  %v886_v33 = vadd.f32 %v885_v23, %v824_v28 }
 0x341   : > { %v889_v25 = vpop.f32.mrb[14].mxu1  ;;  %v888_v38 = vadd.f32 %v887_v24, %v824_v28 }
 0x342   : > { %v890_v26 = vpop.f32.mrb[15].mxu1  ;;  %v965_v49 = vmul.f32 %v886_v33, %v1748_v2 }
 0x343   : > { %1185 = vmatmul.mubr.msk.bf16.vlgmr.msra.gmra.mrb[12].mxu0 %vm688_vm3, %v1281_v4  ;;  %v966_v52 = vmul.f32 %v888_v38, %v1750_v5 }
 0x416   : > { %v954_v32 = vpop.f32.mrb[12].mxu0 }
 0x417   : > { %v955_v34 = vadd.f32 %v954_v32, %v899_v30  ;;  %v956_v35 = vpop.f32.mrb[13].mxu0 }
 0x418   : > { %v957_v39 = vadd.f32 %v956_v35, %v899_v30  ;;  %v958_v41 = vpop.f32.mrb[14].mxu0 }
 0x419   : > { %v967_v43 = vmul.f32 %v955_v34, %v1736_v37  ;;  %v959_v44 = vadd.f32 %v958_v41, %v904_v36  ;;  %v960_v45 = vpop.f32.mrb[15].mxu0 }
 0x41a   : > { %v968_v47 = vmul.f32 %v957_v39, %v1738_v40  ;;  %v961_v48 = vadd.f32 %v960_v45, %v904_v36 }
 0x41b   : > { %v971_v50 = vadd.f32 %v967_v43, %v963_v42  ;;  %v969_v51 = vmul.f32 %v959_v44, %v1736_v37 }
 0x41c   : > { %v972_v53 = vadd.f32 %v968_v47, %v964_v46  ;;  %v970_v54 = vmul.f32 %v961_v48, %v1738_v40 }
 0x41d   : > { %v975_v55 = vmax.f32 %v971_v50, 0.0  ;;  %v973_v56 = vadd.f32 %v969_v51, %v965_v49 }
 0x41e   : > { %v976_v57 = vmax.f32 %v972_v53, 0.0  ;;  %v974_v58 = vadd.f32 %v970_v54, %v966_v52  ;;  %999 = sbr.rel (!%p1836_p12) target bundleno = 1069 (0x42d), region = 118 }
 0x41f   : > { %v977_v59 = vmax.f32 %v973_v56, 0.0 }
 0x420   : > { %v1194_v60 = vpack.c.bf16 %v976_v57, %v975_v55  ;;  %v978_v61 = vmax.f32 %v974_v58, 0.0 }
 0x422   : > { %991 = vst [vmem:[%s473_s21] sm:$0xff] %v1194_v60  ;;  %v1195_v2 = vpack.c.bf16 %v978_v61, %v977_v59 }
 0x424   : > { %992 = vst [vmem:[%s473_s21 + $0x8] sm:$0xff] %v1195_v2 }
 0x429   : > { %v1032_v37 = vld [vmem:[%s473_s21] sm:$0xff] }
 0x42a   : > { %1033 = vst [vmem:[%s1002_s17] sm:$0xff] %v1032_v37 }
 0x42b   : > { %v1034_v5 = vld [vmem:[%s473_s21 + $0x8] sm:$0xff] }
 0x42c   : > { %1035 = vst [vmem:[%s1002_s17 + $0x10] sm:$0xff] %v1034_v5 }
 0x42d PF: > { %s1838_s15 = sld [smem:[#allocation14_spill]]  ;;  %s1839_s29 = sld [smem:[#allocation15_spill]] }
 0x42e   : > { %s1840_s13 = smov %s1424_s14 }
 0x433   : > { %p20_p0 = scmp.ge.s32.totalorder %s1838_s15, 4   ;;  %s1841_s14 = smov %s1839_s29 }
 0x435   :  { %22 = sbr.rel (!%p20_p0) target bundleno = 7 (0x7), region = 191 }
 0x43c   :  { %1051 = vsyncpa [#allocation4], 1 }
 0x43d   :  { %1053 = vsyncpa [#allocation4 + $0x1], 1 }
 0x43e   :  { %1054 = vsyncpa [#allocation6], 1 }
 0x43f   :  { %1055 = vsyncpa [#allocation9], 1 }

// kernel: fwd.7
= control target key start
LH: loop header
LB: loop body
LE: loop exit
PB: predicated region body
PF: predicated region fallthrough
CT: control target
= control target key end

     0   :  { %s984_s21 = smov 0   ;;  %s986_s22 = smov 0   ;;  %s1121_s0 = inlined_call_operand.vmem [shape: bf16[144,512], index: 0, kind: input, shape index: {}]   ;;  %s1122_s1 = inlined_call_operand.vmem [shape: bf16[24,144], index: 1, kind: input, shape index: {}]   ;;  %s1123_s2 = inlined_call_operand.vmem [shape: f32[24,1], index: 2, kind: input, shape index: {}]   ;;  %s1124_s3 = inlined_call_operand.vmem [shape: bf16[16,8], index: 3, kind: input, shape index: {}]   ;;  %s1125_s4 = inlined_call_operand.vmem [shape: f32[16,1], index: 4, kind: input, shape index: {}]   ;;  %s1126_s5 = inlined_call_operand.vmem [shape: f32[1,512], index: 5, kind: input, shape index: {}]   ;;  %s1127_s6 = inlined_call_operand.vmem [shape: bf16[16,512], index: 6, kind: output, shape index: {}]  }
   0x1   :  { %s988_s23 = smov 0  }
   0x2 LB: > { %s1000_s24 = sadd.s32 4294967295, %s946_s23   ;;  %s1003_s25 = sadd.s32 1, %s946_s23   ;;  %s946_s23 = sphi %s988_s23, %s1131_s23   ;;  %s942_s22 = sphi %s986_s22, %s1130_s22   ;;  %s938_s21 = sphi %s984_s21, %s1129_s21  }
   0x3   : > { %s20_s26 = ssub.s32 %s946_s23, %s1003_s25  ;;  %s23_s27 = sadd.s32 1, %s942_s22 }
   0x4   : > { %p21_p0 = scmp.eq.s32.totalorder %s20_s26, 0  ;;  %p30_p1 = scmp.ne.s32.totalorder %s942_s22, %s938_s21 }
   0x5   : > { %p31_p2 = scmp.eq.s32.totalorder %s946_s23, 0  ;;  %p170_p3 = scmp.eq.s32.totalorder %s1000_s24, 1 }
   0x6   : > { %s1013_s28 = scalar_select %p21_p0, %s942_s22, %s23_s27  }
   0x7   : > { %p32_p4 = por %p31_p2, %p30_p1  ;;  %p1015_p5 = por %p170_p3, %p30_p1 }
   0x8   : > { %p818_p6 = scmp.ge.s32.totalorder %s946_s23, 2 }
   0xa   : > { %204 = sbr.rel (%p818_p6) target bundleno = 30 (0x1e), region = 32 }
  0x11   : > { %207 = sbr.rel (!%p32_p4) target bundleno = 30 (0x1e), region = 36  ;;  %s209_s30 = sand.u32 (%p32_p4), 1, %s942_s22  }
  0x12   : > { %s858_s7 = sshll.u32 (%p32_p4), %s946_s23, 3  ;;  %s862_s8 = smul.u32 (%p32_p4), 144, %s209_s30 }
  0x13   : > { %s1025_s11 = scalar_lea.vmem (%p32_p4), %s1121_s0, %s858_s7 }
  0x14   : > { %v276_v0 = vld [vmem:[%s1025_s11] sm:$0xff] (%p32_p4)  ;;  %v278_v1 = vld [vmem:[%s1025_s11 + $0x10] sm:$0xff] (%p32_p4)  ;;  %s211_s12 = scalar_lea.vmem (%p32_p4), [#allocation2], %s862_s8 }
  0x15   : > { %v280_v2 = vld [vmem:[%s1025_s11 + $0x20] sm:$0xff] (%p32_p4)  ;;  %v282_v3 = vld [vmem:[%s1025_s11 + $0x30] sm:$0xff] (%p32_p4)  ;;  %277 = vst [vmem:[%s211_s12] sm:$0xff] (%p32_p4), %v276_v0  ;;  %279 = vst [vmem:[%s211_s12 + $0x8] sm:$0xff] (%p32_p4), %v278_v1 }
  0x16   : > { %v284_v4 = vld [vmem:[%s1025_s11 + $0x40] sm:$0xff] (%p32_p4)  ;;  %v286_v5 = vld [vmem:[%s1025_s11 + $0x50] sm:$0xff] (%p32_p4)  ;;  %281 = vst [vmem:[%s211_s12 + $0x10] sm:$0xff] (%p32_p4), %v280_v2  ;;  %283 = vst [vmem:[%s211_s12 + $0x18] sm:$0xff] (%p32_p4), %v282_v3 }
  0x17   : > { %285 = vst [vmem:[%s211_s12 + $0x20] sm:$0xff] (%p32_p4), %v284_v4  ;;  %287 = vst [vmem:[%s211_s12 + $0x28] sm:$0xff] (%p32_p4), %v286_v5  ;;  %v288_v6 = vld [vmem:[%s1025_s11 + $0x60] sm:$0xff] (%p32_p4)  ;;  %v290_v7 = vld [vmem:[%s1025_s11 + $0x70] sm:$0xff] (%p32_p4) }
  0x18   : > { %v292_v8 = vld [vmem:[%s1025_s11 + $0x80] sm:$0xff]  ;;  %289 = vst [vmem:[%s211_s12 + $0x30] sm:$0xff] %v288_v6  ;;  %291 = vst [vmem:[%s211_s12 + $0x38] sm:$0xff] %v290_v7  ;;  %v294_v9 = vld [vmem:[%s1025_s11 + $0x90] sm:$0xff] }
  0x19   : > { %293 = vst [vmem:[%s211_s12 + $0x40] sm:$0xff] %v292_v8  ;;  %v296_v10 = vld [vmem:[%s1025_s11 + $0xa0] sm:$0xff]  ;;  %v298_v11 = vld [vmem:[%s1025_s11 + $0xb0] sm:$0xff]  ;;  %295 = vst [vmem:[%s211_s12 + $0x48] sm:$0xff] %v294_v9 }
  0x1a   : > { %297 = vst [vmem:[%s211_s12 + $0x50] sm:$0xff] %v296_v10  ;;  %299 = vst [vmem:[%s211_s12 + $0x58] sm:$0xff] %v298_v11  ;;  %v300_v12 = vld [vmem:[%s1025_s11 + $0xc0] sm:$0xff]  ;;  %v302_v13 = vld [vmem:[%s1025_s11 + $0xd0] sm:$0xff] }
  0x1b   : > { %v304_v14 = vld [vmem:[%s1025_s11 + $0xe0] sm:$0xff]  ;;  %301 = vst [vmem:[%s211_s12 + $0x60] sm:$0xff] %v300_v12  ;;  %303 = vst [vmem:[%s211_s12 + $0x68] sm:$0xff] %v302_v13  ;;  %v306_v15 = vld [vmem:[%s1025_s11 + $0xf0] sm:$0xff] }
  0x1c   : > { %305 = vst [vmem:[%s211_s12 + $0x70] sm:$0xff] %v304_v14  ;;  %v308_v16 = vld [vmem:[%s1025_s11 + $0x100] sm:$0xff]  ;;  %v310_v17 = vld [vmem:[%s1025_s11 + $0x110] sm:$0xff]  ;;  %307 = vst [vmem:[%s211_s12 + $0x78] sm:$0xff] %v306_v15 }
  0x1d   : > { %309 = vst [vmem:[%s211_s12 + $0x80] sm:$0xff] %v308_v16  ;;  %311 = vst [vmem:[%s211_s12 + $0x88] sm:$0xff] %v310_v17 }
  0x1e PF: > { %p821_p7 = scmp.ge.s32.totalorder %s946_s23, 1  ;;  %p324_p8 = scmp.lt.s32.totalorder %s946_s23, 3 }
  0x20   : > { %p325_p9 = pnand %p821_p7, %p324_p8 }
  0x21   : > { %s331_s13 = sand.u32 (!%p325_p9), 1, %s938_s21   ;;  %vm521_vm0 = vcmask (!%p325_p9), 130048   ;;  %v920_v18 = vld [vmem:[%s1122_s1 + $0x4] ss:$8 sps:$4 sm:$0xff] (!%p325_p9)   ;;  %v948_v20 = vmov (!%p325_p9), 0   ;;  %v393_v42 = vld [vmem:[%s1122_s1 + $0x10] sm:$0xff] (!%p325_p9)  ;;  %v580_v47 = vlaneseq (!%p325_p9) }
  0x22   : > { %328 = sbr.rel (%p325_p9) target bundleno = 532 (0x214), region = 78  ;;  %v394_v19 = vld [vmem:[%s1123_s2] sm:$0xff] (!%p325_p9)  ;;  %889 = vset.pattern.permute.xlu0 (!%p325_p9), %v948_v20  ;;  %652 = vmatprep.mubr.bf16.mxu1 (!%p325_p9), %v948_v20  ;;  %v395_v21 = vld [vmem:[%s1123_s2 + $0x8] sm:$0xff] (!%p325_p9)  ;;  %v827_v43 = vcombine.high (!%p325_p9), %v393_v42, %v393_v42  ;;  %v826_v44 = vcombine.low (!%p325_p9), %v393_v42, %v393_v42  ;;  %v396_v45 = vld [vmem:[%s1123_s2 + $0x10] sm:$0xff] (!%p325_p9)  ;;  %s823_s15 = sshll.u32 (!%p325_p9), %s1000_s24, 1  ;;  %vm613_vm1 = vcmask (!%p325_p9), 1043456  }
  0x23   : > { %s863_s14 = smul.u32 (!%p325_p9), 144, %s331_s13  ;;  %846 = vmatprep.mubr.msk.bf16.mxu0 (!%p325_p9), %vm521_vm0, %v920_v18  ;;  %403 = vperm.xlu0 (!%p325_p9), %889, %v394_v19   ;;  %v400_v26 = vld [vmem:[%s1125_s4 + $0x8] sm:$0xff] (!%p325_p9)  ;;  %v399_v46 = vld [vmem:[%s1125_s4] sm:$0xff] (!%p325_p9)  ;;  %p365_p10 = scmp.lt.s32.totalorder (!%p325_p9), %s823_s15, 3  ;;  %v581_v48 = vshrl.u32 (!%p325_p9), %v580_v47, 7  ;;  %vm609_vm2 = vcmask (!%p325_p9), 64512  }
  0x24   : > { %890 = vset.pattern.permute.xlu1 (!%p325_p9), %v948_v20  ;;  %v918_v41 = vld [vmem:[%s1122_s1] ss:$8 sps:$4 sm:$0xff] (!%p325_p9)  }
  0x25   : > { %s1060_s23 = scalar_lea.vmem (!%p325_p9), [#allocation2], %s863_s14  ;;  %413 = vperm.xlu1 (!%p325_p9), %890, %v396_v45   ;;  %v582_v51 = vsub.s32 (!%p325_p9), 0, %v581_v48  ;;  %v586_v53 = vsub.s32 (!%p325_p9), 1, %v581_v48  ;;  %v923_v10 = vld [vmem:[%s1124_s3] sm:$0xff] (!%p325_p9)  }
  0x26   : > { %v891_v22 = vld [vmem:[%s1060_s23 + $0x4] ss:$8 sps:$4 sm:$0xff] (!%p325_p9)   ;;  %v893_v23 = vld [vmem:[%s1060_s23] ss:$8 sps:$4 sm:$0xff] (!%p325_p9)   ;;  %v894_v24 = vld [vmem:[%s1060_s23 + $0x14] ss:$8 sps:$4 sm:$0xff] (!%p325_p9)  }
  0x27   : > { %528 = vmatprep.subr.bf16.mxu0 (!%p325_p9), %v891_v22  ;;  %v896_v25 = vld [vmem:[%s1060_s23 + $0x10] ss:$8 sps:$4 sm:$0xff] (!%p325_p9)   ;;  %408 = vperm.xlu0 (!%p325_p9), %889, %v395_v21   ;;  %v897_v27 = vld [vmem:[%s1060_s23 + $0x24] ss:$8 sps:$4 sm:$0xff] (!%p325_p9)   ;;  %v899_v28 = vld [vmem:[%s1060_s23 + $0x20] ss:$8 sps:$4 sm:$0xff] (!%p325_p9)  }
  0x28   : > { %529 = vmatpush1.bf16.msra.mxu0 (!%p325_p9), %v893_v23  ;;  %v900_v29 = vld [vmem:[%s1060_s23 + $0x34] ss:$8 sps:$4 sm:$0xff] (!%p325_p9)   ;;  %v902_v30 = vld [vmem:[%s1060_s23 + $0x30] ss:$8 sps:$4 sm:$0xff] (!%p325_p9)   ;;  %v903_v31 = vld [vmem:[%s1060_s23 + $0x44] ss:$8 sps:$4 sm:$0xff] (!%p325_p9)  }
  0x29   : > { %530 = vmatprep.subr.bf16.mxu0 %v894_v24  ;;  %v905_v32 = vld [vmem:[%s1060_s23 + $0x40] ss:$8 sps:$4 sm:$0xff]   ;;  %v906_v33 = vld [vmem:[%s1060_s23 + $0x54] ss:$8 sps:$4 sm:$0xff]   ;;  %v908_v34 = vld [vmem:[%s1060_s23 + $0x50] ss:$8 sps:$4 sm:$0xff]   ;;  %596 = vperm.xlu1 %890, %v399_v46  }
  0x2a   : > { %v909_v35 = vld [vmem:[%s1060_s23 + $0x64] ss:$8 sps:$4 sm:$0xff]   ;;  %v911_v36 = vld [vmem:[%s1060_s23 + $0x60] ss:$8 sps:$4 sm:$0xff]   ;;  %v912_v37 = vld [vmem:[%s1060_s23 + $0x74] ss:$8 sps:$4 sm:$0xff]  }
  0x2b   : > { %601 = vperm.xlu0 %889, %v400_v26   ;;  %v914_v38 = vld [vmem:[%s1060_s23 + $0x70] ss:$8 sps:$4 sm:$0xff]   ;;  %v915_v39 = vld [vmem:[%s1060_s23 + $0x84] ss:$8 sps:$4 sm:$0xff]   ;;  %v917_v40 = vld [vmem:[%s1060_s23 + $0x80] ss:$8 sps:$4 sm:$0xff]  }
  0x2c   : > { %531 = vmatpush1.bf16.msra.mxu0 %v896_v25  ;;  %s1133_s15 = smov (!%p365_p10, %s823_s15), 3  ;;  %s822_s23 = sshll.u32 %s331_s13, 4 }
  0x2d   : > { %532 = vmatprep.subr.bf16.mxu0 %v897_v27  ;;  %s367_s18 = scalar_lea.vmem %s1126_s5, %s1133_s15  ;;  %s362_s26 = scalar_lea.vmem [#allocation3], %s822_s23 }
  0x2e   : > { %v371_v49 = vld [vmem:[%s367_s18] sm:$0x3]  ;;  %s861_s27 = sshll.u32 (%p1015_p5), %s1000_s24, 3 }
  0x2f   : > { %v372_v50 = vsub.f32 1.0, %v371_v49  ;;  %v667_v59 = vrot.slane %v371_v49, %v582_v51  ;;  %v671_v63 = vrot.slane %v371_v49, %v586_v53  ;;  %s713_s30 = scalar_lea.vmem (%p1015_p5), %s1127_s6, %s861_s27 }
  0x30   : > { %533 = vmatpush1.bf16.msra.mxu0 %v899_v28 }
  0x31   : > { %534 = vmatprep.subr.bf16.mxu0 %v900_v29  ;;  %v583_v54 = vrot.slane %v372_v50, %v582_v51  ;;  %v587_v56 = vrot.slane %v372_v50, %v586_v53 }
  0x34   : > { %535 = vmatpush1.bf16.msra.mxu0 %v902_v30 }
  0x35   : > { %536 = vmatprep.subr.bf16.mxu0 %v903_v31 }
  0x38   : > { %537 = vmatpush1.bf16.msra.mxu0 %v905_v32 }
  0x39   : > { %538 = vmatprep.subr.bf16.mxu0 %v906_v33 }
  0x3c   : > { %539 = vmatpush1.bf16.msra.mxu0 %v908_v34 }
  0x3d   : > { %540 = vmatprep.subr.bf16.mxu0 %v909_v35 }
  0x40   : > { %541 = vmatpush1.bf16.msra.mxu0 %v911_v36 }
  0x41   : > { %542 = vmatprep.subr.bf16.mxu0 %v912_v37 }
  0x44   : > { %543 = vmatpush1.bf16.msra.mxu0 %v914_v38 }
  0x45   : > { %544 = vmatprep.subr.bf16.mxu0 %v915_v39 }
  0x48   : > { %545 = vmatpush1.bf16.msra.mxu0 %v917_v40 }
  0x4b   : > { %561 = vmatmul.mubr.bf16.vlgmr.msra.gmra.mrb[0].mxu0 %v918_v41 }
  0x4c   : > { %847 = vmatprep.mubr.msk.bf16.mxu0 %vm521_vm0, %v827_v43 }
  0x53   : > { %571 = vmatmul.mubr.bf16.gmra.mrb[4].mxu0 %v826_v44 }
  0xa2   : > { %v404_v52 = vpop.permute.xlu0 %403 }
  0xa4   : > { %v414_v11 = vpop.permute.xlu1 %413 }
  0xa6   : > { %v409_v60 = vpop.permute.xlu0 %408 }
  0xa8   : > { %v597_v20 = vpop.permute.xlu1 %596 }
  0xaa   : > { %v602_v24 = vpop.permute.xlu0 %601 }
 0x11e   : > { %v562_v55 = vpop.f32.mrb[0].mxu0 }
 0x11f   : > { %v563_v57 = vadd.f32 %v562_v55, %v404_v52  ;;  %v564_v58 = vpop.f32.mrb[1].mxu0 }
 0x120   : > { %v565_v61 = vadd.f32 %v564_v58, %v404_v52  ;;  %v566_v62 = vpop.f32.mrb[2].mxu0 }
 0x121   : > { %v590_v0 = vmul.f32 %v583_v54, %v563_v57  ;;  %v567_v1 = vadd.f32 %v566_v62, %v409_v60  ;;  %v568_v2 = vpop.f32.mrb[3].mxu0 }
 0x122   : > { %v569_v3 = vadd.f32 %v568_v2, %v409_v60  ;;  %v591_v4 = vmul.f32 %v587_v56, %v565_v61 }
 0x123   : > { %v674_v5 = vmul.f32 %v667_v59, %v567_v1  ;;  %v592_v6 = vpack.c.bf16 %v590_v0, %v590_v0 }
 0x124   : > { %v675_v7 = vmul.f32 %v671_v63, %v569_v3  ;;  %v593_v8 = vpack.c.bf16 %v591_v4, %v591_v4 }
 0x125   : > { %v615_v9 = vsel %vm613_vm1, %v592_v6, 0 }
 0x126   : > { %849 = vmatprep.subr.msk.bf16.mxu1 %vm613_vm1, %v593_v8  ;;  %v572_v12 = vpop.f32.mrb[4].mxu0 }
 0x127   : > { %621 = vmatpush1.bf16.msra.mxu1 %v615_v9  ;;  %v573_v13 = vadd.f32 %v572_v12, %v414_v11  ;;  %v574_v14 = vpop.f32.mrb[5].mxu0 }
 0x128   : > { %v575_v15 = vadd.f32 %v574_v14, %v414_v11  ;;  %v576_v16 = vpop.f32.mrb[6].mxu0 }
 0x129   : > { %v676_v17 = vmul.f32 %v667_v59, %v573_v13  ;;  %v577_v18 = vpop.f32.mrb[7].mxu0 }
 0x12a   : > { %850 = vmatmul.mubr.msk.bf16.vlgmr.msra.gmra.mrb[0].mxu1 %vm609_vm2, %v923_v10  ;;  %v677_v19 = vmul.f32 %v671_v63, %v575_v15 }
 0x1fd   : > { %v654_v21 = vpop.f32.mrb[0].mxu1 }
 0x1fe   : > { %v655_v22 = vadd.f32 %v654_v21, %v597_v20  ;;  %v656_v23 = vpop.f32.mrb[1].mxu1 }
 0x1ff   : > { %v657_v25 = vadd.f32 %v656_v23, %v597_v20  ;;  %v658_v26 = vpop.f32.mrb[2].mxu1 }
 0x200   : > { %v678_v27 = vmul.f32 %v655_v22, %v583_v54  ;;  %v659_v28 = vadd.f32 %v658_v26, %v602_v24  ;;  %v660_v29 = vpop.f32.mrb[3].mxu1 }
 0x201   : > { %v679_v30 = vmul.f32 %v657_v25, %v587_v56  ;;  %v661_v31 = vadd.f32 %v660_v29, %v602_v24 }
 0x202   : > { %v682_v32 = vadd.f32 %v678_v27, %v674_v5  ;;  %v680_v33 = vmul.f32 %v659_v28, %v583_v54 }
 0x203   : > { %v683_v34 = vadd.f32 %v679_v30, %v675_v7  ;;  %v681_v35 = vmul.f32 %v661_v31, %v587_v56 }
 0x204   : > { %v686_v36 = vmax.f32 %v682_v32, 0.0  ;;  %v684_v37 = vadd.f32 %v680_v33, %v676_v17 }
 0x205   : > { %v687_v38 = vmax.f32 %v683_v34, 0.0  ;;  %v685_v39 = vadd.f32 %v681_v35, %v677_v19  ;;  %710 = sbr.rel (!%p1015_p5) target bundleno = 532 (0x214), region = 86 }
 0x206   : > { %v688_v40 = vmax.f32 %v684_v37, 0.0 }
 0x207   : > { %v859_v41 = vpack.c.bf16 %v687_v38, %v686_v36  ;;  %v689_v42 = vmax.f32 %v685_v39, 0.0 }
 0x209   : > { %702 = vst [vmem:[%s362_s26] sm:$0xff] %v859_v41  ;;  %v860_v43 = vpack.c.bf16 %v689_v42, %v688_v40 }
 0x20b   : > { %703 = vst [vmem:[%s362_s26 + $0x8] sm:$0xff] %v860_v43 }
 0x210   : > { %v743_v44 = vld [vmem:[%s362_s26] sm:$0xff] }
 0x211   : > { %744 = vst [vmem:[%s713_s30] sm:$0xff] %v743_v44 }
 0x212   : > { %v745_v45 = vld [vmem:[%s362_s26 + $0x8] sm:$0xff] }
 0x213   : > { %746 = vst [vmem:[%s713_s30 + $0x10] sm:$0xff] %v745_v45 }
 0x214 PF: > { %p13_p11 = scmp.ge.s32.totalorder %s1003_s25, 4   ;;  %s1129_s21 = smov %s942_s22 }
 0x215   : > { %s1130_s22 = smov %s1013_s28  ;;  %s1131_s23 = smov %s1003_s25 }
 0x216   :  { %15 = sbr.rel (!%p13_p11) target bundleno = 2 (0x2), region = 158 }

// kernel: fwd.10
= control target key start
LH: loop header
LB: loop body
LE: loop exit
PB: predicated region body
PF: predicated region fallthrough
CT: control target
= control target key end

     0   :  { %s1413_s13 = smov 0   ;;  %s1415_s14 = smov 0   ;;  %s1646_s0 = inlined_call_operand.vmem [shape: bf16[144,512], index: 0, kind: input, shape index: {}]   ;;  %s1647_s1 = inlined_call_operand.vmem [shape: bf16[24,144], index: 1, kind: input, shape index: {}]   ;;  %s1648_s2 = inlined_call_operand.vmem [shape: f32[24,1], index: 2, kind: input, shape index: {}]   ;;  %s1649_s3 = inlined_call_operand.vmem [shape: bf16[16,8], index: 3, kind: input, shape index: {}]   ;;  %s1650_s4 = inlined_call_operand.vmem [shape: f32[16,1], index: 4, kind: input, shape index: {}]   ;;  %s1651_s5 = inlined_call_operand.vmem [shape: bf16[40,16], index: 5, kind: input, shape index: {}]   ;;  %s1652_s6 = inlined_call_operand.vmem [shape: f32[40,1], index: 6, kind: input, shape index: {}]   ;;  %s1653_s7 = inlined_call_operand.vmem [shape: bf16[32,8], index: 7, kind: input, shape index: {}]   ;;  %s1654_s8 = inlined_call_operand.vmem [shape: f32[32,1], index: 8, kind: input, shape index: {}]   ;;  %s1655_s9 = inlined_call_operand.vmem [shape: f32[1,512], index: 9, kind: input, shape index: {}]   ;;  %s1656_s10 = inlined_call_operand.vmem [shape: bf16[32,512], index: 10, kind: output, shape index: {}]  }
   0x1   :  { %s1417_s15 = smov 0  }
   0x2 LB: > { %s1429_s16 = sadd.s32 4294967295, %s1355_s15   ;;  %s1432_s17 = sadd.s32 1, %s1355_s15   ;;  %s1355_s15 = sphi %s1417_s15, %s1660_s15   ;;  %s1351_s14 = sphi %s1415_s14, %s1659_s14   ;;  %s1347_s13 = sphi %s1413_s13, %s1658_s13  }
   0x3   : > { %s24_s18 = ssub.s32 %s1355_s15, %s1432_s17  ;;  %s27_s19 = sadd.s32 1, %s1351_s14 }
   0x4   : > { %p25_p0 = scmp.eq.s32.totalorder %s24_s18, 0  ;;  %p34_p1 = scmp.ne.s32.totalorder %s1351_s14, %s1347_s13 }
   0x5   : > { %p35_p2 = scmp.eq.s32.totalorder %s1355_s15, 0  ;;  %p258_p3 = scmp.eq.s32.totalorder %s1429_s16, 1 }
   0x6   : > { %s1442_s20 = scalar_select %p25_p0, %s1351_s14, %s27_s19  }
   0x7   : > { %p36_p4 = por %p35_p2, %p34_p1  ;;  %p1444_p5 = por %p258_p3, %p34_p1 }
   0x8   : > { %p1207_p6 = scmp.ge.s32.totalorder %s1355_s15, 2 }
   0xa   : > { %304 = sbr.rel (%p1207_p6) target bundleno = 30 (0x1e), region = 48 }
  0x11   : > { %307 = sbr.rel (!%p36_p4) target bundleno = 30 (0x1e), region = 52  ;;  %s309_s22 = sand.u32 (%p36_p4), 1, %s1351_s14  }
  0x12   : > { %s1260_s23 = sshll.u32 (%p36_p4), %s1355_s15, 3  ;;  %s1266_s24 = smul.u32 (%p36_p4), 144, %s309_s22 }
  0x13   : > { %s1454_s27 = scalar_lea.vmem (%p36_p4), %s1646_s0, %s1260_s23 }
  0x14   : > { %v376_v0 = vld [vmem:[%s1454_s27] sm:$0xff] (%p36_p4)  ;;  %v378_v1 = vld [vmem:[%s1454_s27 + $0x10] sm:$0xff] (%p36_p4)  ;;  %s311_s28 = scalar_lea.vmem (%p36_p4), [#allocation2], %s1266_s24 }
  0x15   : > { %v380_v2 = vld [vmem:[%s1454_s27 + $0x20] sm:$0xff] (%p36_p4)  ;;  %v382_v3 = vld [vmem:[%s1454_s27 + $0x30] sm:$0xff] (%p36_p4)  ;;  %377 = vst [vmem:[%s311_s28] sm:$0xff] (%p36_p4), %v376_v0  ;;  %379 = vst [vmem:[%s311_s28 + $0x8] sm:$0xff] (%p36_p4), %v378_v1 }
  0x16   : > { %v384_v4 = vld [vmem:[%s1454_s27 + $0x40] sm:$0xff] (%p36_p4)  ;;  %v386_v5 = vld [vmem:[%s1454_s27 + $0x50] sm:$0xff] (%p36_p4)  ;;  %381 = vst [vmem:[%s311_s28 + $0x10] sm:$0xff] (%p36_p4), %v380_v2  ;;  %383 = vst [vmem:[%s311_s28 + $0x18] sm:$0xff] (%p36_p4), %v382_v3 }
  0x17   : > { %385 = vst [vmem:[%s311_s28 + $0x20] sm:$0xff] (%p36_p4), %v384_v4  ;;  %387 = vst [vmem:[%s311_s28 + $0x28] sm:$0xff] (%p36_p4), %v386_v5  ;;  %v388_v6 = vld [vmem:[%s1454_s27 + $0x60] sm:$0xff] (%p36_p4)  ;;  %v390_v7 = vld [vmem:[%s1454_s27 + $0x70] sm:$0xff] (%p36_p4) }
  0x18   : > { %v392_v8 = vld [vmem:[%s1454_s27 + $0x80] sm:$0xff]  ;;  %389 = vst [vmem:[%s311_s28 + $0x30] sm:$0xff] %v388_v6  ;;  %391 = vst [vmem:[%s311_s28 + $0x38] sm:$0xff] %v390_v7  ;;  %v394_v9 = vld [vmem:[%s1454_s27 + $0x90] sm:$0xff] }
  0x19   : > { %393 = vst [vmem:[%s311_s28 + $0x40] sm:$0xff] %v392_v8  ;;  %v396_v10 = vld [vmem:[%s1454_s27 + $0xa0] sm:$0xff]  ;;  %v398_v11 = vld [vmem:[%s1454_s27 + $0xb0] sm:$0xff]  ;;  %395 = vst [vmem:[%s311_s28 + $0x48] sm:$0xff] %v394_v9 }
  0x1a   : > { %397 = vst [vmem:[%s311_s28 + $0x50] sm:$0xff] %v396_v10  ;;  %399 = vst [vmem:[%s311_s28 + $0x58] sm:$0xff] %v398_v11  ;;  %v400_v12 = vld [vmem:[%s1454_s27 + $0xc0] sm:$0xff]  ;;  %v402_v13 = vld [vmem:[%s1454_s27 + $0xd0] sm:$0xff] }
  0x1b   : > { %v404_v14 = vld [vmem:[%s1454_s27 + $0xe0] sm:$0xff]  ;;  %401 = vst [vmem:[%s311_s28 + $0x60] sm:$0xff] %v400_v12  ;;  %403 = vst [vmem:[%s311_s28 + $0x68] sm:$0xff] %v402_v13  ;;  %v406_v15 = vld [vmem:[%s1454_s27 + $0xf0] sm:$0xff] }
  0x1c   : > { %405 = vst [vmem:[%s311_s28 + $0x70] sm:$0xff] %v404_v14  ;;  %v408_v16 = vld [vmem:[%s1454_s27 + $0x100] sm:$0xff]  ;;  %v410_v17 = vld [vmem:[%s1454_s27 + $0x110] sm:$0xff]  ;;  %407 = vst [vmem:[%s311_s28 + $0x78] sm:$0xff] %v406_v15 }
  0x1d   : > { %409 = vst [vmem:[%s311_s28 + $0x80] sm:$0xff] %v408_v16  ;;  %411 = vst [vmem:[%s311_s28 + $0x88] sm:$0xff] %v410_v17 }
  0x1e PF: > { %p1210_p7 = scmp.ge.s32.totalorder %s1355_s15, 1  ;;  %p424_p8 = scmp.lt.s32.totalorder %s1355_s15, 3 }
  0x20   : > { %p425_p9 = pnand %p1210_p7, %p424_p8 }
  0x21   : > { %s431_s29 = sand.u32 (!%p425_p9), 1, %s1347_s13   ;;  %vm629_vm0 = vcmask (!%p425_p9), 130048   ;;  %v1324_v18 = vld [vmem:[%s1647_s1 + $0x4] ss:$8 sps:$4 sm:$0xff] (!%p425_p9)   ;;  %v1357_v20 = vmov (!%p425_p9), 0   ;;  %v808_v31 = vld [vmem:[%s1652_s6 + $0x18] sm:$0xff] (!%p425_p9)  ;;  %v688_v56 = vlaneseq (!%p425_p9) }
  0x22   : > { %428 = sbr.rel (%p425_p9) target bundleno = 992 (0x3e0), region = 94  ;;  %v502_v19 = vld [vmem:[%s1648_s2] sm:$0xff] (!%p425_p9)  ;;  %1293 = vset.pattern.permute.xlu0 (!%p425_p9), %v1357_v20  ;;  %760 = vmatprep.mubr.bf16.mxu1 (!%p425_p9), %v1357_v20  ;;  %v503_v21 = vld [vmem:[%s1648_s2 + $0x8] sm:$0xff] (!%p425_p9)  ;;  %v816_v39 = vld [vmem:[%s1654_s8 + $0x10] sm:$0xff] (!%p425_p9)  ;;  %s1212_s27 = sshll.u32 (!%p425_p9), %s1429_s16, 1  ;;  %vm721_vm1 = vcmask (!%p425_p9), 1043456  }
  0x23   : > { %s1267_s30 = smul.u32 (!%p425_p9), 144, %s431_s29  ;;  %1235 = vmatprep.mubr.msk.bf16.mxu0 (!%p425_p9), %vm629_vm0, %v1324_v18  ;;  %511 = vperm.xlu0 (!%p425_p9), %1293, %v502_v19   ;;  %v508_v26 = vld [vmem:[%s1650_s4 + $0x8] sm:$0xff] (!%p425_p9)  ;;  %v814_v36 = vld [vmem:[%s1654_s8] sm:$0xff] (!%p425_p9)  ;;  %v501_v46 = vld [vmem:[%s1647_s1 + $0x10] sm:$0xff] (!%p425_p9)  ;;  %p473_p10 = scmp.lt.s32.totalorder (!%p425_p9), %s1212_s27, 3  ;;  %v689_v57 = vshrl.u32 (!%p425_p9), %v688_v56, 7 }
  0x24   : > { %1294 = vset.pattern.permute.xlu1 (!%p425_p9), %v1357_v20  ;;  %v806_v29 = vld [vmem:[%s1652_s6 + $0x8] sm:$0xff] (!%p425_p9)  ;;  %v1216_v47 = vcombine.high (!%p425_p9), %v501_v46, %v501_v46  ;;  %v1215_v48 = vcombine.low (!%p425_p9), %v501_v46, %v501_v46  ;;  %v504_v49 = vld [vmem:[%s1648_s2 + $0x10] sm:$0xff] (!%p425_p9)  ;;  %v507_v50 = vld [vmem:[%s1650_s4] sm:$0xff] (!%p425_p9)  ;;  %vm717_vm2 = vcmask (!%p425_p9), 64512  }
  0x25   : > { %s1491_s23 = scalar_lea.vmem (!%p425_p9), [#allocation2], %s1267_s30  ;;  %v1322_v45 = vld [vmem:[%s1647_s1] ss:$8 sps:$4 sm:$0xff] (!%p425_p9)   ;;  %521 = vperm.xlu1 (!%p425_p9), %1294, %v504_v49   ;;  %v807_v52 = vld [vmem:[%s1652_s6 + $0x10] sm:$0xff] (!%p425_p9)  ;;  %v817_v55 = vld [vmem:[%s1654_s8 + $0x18] sm:$0xff] (!%p425_p9)  ;;  %v690_v60 = vsub.s32 (!%p425_p9), 0, %v689_v57 }
  0x26   : > { %v1295_v22 = vld [vmem:[%s1491_s23 + $0x4] ss:$8 sps:$4 sm:$0xff] (!%p425_p9)   ;;  %v1297_v23 = vld [vmem:[%s1491_s23] ss:$8 sps:$4 sm:$0xff] (!%p425_p9)   ;;  %v1298_v24 = vld [vmem:[%s1491_s23 + $0x14] ss:$8 sps:$4 sm:$0xff] (!%p425_p9)  }
  0x27   : > { %636 = vmatprep.subr.bf16.mxu0 (!%p425_p9), %v1295_v22  ;;  %v1300_v25 = vld [vmem:[%s1491_s23 + $0x10] ss:$8 sps:$4 sm:$0xff] (!%p425_p9)   ;;  %516 = vperm.xlu0 (!%p425_p9), %1293, %v503_v21   ;;  %v1301_v27 = vld [vmem:[%s1491_s23 + $0x24] ss:$8 sps:$4 sm:$0xff] (!%p425_p9)   ;;  %v1303_v28 = vld [vmem:[%s1491_s23 + $0x20] ss:$8 sps:$4 sm:$0xff] (!%p425_p9)  }
  0x28   : > { %637 = vmatpush1.bf16.msra.mxu0 (!%p425_p9), %v1297_v23  ;;  %v1304_v30 = vld [vmem:[%s1491_s23 + $0x34] ss:$8 sps:$4 sm:$0xff] (!%p425_p9)   ;;  %v1306_v32 = vld [vmem:[%s1491_s23 + $0x30] ss:$8 sps:$4 sm:$0xff] (!%p425_p9)   ;;  %v1307_v33 = vld [vmem:[%s1491_s23 + $0x44] ss:$8 sps:$4 sm:$0xff] (!%p425_p9)  }
  0x29   : > { %638 = vmatprep.subr.bf16.mxu0 %v1298_v24  ;;  %v1309_v34 = vld [vmem:[%s1491_s23 + $0x40] ss:$8 sps:$4 sm:$0xff]   ;;  %v1310_v35 = vld [vmem:[%s1491_s23 + $0x54] ss:$8 sps:$4 sm:$0xff]   ;;  %v1312_v37 = vld [vmem:[%s1491_s23 + $0x50] ss:$8 sps:$4 sm:$0xff]   ;;  %704 = vperm.xlu1 %1294, %v507_v50  }
  0x2a   : > { %v1313_v38 = vld [vmem:[%s1491_s23 + $0x64] ss:$8 sps:$4 sm:$0xff]   ;;  %v1315_v40 = vld [vmem:[%s1491_s23 + $0x60] ss:$8 sps:$4 sm:$0xff]   ;;  %v1316_v41 = vld [vmem:[%s1491_s23 + $0x74] ss:$8 sps:$4 sm:$0xff]  }
  0x2b   : > { %709 = vperm.xlu0 %1293, %v508_v26   ;;  %v1318_v42 = vld [vmem:[%s1491_s23 + $0x70] ss:$8 sps:$4 sm:$0xff]   ;;  %v1319_v43 = vld [vmem:[%s1491_s23 + $0x84] ss:$8 sps:$4 sm:$0xff]   ;;  %v1321_v44 = vld [vmem:[%s1491_s23 + $0x80] ss:$8 sps:$4 sm:$0xff]  }
  0x2c   : > { %639 = vmatpush1.bf16.msra.mxu0 %v1300_v25  ;;  %v805_v51 = vld [vmem:[%s1652_s6] sm:$0xff]  ;;  %v815_v54 = vld [vmem:[%s1654_s8 + $0x8] sm:$0xff]  ;;  %s1662_s27 = smov (!%p473_p10, %s1212_s27), 3  ;;  %v694_v61 = vsub.s32 1, %v689_v57  ;;  %v1330_v56 = vld [vmem:[%s1651_s5 + $0x10] ss:$0 sps:$4 sm:$0xff]  }
  0x2d   : > { %640 = vmatprep.subr.bf16.mxu0 %v1301_v27  ;;  %820 = vperm.xlu1 %1294, %v805_v51   ;;  %v809_v53 = vld [vmem:[%s1652_s6 + $0x20] sm:$0xff]  ;;  %s475_s30 = scalar_lea.vmem %s1655_s9, %s1662_s27 }
  0x2e   : > { %v479_v58 = vld [vmem:[%s475_s30] sm:$0x3]  ;;  %s1211_s30 = sshll.u32 %s431_s29, 5  ;;  %s1265_s29 = sshll.u32 (%p1444_p5), %s1429_s16, 3 }
  0x2f   : > { %825 = vperm.xlu0 %1293, %v806_v29   ;;  %v480_v59 = vsub.f32 1.0, %v479_v58  ;;  %v1327_v12 = vld [vmem:[%s1649_s3] sm:$0xff]   ;;  %v1572_v21 = vrot.slane %v479_v58, %v690_v60  ;;  %v1574_v23 = vrot.slane %v479_v58, %v694_v61  ;;  %s470_s13 = scalar_lea.vmem [#allocation3], %s1211_s30  ;;  %s1094_s18 = scalar_lea.vmem (%p1444_p5), %s1656_s10, %s1265_s29 }
  0x30   : > { %641 = vmatpush1.bf16.msra.mxu0 %v1303_v28 }
  0x31   : > { %642 = vmatprep.subr.bf16.mxu0 %v1304_v30  ;;  %830 = vperm.xlu1 %1294, %v807_v52   ;;  %v1559_v62 = vrot.slane %v480_v59, %v690_v60  ;;  %v1561_v1 = vrot.slane %v480_v59, %v694_v61 }
  0x33   : > { %835 = vperm.xlu0 %1293, %v808_v31  }
  0x34   : > { %643 = vmatpush1.bf16.msra.mxu0 %v1306_v32 }
  0x35   : > { %644 = vmatprep.subr.bf16.mxu0 %v1307_v33  ;;  %840 = vperm.xlu1 %1294, %v809_v53  }
  0x37   : > { %932 = vperm.xlu0 %1293, %v814_v36  }
  0x38   : > { %645 = vmatpush1.bf16.msra.mxu0 %v1309_v34 }
  0x39   : > { %646 = vmatprep.subr.bf16.mxu0 %v1310_v35  ;;  %937 = vperm.xlu1 %1294, %v815_v54   ;;  %v1328_v54 = vld [vmem:[%s1651_s5] sm:$0xff]  }
  0x3b   : > { %942 = vperm.xlu0 %1293, %v816_v39  }
  0x3c   : > { %647 = vmatpush1.bf16.msra.mxu0 %v1312_v37 }
  0x3d   : > { %648 = vmatprep.subr.bf16.mxu0 %v1313_v38  ;;  %947 = vperm.xlu1 %1294, %v817_v55   ;;  %v1329_v55 = vld [vmem:[%s1651_s5 + $0x8] sm:$0xff]  }
  0x40   : > { %649 = vmatpush1.bf16.msra.mxu0 %v1315_v40 }
  0x41   : > { %650 = vmatprep.subr.bf16.mxu0 %v1316_v41 }
  0x44   : > { %651 = vmatpush1.bf16.msra.mxu0 %v1318_v42 }
  0x45   : > { %652 = vmatprep.subr.bf16.mxu0 %v1319_v43 }
  0x48   : > { %653 = vmatpush1.bf16.msra.mxu0 %v1321_v44 }
  0x4b   : > { %669 = vmatmul.mubr.bf16.vlgmr.msra.gmra.mrb[0].mxu0 %v1322_v45 }
  0x4c   : > { %1236 = vmatprep.mubr.msk.bf16.mxu0 %vm629_vm0, %v1216_v47 }
  0x53   : > { %679 = vmatmul.mubr.bf16.gmra.mrb[4].mxu0 %v1215_v48 }
  0xa2   : > { %v512_v63 = vpop.permute.xlu0 %511 }
  0xa4   : > { %v522_v17 = vpop.permute.xlu1 %521 }
  0xa6   : > { %v517_v18 = vpop.permute.xlu0 %516 }
  0xa8   : > { %v705_v24 = vpop.permute.xlu1 %704 }
  0xaa   : > { %v710_v29 = vpop.permute.xlu0 %709 }
  0xac   : > { %v821_v57 = vpop.permute.xlu1 %820 }
 0x11e   : > { %v670_v0 = vpop.f32.mrb[0].mxu0 }
 0x11f   : > { %v671_v2 = vadd.f32 %v670_v0, %v512_v63  ;;  %v672_v3 = vpop.f32.mrb[1].mxu0 }
 0x120   : > { %v673_v4 = vadd.f32 %v672_v3, %v512_v63  ;;  %v674_v5 = vpop.f32.mrb[2].mxu0 }
 0x121   : > { %v698_v6 = vmul.f32 %v1559_v62, %v671_v2  ;;  %v676_v7 = vpop.f32.mrb[3].mxu0  ;;  %v675_v19 = vadd.f32 %v674_v5, %v517_v18 }
 0x122   : > { %v699_v8 = vmul.f32 %v1561_v1, %v673_v4  ;;  %v677_v22 = vadd.f32 %v676_v7, %v517_v18  ;;  %v831_v18 = vpop.permute.xlu1 %830 }
 0x123   : > { %v700_v9 = vpack.c.bf16 %v698_v6, %v698_v6  ;;  %v782_v33 = vmul.f32 %v1572_v21, %v675_v19 }
 0x124   : > { %v701_v10 = vpack.c.bf16 %v699_v8, %v699_v8  ;;  %v783_v37 = vmul.f32 %v1574_v23, %v677_v22  ;;  %v1331_v8 = vld [vmem:[%s1653_s7] sm:$0xff]  }
 0x125   : > { %v723_v11 = vsel %vm721_vm1, %v700_v9, 0 }
 0x126   : > { %1238 = vmatprep.subr.msk.bf16.mxu1 %vm721_vm1, %v701_v10  ;;  %v680_v13 = vpop.f32.mrb[4].mxu0  ;;  %v841_v22 = vpop.permute.xlu1 %840 }
 0x127   : > { %729 = vmatpush1.bf16.msra.mxu1 %v723_v11  ;;  %v682_v14 = vpop.f32.mrb[5].mxu0  ;;  %v681_v26 = vadd.f32 %v680_v13, %v522_v17  ;;  %v1332_v13 = vld [vmem:[%s1653_s7 + $0x8] sm:$0xff]  }
 0x128   : > { %v684_v15 = vpop.f32.mrb[6].mxu0  ;;  %v683_v30 = vadd.f32 %v682_v14, %v522_v17  ;;  %v826_v17 = vpop.permute.xlu0 %825 }
 0x129   : > { %v685_v16 = vpop.f32.mrb[7].mxu0  ;;  %v784_v40 = vmul.f32 %v1572_v21, %v681_v26 }
 0x12a   : > { %1239 = vmatmul.mubr.msk.bf16.vlgmr.msra.gmra.mrb[0].mxu1 %vm717_vm2, %v1327_v12  ;;  %v785_v43 = vmul.f32 %v1574_v23, %v683_v30  ;;  %v938_v30 = vpop.permute.xlu1 %937 }
 0x12b   : > { %897 = vmatprep.mubr.bf16.mxu1 %v1357_v20 }
 0x12c   : > { %v836_v19 = vpop.permute.xlu0 %835 }
 0x1fd   : > { %v762_v25 = vpop.f32.mrb[0].mxu1 }
 0x1fe   : > { %v763_v27 = vadd.f32 %v762_v25, %v705_v24  ;;  %v764_v28 = vpop.f32.mrb[1].mxu1  ;;  %v933_v25 = vpop.permute.xlu0 %932 }
 0x1ff   : > { %v765_v31 = vadd.f32 %v764_v28, %v705_v24  ;;  %v766_v32 = vpop.f32.mrb[2].mxu1 }
 0x200   : > { %v786_v34 = vmul.f32 %v763_v27, %v1559_v62  ;;  %v767_v35 = vadd.f32 %v766_v32, %v710_v29  ;;  %v768_v36 = vpop.f32.mrb[3].mxu1 }
 0x201   : > { %v787_v38 = vmul.f32 %v765_v31, %v1561_v1  ;;  %v769_v39 = vadd.f32 %v768_v36, %v710_v29 }
 0x202   : > { %v790_v41 = vadd.f32 %v786_v34, %v782_v33  ;;  %v788_v42 = vmul.f32 %v767_v35, %v1559_v62 }
 0x203   : > { %v791_v44 = vadd.f32 %v787_v38, %v783_v37  ;;  %v789_v45 = vmul.f32 %v769_v39, %v1561_v1 }
 0x204   : > { %v792_v46 = vadd.f32 %v788_v42, %v784_v40  ;;  %v794_v48 = vmax.f32 %v790_v41, 0.0 }
 0x205   : > { %v793_v47 = vadd.f32 %v789_v45, %v785_v43  ;;  %v795_v50 = vmax.f32 %v791_v44, 0.0 }
 0x206   : > { %v796_v49 = vmax.f32 %v792_v46, 0.0 }
 0x207   : > { %v797_v51 = vmax.f32 %v793_v47, 0.0 }
 0x208   : > { %v798_v52 = vpack.c.bf16 %v796_v49, %v794_v48 }
 0x209   : > { %v799_v53 = vpack.c.bf16 %v797_v51, %v795_v50  ;;  %v943_v50 = vpop.permute.xlu0 %942 }
 0x20b   : > { %865 = vmatprep.subr.bf16.mxu1 %v799_v53 }
 0x20c   : > { %866 = vmatpush1.bf16.msra.mxu1 %v798_v52 }
 0x20f   : > { %1243 = vmatmul.mubr.msk.bf16.vlgmr.msra.gmra.mrb[4].mxu1 %vm629_vm0, %v1328_v54 }
 0x210   : > { %907 = vmatprep.mubr.bf16.mxu1 %v1357_v20 }
 0x217   : > { %1244 = vmatmul.mubr.msk.bf16.gmra.mrb[8].mxu1 %vm629_vm0, %v1329_v55 }
 0x218   : > { %917 = vmatprep.mubr.bf16.mxu1 %v1357_v20 }
 0x21f   : > { %1245 = vmatmul.mubr.msk.bf16.gmra.mrb[12].mxu1 %vm629_vm0, %v1330_v56 }
 0x220   : > { %1004 = vmatprep.mubr.bf16.mxu1 %v1357_v20 }
 0x2e2   : > { %v899_v58 = vpop.f32.mrb[4].mxu1 }
 0x2e3   : > { %v900_v59 = vadd.f32 %v899_v58, %v821_v57  ;;  %v901_v60 = vpop.f32.mrb[5].mxu1 }
 0x2e4   : > { %v902_v61 = vadd.f32 %v901_v60, %v821_v57  ;;  %v903_v63 = vpop.f32.mrb[6].mxu1 }
 0x2e5   : > { %v926_v0 = vmul.f32 %v900_v59, %v1559_v62  ;;  %v905_v2 = vpop.f32.mrb[7].mxu1  ;;  %v904_v24 = vadd.f32 %v903_v63, %v826_v17  ;;  %v948_v59 = vpop.permute.xlu1 %947 }
 0x2e6   : > { %v927_v3 = vmul.f32 %v902_v61, %v1561_v1  ;;  %v906_v26 = vadd.f32 %v905_v2, %v826_v17 }
 0x2e7   : > { %v928_v4 = vpack.c.bf16 %v926_v0, %v926_v0  ;;  %v1025_v34 = vmul.f32 %v904_v24, %v1572_v21 }
 0x2e8   : > { %v929_v5 = vpack.c.bf16 %v927_v3, %v927_v3  ;;  %v1026_v38 = vmul.f32 %v906_v26, %v1574_v23 }
 0x2e9   : > { %v967_v6 = vsel %vm721_vm1, %v928_v4, 0 }
 0x2ea   : > { %v909_v7 = vpop.f32.mrb[8].mxu1  ;;  %1248 = vmatprep.subr.msk.bf16.mxu1 %vm721_vm1, %v929_v5 }
 0x2eb   : > { %v911_v9 = vpop.f32.mrb[9].mxu1  ;;  %973 = vmatpush1.bf16.msra.mxu1 %v967_v6  ;;  %v910_v28 = vadd.f32 %v909_v7, %v831_v18 }
 0x2ec   : > { %v913_v10 = vpop.f32.mrb[10].mxu1  ;;  %v912_v31 = vadd.f32 %v911_v9, %v831_v18 }
 0x2ed   : > { %v915_v11 = vpop.f32.mrb[11].mxu1  ;;  %v1027_v41 = vmul.f32 %v910_v28, %v1572_v21  ;;  %v914_v47 = vadd.f32 %v913_v10, %v836_v19 }
 0x2ee   : > { %1249 = vmatmul.mubr.msk.bf16.vlgmr.msra.gmra.mrb[16].mxu1 %vm717_vm2, %v1331_v8  ;;  %v1028_v44 = vmul.f32 %v912_v31, %v1574_v23  ;;  %v916_v51 = vadd.f32 %v915_v11, %v836_v19 }
 0x2ef   : > { %1014 = vmatprep.mubr.bf16.mxu1 %v1357_v20  ;;  %v1029_v3 = vmul.f32 %v914_v47, %v1572_v21 }
 0x2f0   : > { %v1030_v7 = vmul.f32 %v916_v51, %v1574_v23 }
 0x2f2   : > { %v919_v12 = vpop.f32.mrb[12].mxu1 }
 0x2f3   : > { %v921_v14 = vpop.f32.mrb[13].mxu1  ;;  %v920_v55 = vadd.f32 %v919_v12, %v841_v22 }
 0x2f4   : > { %v923_v15 = vpop.f32.mrb[14].mxu1  ;;  %v922_v60 = vadd.f32 %v921_v14, %v841_v22 }
 0x2f5   : > { %v924_v16 = vpop.f32.mrb[15].mxu1  ;;  %v1031_v11 = vmul.f32 %v920_v55, %v1572_v21 }
 0x2f6   : > { %1250 = vmatmul.mubr.msk.bf16.gmra.mrb[20].mxu1 %vm717_vm2, %v1332_v13  ;;  %v1032_v14 = vmul.f32 %v922_v60, %v1574_v23 }
 0x3c1   : > { %v1006_v27 = vpop.f32.mrb[16].mxu1 }
 0x3c2   : > { %v1007_v20 = vadd.f32 %v1006_v27, %v933_v25  ;;  %v1008_v29 = vpop.f32.mrb[17].mxu1 }
 0x3c3   : > { %v1009_v32 = vadd.f32 %v1008_v29, %v933_v25  ;;  %v1010_v33 = vpop.f32.mrb[18].mxu1 }
 0x3c4   : > { %v1033_v35 = vmul.f32 %v1007_v20, %v1559_v62  ;;  %v1011_v36 = vadd.f32 %v1010_v33, %v938_v30  ;;  %v1012_v37 = vpop.f32.mrb[19].mxu1 }
 0x3c5   : > { %v1034_v39 = vmul.f32 %v1009_v32, %v1561_v1  ;;  %v1013_v40 = vadd.f32 %v1012_v37, %v938_v30 }
 0x3c6   : > { %v1041_v42 = vadd.f32 %v1033_v35, %v1025_v34  ;;  %v1035_v43 = vmul.f32 %v1011_v36, %v1559_v62 }
 0x3c7   : > { %v1042_v45 = vadd.f32 %v1034_v39, %v1026_v38  ;;  %v1036_v46 = vmul.f32 %v1013_v40, %v1561_v1 }
 0x3c8   : > { %v1049_v48 = vmax.f32 %v1041_v42, 0.0  ;;  %v1043_v49 = vadd.f32 %v1035_v43, %v1027_v41 }
 0x3c9   : > { %v1050_v52 = vmax.f32 %v1042_v45, 0.0  ;;  %v1044_v53 = vadd.f32 %v1036_v46, %v1028_v44  ;;  %v1016_v54 = vpop.f32.mrb[20].mxu1 }
 0x3ca   : > { %v1051_v56 = vmax.f32 %v1043_v49, 0.0  ;;  %v1017_v57 = vadd.f32 %v1016_v54, %v943_v50  ;;  %v1018_v58 = vpop.f32.mrb[21].mxu1 }
 0x3cb   : > { %v1261_v61 = vpack.c.bf16 %v1050_v52, %v1049_v48  ;;  %v1052_v63 = vmax.f32 %v1044_v53, 0.0  ;;  %v1019_v0 = vadd.f32 %v1018_v58, %v943_v50  ;;  %v1020_v2 = vpop.f32.mrb[22].mxu1 }
 0x3cc   : > { %v1037_v4 = vmul.f32 %v1017_v57, %v1559_v62  ;;  %v1021_v5 = vadd.f32 %v1020_v2, %v948_v59  ;;  %v1022_v6 = vpop.f32.mrb[23].mxu1 }
 0x3cd   : > { %1081 = vst [vmem:[%s470_s13] sm:$0xff] %v1261_v61  ;;  %v1262_v8 = vpack.c.bf16 %v1052_v63, %v1051_v56  ;;  %v1038_v9 = vmul.f32 %v1019_v0, %v1561_v1  ;;  %v1023_v10 = vadd.f32 %v1022_v6, %v948_v59 }
 0x3ce   : > { %v1045_v12 = vadd.f32 %v1037_v4, %v1029_v3  ;;  %v1039_v13 = vmul.f32 %v1021_v5, %v1559_v62 }
 0x3cf   : > { %1082 = vst [vmem:[%s470_s13 + $0x8] sm:$0xff] %v1262_v8  ;;  %v1046_v15 = vadd.f32 %v1038_v9, %v1030_v7  ;;  %v1040_v16 = vmul.f32 %v1023_v10, %v1561_v1 }
 0x3d0   : > { %v1053_v17 = vmax.f32 %v1045_v12, 0.0  ;;  %v1047_v18 = vadd.f32 %v1039_v13, %v1031_v11 }
 0x3d1   : > { %v1054_v19 = vmax.f32 %v1046_v15, 0.0  ;;  %v1048_v22 = vadd.f32 %v1040_v16, %v1032_v14  ;;  %1091 = sbr.rel (!%p1444_p5) target bundleno = 992 (0x3e0), region = 102 }
 0x3d2   : > { %v1055_v24 = vmax.f32 %v1047_v18, 0.0 }
 0x3d3   : > { %v1263_v25 = vpack.c.bf16 %v1054_v19, %v1053_v17  ;;  %v1056_v26 = vmax.f32 %v1048_v22, 0.0 }
 0x3d4   : > { %v1128_v62 = vld [vmem:[%s470_s13] sm:$0xff] (%p1444_p5) }
 0x3d5   : > { %1083 = vst [vmem:[%s470_s13 + $0x10] sm:$0xff] %v1263_v25  ;;  %v1264_v27 = vpack.c.bf16 %v1056_v26, %v1055_v24  ;;  %1129 = vst [vmem:[%s1094_s18] sm:$0xff] (%p1444_p5), %v1128_v62 }
 0x3d6   : > { %v1130_v21 = vld [vmem:[%s470_s13 + $0x8] sm:$0xff] (%p1444_p5) }
 0x3d7   : > { %1084 = vst [vmem:[%s470_s13 + $0x18] sm:$0xff] %v1264_v27  ;;  %1131 = vst [vmem:[%s1094_s18 + $0x10] sm:$0xff] (%p1444_p5), %v1130_v21 }
 0x3dc   : > { %v1132_v23 = vld [vmem:[%s470_s13 + $0x10] sm:$0xff] }
 0x3dd   : > { %1133 = vst [vmem:[%s1094_s18 + $0x20] sm:$0xff] %v1132_v23 }
 0x3de   : > { %v1134_v1 = vld [vmem:[%s470_s13 + $0x18] sm:$0xff] }
 0x3df   : > { %1135 = vst [vmem:[%s1094_s18 + $0x30] sm:$0xff] %v1134_v1 }
 0x3e0 PF: > { %p17_p11 = scmp.ge.s32.totalorder %s1432_s17, 4   ;;  %s1658_s13 = smov %s1351_s14 }
 0x3e1   : > { %s1659_s14 = smov %s1442_s20  ;;  %s1660_s15 = smov %s1432_s17 }
 0x3e2   :  { %19 = sbr.rel (!%p17_p11) target bundleno = 2 (0x2), region = 174 }

// kernel: fwd.11
= control target key start
LH: loop header
LB: loop body
LE: loop exit
PB: predicated region body
PF: predicated region fallthrough
CT: control target
= control target key end

     0   :  { %s2291_s21 = smov 0   ;;  %s2293_s22 = smov 0   ;;  %s2754_s0 = inlined_call_operand.vmem [shape: bf16[825,512], index: 0, kind: input, shape index: {}]   ;;  %s2755_s1 = inlined_call_operand.vmem [shape: bf16[4,825], index: 1, kind: input, shape index: {}]   ;;  %s2756_s2 = inlined_call_operand.vmem [shape: f32[4,1], index: 2, kind: input, shape index: {}, may-alias: {2,4}]   ;;  %s2757_s3 = inlined_call_operand.vmem [shape: bf16[4,825], index: 3, kind: input, shape index: {}]   ;;  %s2758_s4 = inlined_call_operand.vmem [shape: f32[4,1], index: 4, kind: input, shape index: {}, may-alias: {2,4}]   ;;  %s2759_s5 = inlined_call_operand.vmem [shape: f32[1,512], index: 5, kind: input, shape index: {}]   ;;  %s2760_s6 = inlined_call_operand.vmem [shape: f32[4,512], index: 6, kind: output, shape index: {}]  }
   0x1   :  { %s2295_s23 = smov 0  }
   0x2 LB: > { %s1892_s24 = sadd.s32 4294967295, %s2251_s23   ;;  %s2308_s25 = sadd.s32 1, %s2251_s23   ;;  %s2251_s23 = sphi %s2295_s23, %s2763_s23   ;;  %s2247_s22 = sphi %s2293_s22, %s2762_s22   ;;  %s2243_s21 = sphi %s2291_s21, %s2761_s21  }
   0x3   : > { %s20_s26 = ssub.s32 %s2251_s23, %s2308_s25  ;;  %s23_s27 = sadd.s32 1, %s2247_s22 }
   0x4   : > { %p21_p0 = scmp.eq.s32.totalorder %s20_s26, 0  ;;  %p30_p1 = scmp.ne.s32.totalorder %s2247_s22, %s2243_s21 }
   0x5   : > { %p31_p2 = scmp.eq.s32.totalorder %s2251_s23, 0  ;;  %p1895_p4 = scmp.ge.s32.totalorder %s2251_s23, 2 }
   0x6   : > { %s2317_s28 = scalar_select %p21_p0, %s2247_s22, %s23_s27  }
   0x7   : > { %p32_p3 = por %p31_p2, %p30_p1  ;;  %204 = sbr.rel (%p1895_p4) target bundleno = 70 (0x46), region = 32 }
   0xe   : > { %207 = sbr.rel (!%p32_p3) target bundleno = 70 (0x46), region = 36  ;;  %s209_s29 = sand.u32 (%p32_p3), 1, %s2247_s22  }
   0xf   : > { %s2010_s30 = sshll.u32 (%p32_p3), %s2251_s23, 3  ;;  %s2039_s7 = smul.u32 (%p32_p3), 832, %s209_s29 }
  0x10   : > { %s2325_s10 = scalar_lea.vmem (%p32_p3), %s2754_s0, %s2010_s30 }
  0x11   : > { %v448_v0 = vld [vmem:[%s2325_s10] sm:$0xff] (%p32_p3)  ;;  %v450_v1 = vld [vmem:[%s2325_s10 + $0x10] sm:$0xff] (%p32_p3)  ;;  %s2333_s11 = scalar_lea.vmem (%p32_p3), [#allocation2], %s2039_s7 }
  0x12   : > { %v452_v2 = vld [vmem:[%s2325_s10 + $0x20] sm:$0xff] (%p32_p3)  ;;  %v454_v3 = vld [vmem:[%s2325_s10 + $0x30] sm:$0xff] (%p32_p3)  ;;  %449 = vst [vmem:[%s2333_s11] sm:$0xff] (%p32_p3), %v448_v0  ;;  %451 = vst [vmem:[%s2333_s11 + $0x8] sm:$0xff] (%p32_p3), %v450_v1 }
  0x13   : > { %v456_v4 = vld [vmem:[%s2325_s10 + $0x40] sm:$0xff] (%p32_p3)  ;;  %v458_v5 = vld [vmem:[%s2325_s10 + $0x50] sm:$0xff] (%p32_p3)  ;;  %453 = vst [vmem:[%s2333_s11 + $0x10] sm:$0xff] (%p32_p3), %v452_v2  ;;  %455 = vst [vmem:[%s2333_s11 + $0x18] sm:$0xff] (%p32_p3), %v454_v3 }
  0x14   : > { %457 = vst [vmem:[%s2333_s11 + $0x20] sm:$0xff] (%p32_p3), %v456_v4  ;;  %459 = vst [vmem:[%s2333_s11 + $0x28] sm:$0xff] (%p32_p3), %v458_v5  ;;  %v460_v6 = vld [vmem:[%s2325_s10 + $0x60] sm:$0xff] (%p32_p3)  ;;  %v462_v7 = vld [vmem:[%s2325_s10 + $0x70] sm:$0xff] (%p32_p3) }
  0x15   : > { %v464_v8 = vld [vmem:[%s2325_s10 + $0x80] sm:$0xff]  ;;  %461 = vst [vmem:[%s2333_s11 + $0x30] sm:$0xff] %v460_v6  ;;  %463 = vst [vmem:[%s2333_s11 + $0x38] sm:$0xff] %v462_v7  ;;  %v466_v9 = vld [vmem:[%s2325_s10 + $0x90] sm:$0xff] }
  0x16   : > { %465 = vst [vmem:[%s2333_s11 + $0x40] sm:$0xff] %v464_v8  ;;  %v468_v10 = vld [vmem:[%s2325_s10 + $0xa0] sm:$0xff]  ;;  %v470_v11 = vld [vmem:[%s2325_s10 + $0xb0] sm:$0xff]  ;;  %467 = vst [vmem:[%s2333_s11 + $0x48] sm:$0xff] %v466_v9 }
  0x17   : > { %469 = vst [vmem:[%s2333_s11 + $0x50] sm:$0xff] %v468_v10  ;;  %471 = vst [vmem:[%s2333_s11 + $0x58] sm:$0xff] %v470_v11  ;;  %v472_v12 = vld [vmem:[%s2325_s10 + $0xc0] sm:$0xff]  ;;  %v474_v13 = vld [vmem:[%s2325_s10 + $0xd0] sm:$0xff] }
  0x18   : > { %v476_v14 = vld [vmem:[%s2325_s10 + $0xe0] sm:$0xff]  ;;  %473 = vst [vmem:[%s2333_s11 + $0x60] sm:$0xff] %v472_v12  ;;  %475 = vst [vmem:[%s2333_s11 + $0x68] sm:$0xff] %v474_v13  ;;  %v478_v15 = vld [vmem:[%s2325_s10 + $0xf0] sm:$0xff] }
  0x19   : > { %477 = vst [vmem:[%s2333_s11 + $0x70] sm:$0xff] %v476_v14  ;;  %v480_v16 = vld [vmem:[%s2325_s10 + $0x100] sm:$0xff]  ;;  %v482_v17 = vld [vmem:[%s2325_s10 + $0x110] sm:$0xff]  ;;  %479 = vst [vmem:[%s2333_s11 + $0x78] sm:$0xff] %v478_v15 }
  0x1a   : > { %481 = vst [vmem:[%s2333_s11 + $0x80] sm:$0xff] %v480_v16  ;;  %483 = vst [vmem:[%s2333_s11 + $0x88] sm:$0xff] %v482_v17  ;;  %v484_v18 = vld [vmem:[%s2325_s10 + $0x120] sm:$0xff]  ;;  %v486_v19 = vld [vmem:[%s2325_s10 + $0x130] sm:$0xff] }
  0x1b   : > { %v488_v20 = vld [vmem:[%s2325_s10 + $0x140] sm:$0xff]  ;;  %485 = vst [vmem:[%s2333_s11 + $0x90] sm:$0xff] %v484_v18  ;;  %487 = vst [vmem:[%s2333_s11 + $0x98] sm:$0xff] %v486_v19  ;;  %v490_v21 = vld [vmem:[%s2325_s10 + $0x150] sm:$0xff] }
  0x1c   : > { %489 = vst [vmem:[%s2333_s11 + $0xa0] sm:$0xff] %v488_v20  ;;  %v492_v22 = vld [vmem:[%s2325_s10 + $0x160] sm:$0xff]  ;;  %v494_v23 = vld [vmem:[%s2325_s10 + $0x170] sm:$0xff]  ;;  %491 = vst [vmem:[%s2333_s11 + $0xa8] sm:$0xff] %v490_v21 }
  0x1d   : > { %493 = vst [vmem:[%s2333_s11 + $0xb0] sm:$0xff] %v492_v22  ;;  %495 = vst [vmem:[%s2333_s11 + $0xb8] sm:$0xff] %v494_v23  ;;  %v496_v24 = vld [vmem:[%s2325_s10 + $0x180] sm:$0xff]  ;;  %v498_v25 = vld [vmem:[%s2325_s10 + $0x190] sm:$0xff] }
  0x1e   : > { %v500_v26 = vld [vmem:[%s2325_s10 + $0x1a0] sm:$0xff]  ;;  %497 = vst [vmem:[%s2333_s11 + $0xc0] sm:$0xff] %v496_v24  ;;  %499 = vst [vmem:[%s2333_s11 + $0xc8] sm:$0xff] %v498_v25  ;;  %v502_v27 = vld [vmem:[%s2325_s10 + $0x1b0] sm:$0xff] }
  0x1f   : > { %501 = vst [vmem:[%s2333_s11 + $0xd0] sm:$0xff] %v500_v26  ;;  %v504_v28 = vld [vmem:[%s2325_s10 + $0x1c0] sm:$0xff]  ;;  %v506_v29 = vld [vmem:[%s2325_s10 + $0x1d0] sm:$0xff]  ;;  %503 = vst [vmem:[%s2333_s11 + $0xd8] sm:$0xff] %v502_v27 }
  0x20   : > { %505 = vst [vmem:[%s2333_s11 + $0xe0] sm:$0xff] %v504_v28  ;;  %507 = vst [vmem:[%s2333_s11 + $0xe8] sm:$0xff] %v506_v29  ;;  %v508_v30 = vld [vmem:[%s2325_s10 + $0x1e0] sm:$0xff]  ;;  %v510_v31 = vld [vmem:[%s2325_s10 + $0x1f0] sm:$0xff] }
  0x21   : > { %v512_v32 = vld [vmem:[%s2325_s10 + $0x200] sm:$0xff]  ;;  %509 = vst [vmem:[%s2333_s11 + $0xf0] sm:$0xff] %v508_v30  ;;  %511 = vst [vmem:[%s2333_s11 + $0xf8] sm:$0xff] %v510_v31  ;;  %v514_v33 = vld [vmem:[%s2325_s10 + $0x210] sm:$0xff] }
  0x22   : > { %513 = vst [vmem:[%s2333_s11 + $0x100] sm:$0xff] %v512_v32  ;;  %v516_v34 = vld [vmem:[%s2325_s10 + $0x220] sm:$0xff]  ;;  %v518_v35 = vld [vmem:[%s2325_s10 + $0x230] sm:$0xff]  ;;  %515 = vst [vmem:[%s2333_s11 + $0x108] sm:$0xff] %v514_v33 }
  0x23   : > { %517 = vst [vmem:[%s2333_s11 + $0x110] sm:$0xff] %v516_v34  ;;  %519 = vst [vmem:[%s2333_s11 + $0x118] sm:$0xff] %v518_v35  ;;  %v520_v36 = vld [vmem:[%s2325_s10 + $0x240] sm:$0xff]  ;;  %v522_v37 = vld [vmem:[%s2325_s10 + $0x250] sm:$0xff] }
  0x24   : > { %v524_v38 = vld [vmem:[%s2325_s10 + $0x260] sm:$0xff]  ;;  %521 = vst [vmem:[%s2333_s11 + $0x120] sm:$0xff] %v520_v36  ;;  %523 = vst [vmem:[%s2333_s11 + $0x128] sm:$0xff] %v522_v37  ;;  %v526_v39 = vld [vmem:[%s2325_s10 + $0x270] sm:$0xff] }
  0x25   : > { %525 = vst [vmem:[%s2333_s11 + $0x130] sm:$0xff] %v524_v38  ;;  %v528_v40 = vld [vmem:[%s2325_s10 + $0x280] sm:$0xff]  ;;  %v530_v41 = vld [vmem:[%s2325_s10 + $0x290] sm:$0xff]  ;;  %527 = vst [vmem:[%s2333_s11 + $0x138] sm:$0xff] %v526_v39 }
  0x26   : > { %529 = vst [vmem:[%s2333_s11 + $0x140] sm:$0xff] %v528_v40  ;;  %531 = vst [vmem:[%s2333_s11 + $0x148] sm:$0xff] %v530_v41  ;;  %v532_v42 = vld [vmem:[%s2325_s10 + $0x2a0] sm:$0xff]  ;;  %v534_v43 = vld [vmem:[%s2325_s10 + $0x2b0] sm:$0xff] }
  0x27   : > { %v536_v44 = vld [vmem:[%s2325_s10 + $0x2c0] sm:$0xff]  ;;  %533 = vst [vmem:[%s2333_s11 + $0x150] sm:$0xff] %v532_v42  ;;  %535 = vst [vmem:[%s2333_s11 + $0x158] sm:$0xff] %v534_v43  ;;  %v538_v45 = vld [vmem:[%s2325_s10 + $0x2d0] sm:$0xff] }
  0x28   : > { %537 = vst [vmem:[%s2333_s11 + $0x160] sm:$0xff] %v536_v44  ;;  %v540_v46 = vld [vmem:[%s2325_s10 + $0x2e0] sm:$0xff]  ;;  %v542_v47 = vld [vmem:[%s2325_s10 + $0x2f0] sm:$0xff]  ;;  %539 = vst [vmem:[%s2333_s11 + $0x168] sm:$0xff] %v538_v45 }
  0x29   : > { %541 = vst [vmem:[%s2333_s11 + $0x170] sm:$0xff] %v540_v46  ;;  %543 = vst [vmem:[%s2333_s11 + $0x178] sm:$0xff] %v542_v47  ;;  %v544_v48 = vld [vmem:[%s2325_s10 + $0x300] sm:$0xff]  ;;  %v546_v49 = vld [vmem:[%s2325_s10 + $0x310] sm:$0xff] }
  0x2a   : > { %v548_v50 = vld [vmem:[%s2325_s10 + $0x320] sm:$0xff]  ;;  %545 = vst [vmem:[%s2333_s11 + $0x180] sm:$0xff] %v544_v48  ;;  %547 = vst [vmem:[%s2333_s11 + $0x188] sm:$0xff] %v546_v49  ;;  %v550_v51 = vld [vmem:[%s2325_s10 + $0x330] sm:$0xff] }
  0x2b   : > { %549 = vst [vmem:[%s2333_s11 + $0x190] sm:$0xff] %v548_v50  ;;  %v552_v52 = vld [vmem:[%s2325_s10 + $0x340] sm:$0xff]  ;;  %v554_v53 = vld [vmem:[%s2325_s10 + $0x350] sm:$0xff]  ;;  %551 = vst [vmem:[%s2333_s11 + $0x198] sm:$0xff] %v550_v51 }
  0x2c   : > { %553 = vst [vmem:[%s2333_s11 + $0x1a0] sm:$0xff] %v552_v52  ;;  %555 = vst [vmem:[%s2333_s11 + $0x1a8] sm:$0xff] %v554_v53  ;;  %v556_v54 = vld [vmem:[%s2325_s10 + $0x360] sm:$0xff]  ;;  %v558_v55 = vld [vmem:[%s2325_s10 + $0x370] sm:$0xff] }
  0x2d   : > { %v560_v56 = vld [vmem:[%s2325_s10 + $0x380] sm:$0xff]  ;;  %557 = vst [vmem:[%s2333_s11 + $0x1b0] sm:$0xff] %v556_v54  ;;  %559 = vst [vmem:[%s2333_s11 + $0x1b8] sm:$0xff] %v558_v55  ;;  %v562_v57 = vld [vmem:[%s2325_s10 + $0x390] sm:$0xff] }
  0x2e   : > { %561 = vst [vmem:[%s2333_s11 + $0x1c0] sm:$0xff] %v560_v56  ;;  %v564_v58 = vld [vmem:[%s2325_s10 + $0x3a0] sm:$0xff]  ;;  %v566_v59 = vld [vmem:[%s2325_s10 + $0x3b0] sm:$0xff]  ;;  %563 = vst [vmem:[%s2333_s11 + $0x1c8] sm:$0xff] %v562_v57 }
  0x2f   : > { %565 = vst [vmem:[%s2333_s11 + $0x1d0] sm:$0xff] %v564_v58  ;;  %567 = vst [vmem:[%s2333_s11 + $0x1d8] sm:$0xff] %v566_v59  ;;  %v568_v60 = vld [vmem:[%s2325_s10 + $0x3c0] sm:$0xff]  ;;  %v570_v61 = vld [vmem:[%s2325_s10 + $0x3d0] sm:$0xff] }
  0x30   : > { %v572_v62 = vld [vmem:[%s2325_s10 + $0x3e0] sm:$0xff]  ;;  %569 = vst [vmem:[%s2333_s11 + $0x1e0] sm:$0xff] %v568_v60  ;;  %571 = vst [vmem:[%s2333_s11 + $0x1e8] sm:$0xff] %v570_v61  ;;  %v574_v63 = vld [vmem:[%s2325_s10 + $0x3f0] sm:$0xff] }
  0x31   : > { %573 = vst [vmem:[%s2333_s11 + $0x1f0] sm:$0xff] %v572_v62  ;;  %v576_v0 = vld [vmem:[%s2325_s10 + $0x400] sm:$0xff]  ;;  %v578_v1 = vld [vmem:[%s2325_s10 + $0x410] sm:$0xff]  ;;  %575 = vst [vmem:[%s2333_s11 + $0x1f8] sm:$0xff] %v574_v63 }
  0x32   : > { %577 = vst [vmem:[%s2333_s11 + $0x200] sm:$0xff] %v576_v0  ;;  %579 = vst [vmem:[%s2333_s11 + $0x208] sm:$0xff] %v578_v1  ;;  %v580_v2 = vld [vmem:[%s2325_s10 + $0x420] sm:$0xff]  ;;  %v582_v3 = vld [vmem:[%s2325_s10 + $0x430] sm:$0xff] }
  0x33   : > { %v584_v4 = vld [vmem:[%s2325_s10 + $0x440] sm:$0xff]  ;;  %581 = vst [vmem:[%s2333_s11 + $0x210] sm:$0xff] %v580_v2  ;;  %583 = vst [vmem:[%s2333_s11 + $0x218] sm:$0xff] %v582_v3  ;;  %v586_v5 = vld [vmem:[%s2325_s10 + $0x450] sm:$0xff] }
  0x34   : > { %585 = vst [vmem:[%s2333_s11 + $0x220] sm:$0xff] %v584_v4  ;;  %v588_v6 = vld [vmem:[%s2325_s10 + $0x460] sm:$0xff]  ;;  %v590_v7 = vld [vmem:[%s2325_s10 + $0x470] sm:$0xff]  ;;  %587 = vst [vmem:[%s2333_s11 + $0x228] sm:$0xff] %v586_v5 }
  0x35   : > { %589 = vst [vmem:[%s2333_s11 + $0x230] sm:$0xff] %v588_v6  ;;  %591 = vst [vmem:[%s2333_s11 + $0x238] sm:$0xff] %v590_v7  ;;  %v592_v8 = vld [vmem:[%s2325_s10 + $0x480] sm:$0xff]  ;;  %v594_v9 = vld [vmem:[%s2325_s10 + $0x490] sm:$0xff] }
  0x36   : > { %v596_v10 = vld [vmem:[%s2325_s10 + $0x4a0] sm:$0xff]  ;;  %593 = vst [vmem:[%s2333_s11 + $0x240] sm:$0xff] %v592_v8  ;;  %595 = vst [vmem:[%s2333_s11 + $0x248] sm:$0xff] %v594_v9  ;;  %v598_v11 = vld [vmem:[%s2325_s10 + $0x4b0] sm:$0xff] }
  0x37   : > { %597 = vst [vmem:[%s2333_s11 + $0x250] sm:$0xff] %v596_v10  ;;  %v600_v12 = vld [vmem:[%s2325_s10 + $0x4c0] sm:$0xff]  ;;  %v602_v13 = vld [vmem:[%s2325_s10 + $0x4d0] sm:$0xff]  ;;  %599 = vst [vmem:[%s2333_s11 + $0x258] sm:$0xff] %v598_v11 }
  0x38   : > { %601 = vst [vmem:[%s2333_s11 + $0x260] sm:$0xff] %v600_v12  ;;  %603 = vst [vmem:[%s2333_s11 + $0x268] sm:$0xff] %v602_v13  ;;  %v604_v14 = vld [vmem:[%s2325_s10 + $0x4e0] sm:$0xff]  ;;  %v606_v15 = vld [vmem:[%s2325_s10 + $0x4f0] sm:$0xff] }
  0x39   : > { %v608_v16 = vld [vmem:[%s2325_s10 + $0x500] sm:$0xff]  ;;  %605 = vst [vmem:[%s2333_s11 + $0x270] sm:$0xff] %v604_v14  ;;  %607 = vst [vmem:[%s2333_s11 + $0x278] sm:$0xff] %v606_v15  ;;  %v610_v17 = vld [vmem:[%s2325_s10 + $0x510] sm:$0xff] }
  0x3a   : > { %609 = vst [vmem:[%s2333_s11 + $0x280] sm:$0xff] %v608_v16  ;;  %v612_v18 = vld [vmem:[%s2325_s10 + $0x520] sm:$0xff]  ;;  %v614_v19 = vld [vmem:[%s2325_s10 + $0x530] sm:$0xff]  ;;  %611 = vst [vmem:[%s2333_s11 + $0x288] sm:$0xff] %v610_v17 }
  0x3b   : > { %613 = vst [vmem:[%s2333_s11 + $0x290] sm:$0xff] %v612_v18  ;;  %615 = vst [vmem:[%s2333_s11 + $0x298] sm:$0xff] %v614_v19  ;;  %v616_v20 = vld [vmem:[%s2325_s10 + $0x540] sm:$0xff]  ;;  %v618_v21 = vld [vmem:[%s2325_s10 + $0x550] sm:$0xff] }
  0x3c   : > { %v620_v22 = vld [vmem:[%s2325_s10 + $0x560] sm:$0xff]  ;;  %617 = vst [vmem:[%s2333_s11 + $0x2a0] sm:$0xff] %v616_v20  ;;  %619 = vst [vmem:[%s2333_s11 + $0x2a8] sm:$0xff] %v618_v21  ;;  %v622_v23 = vld [vmem:[%s2325_s10 + $0x570] sm:$0xff] }
  0x3d   : > { %621 = vst [vmem:[%s2333_s11 + $0x2b0] sm:$0xff] %v620_v22  ;;  %v624_v24 = vld [vmem:[%s2325_s10 + $0x580] sm:$0xff]  ;;  %v626_v25 = vld [vmem:[%s2325_s10 + $0x590] sm:$0xff]  ;;  %623 = vst [vmem:[%s2333_s11 + $0x2b8] sm:$0xff] %v622_v23 }
  0x3e   : > { %625 = vst [vmem:[%s2333_s11 + $0x2c0] sm:$0xff] %v624_v24  ;;  %627 = vst [vmem:[%s2333_s11 + $0x2c8] sm:$0xff] %v626_v25  ;;  %v628_v26 = vld [vmem:[%s2325_s10 + $0x5a0] sm:$0xff]  ;;  %v630_v27 = vld [vmem:[%s2325_s10 + $0x5b0] sm:$0xff] }
  0x3f   : > { %v632_v28 = vld [vmem:[%s2325_s10 + $0x5c0] sm:$0xff]  ;;  %629 = vst [vmem:[%s2333_s11 + $0x2d0] sm:$0xff] %v628_v26  ;;  %631 = vst [vmem:[%s2333_s11 + $0x2d8] sm:$0xff] %v630_v27  ;;  %v634_v29 = vld [vmem:[%s2325_s10 + $0x5d0] sm:$0xff] }
  0x40   : > { %633 = vst [vmem:[%s2333_s11 + $0x2e0] sm:$0xff] %v632_v28  ;;  %v636_v30 = vld [vmem:[%s2325_s10 + $0x5e0] sm:$0xff]  ;;  %v638_v31 = vld [vmem:[%s2325_s10 + $0x5f0] sm:$0xff]  ;;  %635 = vst [vmem:[%s2333_s11 + $0x2e8] sm:$0xff] %v634_v29 }
  0x41   : > { %637 = vst [vmem:[%s2333_s11 + $0x2f0] sm:$0xff] %v636_v30  ;;  %639 = vst [vmem:[%s2333_s11 + $0x2f8] sm:$0xff] %v638_v31  ;;  %v640_v32 = vld [vmem:[%s2325_s10 + $0x600] sm:$0xff]  ;;  %v642_v33 = vld [vmem:[%s2325_s10 + $0x610] sm:$0xff] }
  0x42   : > { %v644_v34 = vld [vmem:[%s2325_s10 + $0x620] sm:$0xff]  ;;  %641 = vst [vmem:[%s2333_s11 + $0x300] sm:$0xff] %v640_v32  ;;  %643 = vst [vmem:[%s2333_s11 + $0x308] sm:$0xff] %v642_v33  ;;  %v646_v35 = vld [vmem:[%s2325_s10 + $0x630] sm:$0xff] }
  0x43   : > { %645 = vst [vmem:[%s2333_s11 + $0x310] sm:$0xff] %v644_v34  ;;  %v648_v36 = vld [vmem:[%s2325_s10 + $0x640] sm:$0xff]  ;;  %v650_v37 = vld [vmem:[%s2325_s10 + $0x650] sm:$0xff]  ;;  %647 = vst [vmem:[%s2333_s11 + $0x318] sm:$0xff] %v646_v35 }
  0x44   : > { %649 = vst [vmem:[%s2333_s11 + $0x320] sm:$0xff] %v648_v36  ;;  %651 = vst [vmem:[%s2333_s11 + $0x328] sm:$0xff] %v650_v37  ;;  %v652_v38 = vld [vmem:[%s2325_s10 + $0x660] sm:$0xff]  ;;  %v654_v39 = vld [vmem:[%s2325_s10 + $0x670] sm:$0xff] }
  0x45   : > { %653 = vst [vmem:[%s2333_s11 + $0x330] sm:$0xff] %v652_v38  ;;  %655 = vst [vmem:[%s2333_s11 + $0x338] sm:$0xff] %v654_v39 }
  0x46 PF: > { %p1898_p5 = scmp.ge.s32.totalorder %s2251_s23, 1  ;;  %p668_p6 = scmp.lt.s32.totalorder %s2251_s23, 3 }
  0x48   : > { %p669_p7 = pnand %p1898_p5, %p668_p6 }
  0x49   : > { %s675_s12 = sand.u32 (!%p669_p7), 1, %s2243_s21   ;;  %v841_v40 = vlaneseq (!%p669_p7)  ;;  %v2253_v41 = vmov (!%p669_p7), 1983009808   ;;  %v2545_v44 = vld [vmem:[%s2755_s1] sm:$0xff] (!%p669_p7)  ;;  %v2254_v37 = vmov (!%p669_p7), 0   ;;  %vm1398_vm0 = vcmask (!%p669_p7), 1043456  }
  0x4a   : > { %672 = sbr.rel (%p669_p7) target bundleno = 509 (0x1fd), region = 78  ;;  %v839_v42 = vunpack.c.l.s4 (!%p669_p7), %v2253_v41  ;;  %v2550_v46 = vld [vmem:[%s2757_s3] sm:$0xff] (!%p669_p7)  ;;  %v837_v19 = vcombine.high (!%p669_p7), %v2545_v44, %v2545_v44  ;;  %2068 = vset.pattern.permute.xlu0 (!%p669_p7), %v2254_v37  ;;  %vm1399_vm1 = vcmask (!%p669_p7), 1044480   ;;  %vm1394_vm2 = vcmask (!%p669_p7), 465920   ;;  %s1899_s8 = sshll.u32 (!%p669_p7), %s1892_s24, 1 }
  0x4b   : > { %s2040_s13 = smul.u32 (!%p669_p7), 832, %s675_s12  ;;  %v2540_v43 = vshrl.u32 (!%p669_p7), %v841_v40, 7  ;;  %v1582_v20 = vcombine.high (!%p669_p7), %v2550_v46, %v2550_v46  ;;  %v829_v38 = vld [vmem:[%s2756_s2] sm:$0xf] (!%p669_p7)  ;;  %p710_p8 = scmp.lt.s32.totalorder (!%p669_p7), %s1899_s8, 3 }
  0x4c   : > { %v840_v45 = vunpack.c.0.s8 (!%p669_p7), %v839_v42  ;;  %832 = vperm.xlu0 (!%p669_p7), %2068, %v829_v38   ;;  %v1574_v41 = vld [vmem:[%s2758_s4] sm:$0xf] (!%p669_p7) }
  0x4d   : > { %s2552_s18 = scalar_lea.vmem (!%p669_p7), [#allocation2], %s2040_s13 }
  0x4e   : > { %v2069_v47 = vld [vmem:[%s2552_s18 + $0x4] ss:$8 sps:$4 sm:$0xff] (!%p669_p7)   ;;  %v2071_v48 = vld [vmem:[%s2552_s18] ss:$8 sps:$4 sm:$0xff] (!%p669_p7)   ;;  %v2557_v49 = vsub.s32 (!%p669_p7), %v840_v45, %v2540_v43  ;;  %v2072_v50 = vld [vmem:[%s2552_s18 + $0x14] ss:$8 sps:$4 sm:$0xff] (!%p669_p7)  }
  0x4f   : > { %1408 = vmatprep.subr.bf16.mxu0 (!%p669_p7), %v2069_v47  ;;  %1624 = vmatprep.subr.bf16.mxu1 (!%p669_p7), %v2069_v47  ;;  %v2074_v51 = vld [vmem:[%s2552_s18 + $0x10] ss:$8 sps:$4 sm:$0xff] (!%p669_p7)   ;;  %v2075_v54 = vld [vmem:[%s2552_s18 + $0x24] ss:$8 sps:$4 sm:$0xff] (!%p669_p7)   ;;  %v2077_v57 = vld [vmem:[%s2552_s18 + $0x20] ss:$8 sps:$4 sm:$0xff] (!%p669_p7)  }
  0x50   : > { %1409 = vmatpush1.bf16.msra.mxu0 (!%p669_p7), %v2071_v48  ;;  %1625 = vmatpush1.bf16.msra.mxu1 (!%p669_p7), %v2071_v48  ;;  %v2563_v52 = vrot.slane (!%p669_p7), %v2545_v44, %v2557_v49  ;;  %v2567_v53 = vrot.slane (!%p669_p7), %v2550_v46, %v2557_v49  ;;  %v2078_v58 = vld [vmem:[%s2552_s18 + $0x34] ss:$8 sps:$4 sm:$0xff] (!%p669_p7)   ;;  %v2080_v59 = vld [vmem:[%s2552_s18 + $0x30] ss:$8 sps:$4 sm:$0xff] (!%p669_p7)   ;;  %v2081_v60 = vld [vmem:[%s2552_s18 + $0x44] ss:$8 sps:$4 sm:$0xff] (!%p669_p7)   ;;  %v2607_v23 = vrot.slane (!%p669_p7), %v837_v19, %v2557_v49 }
  0x51   : > { %1410 = vmatprep.subr.bf16.mxu0 %v2072_v50  ;;  %1626 = vmatprep.subr.bf16.mxu1 %v2072_v50  ;;  %v2083_v61 = vld [vmem:[%s2552_s18 + $0x40] ss:$8 sps:$4 sm:$0xff]   ;;  %v2084_v62 = vld [vmem:[%s2552_s18 + $0x54] ss:$8 sps:$4 sm:$0xff]   ;;  %v2086_v63 = vld [vmem:[%s2552_s18 + $0x50] ss:$8 sps:$4 sm:$0xff]   ;;  %v2610_v24 = vrot.slane %v1582_v20, %v2557_v49 }
  0x52   : > { %v852_v55 = vcombine.high %v2563_v52, %v2563_v52  ;;  %v1597_v56 = vcombine.high %v2567_v53, %v2567_v53  ;;  %v2087_v0 = vld [vmem:[%s2552_s18 + $0x64] ss:$8 sps:$4 sm:$0xff]   ;;  %v2089_v1 = vld [vmem:[%s2552_s18 + $0x60] ss:$8 sps:$4 sm:$0xff]   ;;  %v2090_v2 = vld [vmem:[%s2552_s18 + $0x74] ss:$8 sps:$4 sm:$0xff]   ;;  %v853_v27 = vcombine.high %v2607_v23, %v2607_v23  ;;  %1577 = vperm.xlu0 %2068, %v1574_v41  }
  0x53   : > { %v2092_v3 = vld [vmem:[%s2552_s18 + $0x70] ss:$8 sps:$4 sm:$0xff]   ;;  %v2093_v4 = vld [vmem:[%s2552_s18 + $0x84] ss:$8 sps:$4 sm:$0xff]   ;;  %v2095_v5 = vld [vmem:[%s2552_s18 + $0x80] ss:$8 sps:$4 sm:$0xff]   ;;  %v1598_v28 = vcombine.high %v2610_v24, %v2610_v24 }
  0x54   : > { %1411 = vmatpush1.bf16.msra.mxu0 %v2074_v51  ;;  %1627 = vmatpush1.bf16.msra.mxu1 %v2074_v51  ;;  %v2096_v6 = vld [vmem:[%s2552_s18 + $0x94] ss:$8 sps:$4 sm:$0xff]   ;;  %v2098_v7 = vld [vmem:[%s2552_s18 + $0x90] ss:$8 sps:$4 sm:$0xff]   ;;  %v2099_v8 = vld [vmem:[%s2552_s18 + $0xa4] ss:$8 sps:$4 sm:$0xff]  }
  0x55   : > { %1412 = vmatprep.subr.bf16.mxu0 %v2075_v54  ;;  %1628 = vmatprep.subr.bf16.mxu1 %v2075_v54  ;;  %v2101_v9 = vld [vmem:[%s2552_s18 + $0xa0] ss:$8 sps:$4 sm:$0xff]   ;;  %v2102_v10 = vld [vmem:[%s2552_s18 + $0xb4] ss:$8 sps:$4 sm:$0xff]   ;;  %v2104_v11 = vld [vmem:[%s2552_s18 + $0xb0] ss:$8 sps:$4 sm:$0xff]  }
  0x56   : > { %1440 = vmatprep.mubr.bf16.mxu0 %v852_v55  ;;  %1656 = vmatprep.mubr.bf16.mxu1 %v1597_v56  ;;  %v2105_v12 = vld [vmem:[%s2552_s18 + $0xc4] ss:$8 sps:$4 sm:$0xff]   ;;  %v2107_v13 = vld [vmem:[%s2552_s18 + $0xc0] ss:$8 sps:$4 sm:$0xff]   ;;  %v2108_v14 = vld [vmem:[%s2552_s18 + $0xd4] ss:$8 sps:$4 sm:$0xff]  }
  0x57   : > { %v2110_v15 = vld [vmem:[%s2552_s18 + $0xd0] ss:$8 sps:$4 sm:$0xff]   ;;  %v2111_v16 = vld [vmem:[%s2552_s18 + $0xe4] ss:$8 sps:$4 sm:$0xff]   ;;  %v2113_v17 = vld [vmem:[%s2552_s18 + $0xe0] ss:$8 sps:$4 sm:$0xff]  }
  0x58   : > { %1413 = vmatpush1.bf16.msra.mxu0 %v2077_v57  ;;  %1629 = vmatpush1.bf16.msra.mxu1 %v2077_v57  ;;  %v2114_v18 = vld [vmem:[%s2552_s18 + $0xf4] ss:$8 sps:$4 sm:$0xff]   ;;  %v2116_v21 = vld [vmem:[%s2552_s18 + $0xf0] ss:$8 sps:$4 sm:$0xff]   ;;  %v2120_v22 = vld [vmem:[%s2552_s18 + $0x104] ss:$8 sps:$4 sm:$0xff]  }
  0x59   : > { %1414 = vmatprep.subr.bf16.mxu0 %v2078_v58  ;;  %1630 = vmatprep.subr.bf16.mxu1 %v2078_v58  ;;  %v2118_v25 = vld [vmem:[%s2552_s18 + $0x100] ss:$8 sps:$4 sm:$0xff]   ;;  %v2124_v26 = vld [vmem:[%s2552_s18 + $0x114] ss:$8 sps:$4 sm:$0xff]   ;;  %v2122_v29 = vld [vmem:[%s2552_s18 + $0x110] ss:$8 sps:$4 sm:$0xff]  }
  0x5a   : > { %v2127_v30 = vld [vmem:[%s2552_s18 + $0x124] ss:$8 sps:$4 sm:$0xff]   ;;  %v2125_v31 = vld [vmem:[%s2552_s18 + $0x120] ss:$8 sps:$4 sm:$0xff]   ;;  %v2130_v32 = vld [vmem:[%s2552_s18 + $0x134] ss:$8 sps:$4 sm:$0xff]  }
  0x5b   : > { %v2128_v33 = vld [vmem:[%s2552_s18 + $0x130] ss:$8 sps:$4 sm:$0xff]   ;;  %v2133_v34 = vld [vmem:[%s2552_s18 + $0x144] ss:$8 sps:$4 sm:$0xff]   ;;  %v2131_v35 = vld [vmem:[%s2552_s18 + $0x140] ss:$8 sps:$4 sm:$0xff]  }
  0x5c   : > { %1415 = vmatpush1.bf16.msra.mxu0 %v2080_v59  ;;  %1631 = vmatpush1.bf16.msra.mxu1 %v2080_v59  ;;  %v2136_v36 = vld [vmem:[%s2552_s18 + $0x154] ss:$8 sps:$4 sm:$0xff]   ;;  %v2134_v39 = vld [vmem:[%s2552_s18 + $0x150] ss:$8 sps:$4 sm:$0xff]   ;;  %v2139_v40 = vld [vmem:[%s2552_s18 + $0x164] ss:$8 sps:$4 sm:$0xff]  }
  0x5d   : > { %1416 = vmatprep.subr.bf16.mxu0 %v2081_v60  ;;  %1632 = vmatprep.subr.bf16.mxu1 %v2081_v60  ;;  %v2137_v42 = vld [vmem:[%s2552_s18 + $0x160] ss:$8 sps:$4 sm:$0xff]   ;;  %v2142_v44 = vld [vmem:[%s2552_s18 + $0x174] ss:$8 sps:$4 sm:$0xff]   ;;  %v2140_v45 = vld [vmem:[%s2552_s18 + $0x170] ss:$8 sps:$4 sm:$0xff]  }
  0x5e   : > { %v2145_v46 = vld [vmem:[%s2552_s18 + $0x184] ss:$8 sps:$4 sm:$0xff]   ;;  %v2143_v47 = vld [vmem:[%s2552_s18 + $0x180] ss:$8 sps:$4 sm:$0xff]   ;;  %v2148_v48 = vld [vmem:[%s2552_s18 + $0x194] ss:$8 sps:$4 sm:$0xff]  }
  0x5f   : > { %v2146_v50 = vld [vmem:[%s2552_s18 + $0x190] ss:$8 sps:$4 sm:$0xff]   ;;  %v2151_v51 = vld [vmem:[%s2552_s18 + $0x1a4] ss:$8 sps:$4 sm:$0xff]   ;;  %v2155_v56 = vld [vmem:[%s2552_s18 + $0x1c0] ss:$8 sps:$4 sm:$0xff]  }
  0x60   : > { %1417 = vmatpush1.bf16.msra.mxu0 %v2083_v61  ;;  %1633 = vmatpush1.bf16.msra.mxu1 %v2083_v61  ;;  %v2152_v54 = vld [vmem:[%s2552_s18 + $0x1b0] ss:$8 sps:$4 sm:$0xff]   ;;  %v2157_v55 = vld [vmem:[%s2552_s18 + $0x1c4] ss:$8 sps:$4 sm:$0xff]   ;;  %v2160_v57 = vld [vmem:[%s2552_s18 + $0x1d4] ss:$8 sps:$4 sm:$0xff]  }
  0x61   : > { %1418 = vmatprep.subr.bf16.mxu0 %v2084_v62  ;;  %1634 = vmatprep.subr.bf16.mxu1 %v2084_v62  ;;  %v2158_v58 = vld [vmem:[%s2552_s18 + $0x1d0] ss:$8 sps:$4 sm:$0xff]   ;;  %v2163_v59 = vld [vmem:[%s2552_s18 + $0x1e4] ss:$8 sps:$4 sm:$0xff]   ;;  %v2161_v60 = vld [vmem:[%s2552_s18 + $0x1e0] ss:$8 sps:$4 sm:$0xff]  }
  0x62   : > { %v2166_v61 = vld [vmem:[%s2552_s18 + $0x1f4] ss:$8 sps:$4 sm:$0xff]   ;;  %v2658_v62 = vld [vmem:[%s2755_s1 + $0x8] sm:$0x3f]  ;;  %v2188_v20 = vld [vmem:[%s2552_s18 + $0x270] ss:$8 sps:$4 sm:$0xff]  }
  0x63   : > { %v2190_v19 = vld [vmem:[%s2552_s18 + $0x274] ss:$8 sps:$4 sm:$0xff]   ;;  %v2218_v38 = vld [vmem:[%s2552_s18 + $0x304] ss:$8 sps:$4 sm:$0xff]   ;;  %v2255_v41 = vmov 65535   ;;  %s2765_s8 = smov (!%p710_p8, %s1899_s8), 3 }
  0x64   : > { %1419 = vmatpush1.bf16.msra.mxu0 %v2086_v63  ;;  %1635 = vmatpush1.bf16.msra.mxu1 %v2086_v63  ;;  %v2663_v63 = vld [vmem:[%s2757_s3 + $0x8] sm:$0x3f]  ;;  %s712_s11 = scalar_lea.vmem %s2759_s5, %s2765_s8  ;;  %s1901_s23 = sshll.u32 %s2765_s8, 2 }
  0x65   : > { %1420 = vmatprep.subr.bf16.mxu0 %v2087_v0  ;;  %1636 = vmatprep.subr.bf16.mxu1 %v2087_v0  ;;  %v2164_v0 = vld [vmem:[%s2552_s18 + $0x1f0] ss:$8 sps:$4 sm:$0xff]   ;;  %s718_s13 = scalar_lea.vmem %s2760_s6, %s1901_s23 }
  0x68   : > { %1421 = vmatpush1.bf16.msra.mxu0 %v2089_v1  ;;  %1637 = vmatpush1.bf16.msra.mxu1 %v2089_v1  ;;  %v2169_v1 = vld [vmem:[%s2552_s18 + $0x204] ss:$8 sps:$4 sm:$0xff]  }
  0x69   : > { %1422 = vmatprep.subr.bf16.mxu0 %v2090_v2  ;;  %1638 = vmatprep.subr.bf16.mxu1 %v2090_v2  ;;  %v2669_v2 = vrot.slane %v2658_v62, %v2557_v49 }
  0x6c   : > { %1423 = vmatpush1.bf16.msra.mxu0 %v2092_v3  ;;  %1639 = vmatpush1.bf16.msra.mxu1 %v2092_v3  ;;  %v2673_v3 = vrot.slane %v2663_v63, %v2557_v49 }
  0x6d   : > { %1424 = vmatprep.subr.bf16.mxu0 %v2093_v4  ;;  %1640 = vmatprep.subr.bf16.mxu1 %v2093_v4  ;;  %v2167_v4 = vld [vmem:[%s2552_s18 + $0x200] ss:$8 sps:$4 sm:$0xff]  }
  0x70   : > { %1425 = vmatpush1.bf16.msra.mxu0 %v2095_v5  ;;  %1641 = vmatpush1.bf16.msra.mxu1 %v2095_v5  ;;  %v2172_v5 = vld [vmem:[%s2552_s18 + $0x214] ss:$8 sps:$4 sm:$0xff]  }
  0x71   : > { %1426 = vmatprep.subr.bf16.mxu0 %v2096_v6  ;;  %1642 = vmatprep.subr.bf16.mxu1 %v2096_v6  ;;  %v869_v6 = vcombine.high %v2669_v2, %v2669_v2 }
  0x74   : > { %1427 = vmatpush1.bf16.msra.mxu0 %v2098_v7  ;;  %1643 = vmatpush1.bf16.msra.mxu1 %v2098_v7  ;;  %v1614_v7 = vcombine.high %v2673_v3, %v2673_v3 }
  0x75   : > { %1428 = vmatprep.subr.bf16.mxu0 %v2099_v8  ;;  %1644 = vmatprep.subr.bf16.mxu1 %v2099_v8  ;;  %v2170_v8 = vld [vmem:[%s2552_s18 + $0x210] ss:$8 sps:$4 sm:$0xff]  }
  0x78   : > { %1429 = vmatpush1.bf16.msra.mxu0 %v2101_v9  ;;  %1645 = vmatpush1.bf16.msra.mxu1 %v2101_v9  ;;  %v2175_v9 = vld [vmem:[%s2552_s18 + $0x224] ss:$8 sps:$4 sm:$0xff]  }
  0x79   : > { %1430 = vmatprep.subr.bf16.mxu0 %v2102_v10  ;;  %1646 = vmatprep.subr.bf16.mxu1 %v2102_v10  ;;  %v2173_v10 = vld [vmem:[%s2552_s18 + $0x220] ss:$8 sps:$4 sm:$0xff]  }
  0x7c   : > { %1431 = vmatpush1.bf16.msra.mxu0 %v2104_v11  ;;  %1647 = vmatpush1.bf16.msra.mxu1 %v2104_v11  ;;  %v2178_v11 = vld [vmem:[%s2552_s18 + $0x234] ss:$8 sps:$4 sm:$0xff]  }
  0x7d   : > { %1432 = vmatprep.subr.bf16.mxu0 %v2105_v12  ;;  %1648 = vmatprep.subr.bf16.mxu1 %v2105_v12  ;;  %v2176_v12 = vld [vmem:[%s2552_s18 + $0x230] ss:$8 sps:$4 sm:$0xff]  }
  0x80   : > { %1433 = vmatpush1.bf16.msra.mxu0 %v2107_v13  ;;  %1649 = vmatpush1.bf16.msra.mxu1 %v2107_v13  ;;  %v2181_v13 = vld [vmem:[%s2552_s18 + $0x244] ss:$8 sps:$4 sm:$0xff]  }
  0x81   : > { %1434 = vmatprep.subr.bf16.mxu0 %v2108_v14  ;;  %1650 = vmatprep.subr.bf16.mxu1 %v2108_v14  ;;  %v2179_v14 = vld [vmem:[%s2552_s18 + $0x240] ss:$8 sps:$4 sm:$0xff]  }
  0x84   : > { %1435 = vmatpush1.bf16.msra.mxu0 %v2110_v15  ;;  %1651 = vmatpush1.bf16.msra.mxu1 %v2110_v15  ;;  %v2184_v15 = vld [vmem:[%s2552_s18 + $0x254] ss:$8 sps:$4 sm:$0xff]  }
  0x85   : > { %1436 = vmatprep.subr.bf16.mxu0 %v2111_v16  ;;  %1652 = vmatprep.subr.bf16.mxu1 %v2111_v16  ;;  %v2182_v16 = vld [vmem:[%s2552_s18 + $0x250] ss:$8 sps:$4 sm:$0xff]  }
  0x88   : > { %1437 = vmatpush1.bf16.msra.mxu0 %v2113_v17  ;;  %1653 = vmatpush1.bf16.msra.mxu1 %v2113_v17  ;;  %v2187_v17 = vld [vmem:[%s2552_s18 + $0x264] ss:$8 sps:$4 sm:$0xff]  }
  0x89   : > { %1438 = vmatprep.subr.bf16.mxu0 %v2114_v18  ;;  %1654 = vmatprep.subr.bf16.mxu1 %v2114_v18  ;;  %v2185_v18 = vld [vmem:[%s2552_s18 + $0x260] ss:$8 sps:$4 sm:$0xff]  }
  0x8c   : > { %1439 = vmatpush1.bf16.msra.mxu0 %v2116_v21  ;;  %1655 = vmatpush1.bf16.msra.mxu1 %v2116_v21  ;;  %v2193_v21 = vld [vmem:[%s2552_s18 + $0x284] ss:$8 sps:$4 sm:$0xff]  }
  0x8d   : > { %1449 = vmatprep.subr.bf16.mxu0 %v2120_v22  ;;  %1665 = vmatprep.subr.bf16.mxu1 %v2120_v22  ;;  %v2191_v22 = vld [vmem:[%s2552_s18 + $0x280] ss:$8 sps:$4 sm:$0xff]  }
  0x8f   : > { %1441 = vmatmul.mubr.bf16.vlgmr.msra.gmra.mrb[0].mxu0 %v2563_v52  ;;  %1657 = vmatmul.mubr.bf16.vlgmr.msra.gmra.mrb[0].mxu1 %v2567_v53  ;;  %v2149_v52 = vld [vmem:[%s2552_s18 + $0x1a0] ss:$8 sps:$4 sm:$0xff]   ;;  %v2154_v53 = vld [vmem:[%s2552_s18 + $0x1b4] ss:$8 sps:$4 sm:$0xff]  }
  0x90   : > { %1450 = vmatpush1.bf16.msra.mxu0 %v2118_v25  ;;  %1666 = vmatpush1.bf16.msra.mxu1 %v2118_v25  ;;  %v2199_v25 = vld [vmem:[%s2552_s18 + $0x2a4] ss:$8 sps:$4 sm:$0xff]  }
  0x91   : > { %1451 = vmatprep.subr.bf16.mxu0 %v2124_v26  ;;  %1667 = vmatprep.subr.bf16.mxu1 %v2124_v26  ;;  %v2197_v26 = vld [vmem:[%s2552_s18 + $0x2a0] ss:$8 sps:$4 sm:$0xff]  }
  0x92   : > { %1481 = vmatprep.mubr.bf16.mxu0 %v853_v27  ;;  %1697 = vmatprep.mubr.bf16.mxu1 %v1598_v28  ;;  %v2202_v27 = vld [vmem:[%s2552_s18 + $0x2b4] ss:$8 sps:$4 sm:$0xff]   ;;  %v2200_v28 = vld [vmem:[%s2552_s18 + $0x2b0] ss:$8 sps:$4 sm:$0xff]  }
  0x94   : > { %1452 = vmatpush1.bf16.msra.mxu0 %v2122_v29  ;;  %1668 = vmatpush1.bf16.msra.mxu1 %v2122_v29  ;;  %v2205_v29 = vld [vmem:[%s2552_s18 + $0x2c4] ss:$8 sps:$4 sm:$0xff]  }
  0x95   : > { %1453 = vmatprep.subr.bf16.mxu0 %v2127_v30  ;;  %1669 = vmatprep.subr.bf16.mxu1 %v2127_v30  ;;  %v2203_v30 = vld [vmem:[%s2552_s18 + $0x2c0] ss:$8 sps:$4 sm:$0xff]  }
  0x98   : > { %1454 = vmatpush1.bf16.msra.mxu0 %v2125_v31  ;;  %1670 = vmatpush1.bf16.msra.mxu1 %v2125_v31  ;;  %v2208_v31 = vld [vmem:[%s2552_s18 + $0x2d4] ss:$8 sps:$4 sm:$0xff]  }
  0x99   : > { %1455 = vmatprep.subr.bf16.mxu0 %v2130_v32  ;;  %1671 = vmatprep.subr.bf16.mxu1 %v2130_v32  ;;  %v2206_v32 = vld [vmem:[%s2552_s18 + $0x2d0] ss:$8 sps:$4 sm:$0xff]  }
  0x9c   : > { %1456 = vmatpush1.bf16.msra.mxu0 %v2128_v33  ;;  %1672 = vmatpush1.bf16.msra.mxu1 %v2128_v33  ;;  %v2211_v33 = vld [vmem:[%s2552_s18 + $0x2e4] ss:$8 sps:$4 sm:$0xff]  }
  0x9d   : > { %1457 = vmatprep.subr.bf16.mxu0 %v2133_v34  ;;  %1673 = vmatprep.subr.bf16.mxu1 %v2133_v34  ;;  %v2209_v34 = vld [vmem:[%s2552_s18 + $0x2e0] ss:$8 sps:$4 sm:$0xff]  }
  0xa0   : > { %1458 = vmatpush1.bf16.msra.mxu0 %v2131_v35  ;;  %1674 = vmatpush1.bf16.msra.mxu1 %v2131_v35  ;;  %v2214_v35 = vld [vmem:[%s2552_s18 + $0x2f4] ss:$8 sps:$4 sm:$0xff]  }
  0xa1   : > { %1459 = vmatprep.subr.bf16.mxu0 %v2136_v36  ;;  %1675 = vmatprep.subr.bf16.mxu1 %v2136_v36  ;;  %v2212_v36 = vld [vmem:[%s2552_s18 + $0x2f0] ss:$8 sps:$4 sm:$0xff]  }
  0xa4   : > { %1460 = vmatpush1.bf16.msra.mxu0 %v2134_v39  ;;  %1676 = vmatpush1.bf16.msra.mxu1 %v2134_v39  ;;  %v2216_v39 = vld [vmem:[%s2552_s18 + $0x300] ss:$8 sps:$4 sm:$0xff]  }
  0xa5   : > { %1461 = vmatprep.subr.bf16.mxu0 %v2139_v40  ;;  %1677 = vmatprep.subr.bf16.mxu1 %v2139_v40  ;;  %v2222_v40 = vld [vmem:[%s2552_s18 + $0x314] ss:$8 sps:$4 sm:$0xff]  }
  0xa8   : > { %1462 = vmatpush1.bf16.msra.mxu0 %v2137_v42  ;;  %1678 = vmatpush1.bf16.msra.mxu1 %v2137_v42  ;;  %v1400_v42 = vsel %vm1398_vm0, 4294967295, %v2255_v41 }
  0xa9   : > { %1463 = vmatprep.subr.bf16.mxu0 %v2142_v44  ;;  %1679 = vmatprep.subr.bf16.mxu1 %v2142_v44  ;;  %v2220_v44 = vld [vmem:[%s2552_s18 + $0x310] ss:$8 sps:$4 sm:$0xff]  }
  0xac   : > { %1464 = vmatpush1.bf16.msra.mxu0 %v2140_v45  ;;  %1680 = vmatpush1.bf16.msra.mxu1 %v2140_v45  ;;  %v2225_v45 = vld [vmem:[%s2552_s18 + $0x324] ss:$8 sps:$4 sm:$0xff]  }
  0xad   : > { %1465 = vmatprep.subr.bf16.mxu0 %v2145_v46  ;;  %1681 = vmatprep.subr.bf16.mxu1 %v2145_v46  ;;  %v2228_v46 = vld [vmem:[%s2552_s18 + $0x334] ss:$8 sps:$4 sm:$0x1f]  }
  0xb0   : > { %1466 = vmatpush1.bf16.msra.mxu0 %v2143_v47  ;;  %1682 = vmatpush1.bf16.msra.mxu1 %v2143_v47  ;;  %v1401_v47 = vsel %vm1399_vm1, %v1400_v42, 0 }
  0xb1   : > { %1467 = vmatprep.subr.bf16.mxu0 %v2148_v48  ;;  %1683 = vmatprep.subr.bf16.mxu1 %v2148_v48  ;;  %v2223_v48 = vld [vmem:[%s2552_s18 + $0x320] ss:$8 sps:$4 sm:$0xff]  }
  0xb4   : > { %1468 = vmatpush1.bf16.msra.mxu0 %v2146_v50  ;;  %1684 = vmatpush1.bf16.msra.mxu1 %v2146_v50  ;;  %v2226_v50 = vld [vmem:[%s2552_s18 + $0x330] ss:$8 sps:$4 sm:$0x1f]  }
  0xb5   : > { %1469 = vmatprep.subr.bf16.mxu0 %v2151_v51  ;;  %1685 = vmatprep.subr.bf16.mxu1 %v2151_v51  ;;  %v1406_v51 = vand.u32 %v2228_v46, %v1401_v47 }
  0xb8   : > { %1470 = vmatpush1.bf16.msra.mxu0 %v2149_v52  ;;  %1686 = vmatpush1.bf16.msra.mxu1 %v2149_v52  ;;  %v854_v52 = vcombine.high %v2658_v62, %v2658_v62 }
  0xb9   : > { %1471 = vmatprep.subr.bf16.mxu0 %v2154_v53  ;;  %1687 = vmatprep.subr.bf16.mxu1 %v2154_v53  ;;  %v1599_v53 = vcombine.high %v2663_v63, %v2663_v63 }
  0xbc   : > { %1472 = vmatpush1.bf16.msra.mxu0 %v2152_v54  ;;  %1688 = vmatpush1.bf16.msra.mxu1 %v2152_v54  ;;  %v1403_v54 = vand.u32 %v2226_v50, %v1401_v47 }
  0xbd   : > { %1473 = vmatprep.subr.bf16.mxu0 %v2157_v55  ;;  %1689 = vmatprep.subr.bf16.mxu1 %v2157_v55  ;;  %v1613_v55 = vrot.slane %v1599_v53, %v2557_v49 }
  0xc0   : > { %1474 = vmatpush1.bf16.msra.mxu0 %v2155_v56  ;;  %1690 = vmatpush1.bf16.msra.mxu1 %v2155_v56  ;;  %v825_v56 = vld [vmem:[%s712_s11] sm:$0x3] }
  0xc1   : > { %1475 = vmatprep.subr.bf16.mxu0 %v2160_v57  ;;  %1691 = vmatprep.subr.bf16.mxu1 %v2160_v57 }
  0xc4   : > { %1476 = vmatpush1.bf16.msra.mxu0 %v2158_v58  ;;  %1692 = vmatpush1.bf16.msra.mxu1 %v2158_v58  ;;  %v1791_v58 = vsub.s32 0, %v2540_v43 }
  0xc5   : > { %1477 = vmatprep.subr.bf16.mxu0 %v2163_v59  ;;  %1693 = vmatprep.subr.bf16.mxu1 %v2163_v59  ;;  %v1795_v59 = vsub.s32 1, %v2540_v43 }
  0xc8   : > { %1478 = vmatpush1.bf16.msra.mxu0 %v2161_v60  ;;  %1694 = vmatpush1.bf16.msra.mxu1 %v2161_v60 }
  0xc9   : > { %1479 = vmatprep.subr.bf16.mxu0 %v2166_v61  ;;  %1695 = vmatprep.subr.bf16.mxu1 %v2166_v61  ;;  %v1792_v61 = vrot.slane %v825_v56, %v1791_v58 }
  0xcb   : > { %v833_v57 = vpop.permute.xlu0 %832 }
  0xcc   : > { %1480 = vmatpush1.bf16.msra.mxu0 %v2164_v0  ;;  %1696 = vmatpush1.bf16.msra.mxu1 %v2164_v0 }
  0xcd   : > { %1490 = vmatprep.subr.bf16.mxu0 %v2169_v1  ;;  %1706 = vmatprep.subr.bf16.mxu1 %v2169_v1  ;;  %v1796_v1 = vrot.slane %v825_v56, %v1795_v59 }
  0xcf   : > { %1482 = vmatmul.mubr.bf16.vlgmr.msra.gmra.mrb[0].mxu0 %v2607_v23  ;;  %1698 = vmatmul.mubr.bf16.vlgmr.msra.gmra.mrb[0].mxu1 %v2610_v24  ;;  %v2196_v23 = vld [vmem:[%s2552_s18 + $0x294] ss:$8 sps:$4 sm:$0xff]   ;;  %v2194_v24 = vld [vmem:[%s2552_s18 + $0x290] ss:$8 sps:$4 sm:$0xff]  }
  0xd0   : > { %1491 = vmatpush1.bf16.msra.mxu0 %v2167_v4  ;;  %1707 = vmatpush1.bf16.msra.mxu1 %v2167_v4 }
  0xd1   : > { %1492 = vmatprep.subr.bf16.mxu0 %v2172_v5  ;;  %1708 = vmatprep.subr.bf16.mxu1 %v2172_v5  ;;  %v1578_v60 = vpop.permute.xlu0 %1577 }
  0xd2   : > { %1522 = vmatprep.mubr.bf16.mxu0 %v869_v6  ;;  %1738 = vmatprep.mubr.bf16.mxu1 %v1614_v7 }
  0xd4   : > { %1493 = vmatpush1.bf16.msra.mxu0 %v2170_v8  ;;  %1709 = vmatpush1.bf16.msra.mxu1 %v2170_v8 }
  0xd5   : > { %1494 = vmatprep.subr.bf16.mxu0 %v2175_v9  ;;  %1710 = vmatprep.subr.bf16.mxu1 %v2175_v9 }
  0xd8   : > { %1495 = vmatpush1.bf16.msra.mxu0 %v2173_v10  ;;  %1711 = vmatpush1.bf16.msra.mxu1 %v2173_v10 }
  0xd9   : > { %1496 = vmatprep.subr.bf16.mxu0 %v2178_v11  ;;  %1712 = vmatprep.subr.bf16.mxu1 %v2178_v11 }
  0xdc   : > { %1497 = vmatpush1.bf16.msra.mxu0 %v2176_v12  ;;  %1713 = vmatpush1.bf16.msra.mxu1 %v2176_v12 }
  0xdd   : > { %1498 = vmatprep.subr.bf16.mxu0 %v2181_v13  ;;  %1714 = vmatprep.subr.bf16.mxu1 %v2181_v13 }
  0xe0   : > { %1499 = vmatpush1.bf16.msra.mxu0 %v2179_v14  ;;  %1715 = vmatpush1.bf16.msra.mxu1 %v2179_v14 }
  0xe1   : > { %1500 = vmatprep.subr.bf16.mxu0 %v2184_v15  ;;  %1716 = vmatprep.subr.bf16.mxu1 %v2184_v15 }
  0xe4   : > { %1501 = vmatpush1.bf16.msra.mxu0 %v2182_v16  ;;  %1717 = vmatpush1.bf16.msra.mxu1 %v2182_v16 }
  0xe5   : > { %1502 = vmatprep.subr.bf16.mxu0 %v2187_v17  ;;  %1718 = vmatprep.subr.bf16.mxu1 %v2187_v17 }
  0xe8   : > { %1503 = vmatpush1.bf16.msra.mxu0 %v2185_v18  ;;  %1719 = vmatpush1.bf16.msra.mxu1 %v2185_v18 }
  0xe9   : > { %1504 = vmatprep.subr.bf16.mxu0 %v2190_v19  ;;  %1720 = vmatprep.subr.bf16.mxu1 %v2190_v19 }
  0xec   : > { %1505 = vmatpush1.bf16.msra.mxu0 %v2188_v20  ;;  %1721 = vmatpush1.bf16.msra.mxu1 %v2188_v20 }
  0xed   : > { %1506 = vmatprep.subr.bf16.mxu0 %v2193_v21  ;;  %1722 = vmatprep.subr.bf16.mxu1 %v2193_v21 }
  0xf0   : > { %1507 = vmatpush1.bf16.msra.mxu0 %v2191_v22  ;;  %1723 = vmatpush1.bf16.msra.mxu1 %v2191_v22 }
  0xf1   : > { %1508 = vmatprep.subr.bf16.mxu0 %v2196_v23  ;;  %1724 = vmatprep.subr.bf16.mxu1 %v2196_v23 }
  0xf4   : > { %1509 = vmatpush1.bf16.msra.mxu0 %v2194_v24  ;;  %1725 = vmatpush1.bf16.msra.mxu1 %v2194_v24 }
  0xf5   : > { %1510 = vmatprep.subr.bf16.mxu0 %v2199_v25  ;;  %1726 = vmatprep.subr.bf16.mxu1 %v2199_v25 }
  0xf8   : > { %1511 = vmatpush1.bf16.msra.mxu0 %v2197_v26  ;;  %1727 = vmatpush1.bf16.msra.mxu1 %v2197_v26 }
  0xf9   : > { %1512 = vmatprep.subr.bf16.mxu0 %v2202_v27  ;;  %1728 = vmatprep.subr.bf16.mxu1 %v2202_v27 }
  0xfc   : > { %1513 = vmatpush1.bf16.msra.mxu0 %v2200_v28  ;;  %1729 = vmatpush1.bf16.msra.mxu1 %v2200_v28 }
  0xfd   : > { %1514 = vmatprep.subr.bf16.mxu0 %v2205_v29  ;;  %1730 = vmatprep.subr.bf16.mxu1 %v2205_v29 }
 0x100   : > { %1515 = vmatpush1.bf16.msra.mxu0 %v2203_v30  ;;  %1731 = vmatpush1.bf16.msra.mxu1 %v2203_v30 }
 0x101   : > { %1516 = vmatprep.subr.bf16.mxu0 %v2208_v31  ;;  %1732 = vmatprep.subr.bf16.mxu1 %v2208_v31 }
 0x104   : > { %1517 = vmatpush1.bf16.msra.mxu0 %v2206_v32  ;;  %1733 = vmatpush1.bf16.msra.mxu1 %v2206_v32 }
 0x105   : > { %1518 = vmatprep.subr.bf16.mxu0 %v2211_v33  ;;  %1734 = vmatprep.subr.bf16.mxu1 %v2211_v33 }
 0x108   : > { %1519 = vmatpush1.bf16.msra.mxu0 %v2209_v34  ;;  %1735 = vmatpush1.bf16.msra.mxu1 %v2209_v34 }
 0x109   : > { %1520 = vmatprep.subr.bf16.mxu0 %v2214_v35  ;;  %1736 = vmatprep.subr.bf16.mxu1 %v2214_v35 }
 0x10c   : > { %1521 = vmatpush1.bf16.msra.mxu0 %v2212_v36  ;;  %1737 = vmatpush1.bf16.msra.mxu1 %v2212_v36 }
 0x10d   : > { %1531 = vmatprep.subr.bf16.mxu0 %v2218_v38  ;;  %1747 = vmatprep.subr.bf16.mxu1 %v2218_v38 }
 0x10f   : > { %1523 = vmatmul.mubr.bf16.vlgmr.msra.gmra.mrb[0].mxu0 %v2669_v2  ;;  %1739 = vmatmul.mubr.bf16.vlgmr.msra.gmra.mrb[0].mxu1 %v2673_v3 }
 0x110   : > { %1532 = vmatpush1.bf16.msra.mxu0 %v2216_v39  ;;  %1748 = vmatpush1.bf16.msra.mxu1 %v2216_v39 }
 0x111   : > { %1533 = vmatprep.subr.bf16.mxu0 %v2222_v40  ;;  %1749 = vmatprep.subr.bf16.mxu1 %v2222_v40 }
 0x112   : > { %1563 = vmatprep.mubr.bf16.mxu0 %v2254_v37  ;;  %1779 = vmatprep.mubr.bf16.mxu1 %v2254_v37  ;;  %v868_v37 = vrot.slane %v854_v52, %v2557_v49  ;;  %v826_v49 = vsub.f32 1.0, %v825_v56 }
 0x114   : > { %1534 = vmatpush1.bf16.msra.mxu0 %v2220_v44  ;;  %1750 = vmatpush1.bf16.msra.mxu1 %v2220_v44  ;;  %v1805_v62 = vrot.slane %v826_v49, %v1791_v58  ;;  %v1809_v2 = vrot.slane %v826_v49, %v1795_v59 }
 0x115   : > { %1535 = vmatprep.subr.bf16.mxu0 %v2225_v45  ;;  %1751 = vmatprep.subr.bf16.mxu1 %v2225_v45 }
 0x118   : > { %1536 = vmatpush1.bf16.msra.mxu0 %v2223_v48  ;;  %1752 = vmatpush1.bf16.msra.mxu1 %v2223_v48 }
 0x119   : > { %1537 = vmatprep.subr.bf16.mxu0 %v1406_v51  ;;  %1753 = vmatprep.subr.bf16.mxu1 %v1406_v51 }
 0x11c   : > { %1538 = vmatpush1.bf16.msra.mxu0 %v1403_v54  ;;  %1754 = vmatpush1.bf16.msra.mxu1 %v1403_v54 }
 0x11f   : > { %2006 = vmatmul.mubr.msk.bf16.vlgmr.msra.gmra.mrb[0].mxu0 %vm1394_vm2, %v868_v37  ;;  %2007 = vmatmul.mubr.msk.bf16.vlgmr.msra.gmra.mrb[0].mxu1 %vm1394_vm2, %v1613_v55 }
 0x1f2   : > { %v1565_v63 = vpop.f32.mrb[0].mxu0  ;;  %v1781_v0 = vpop.f32.mrb[0].mxu1 }
 0x1f3   : > { %v2011_v3 = vadd.f32 %v1565_v63, %v833_v57  ;;  %v2013_v4 = vadd.f32 %v1781_v0, %v1578_v60  ;;  %v1567_v5 = vpop.f32.mrb[1].mxu0  ;;  %v1783_v6 = vpop.f32.mrb[1].mxu1 }
 0x1f4   : > { %v2012_v7 = vadd.f32 %v1567_v5, %v833_v57  ;;  %v2014_v8 = vadd.f32 %v1783_v6, %v1578_v60  ;;  %v1569_v9 = vpop.f32.mrb[2].mxu0  ;;  %v1785_v10 = vpop.f32.mrb[2].mxu1 }
 0x1f5   : > { %v1799_v11 = vmul.f32 %v2011_v3, %v1792_v61  ;;  %v1812_v12 = vmul.f32 %v2013_v4, %v1805_v62  ;;  %v1570_v13 = vpop.f32.mrb[3].mxu0  ;;  %v1786_v43 = vpop.f32.mrb[3].mxu1 }
 0x1f6   : > { %v1800_v14 = vmul.f32 %v2012_v7, %v1796_v1  ;;  %v1813_v15 = vmul.f32 %v2014_v8, %v1809_v2 }
 0x1f7   : > { %v1814_v16 = vadd.f32 %v1812_v12, %v1799_v11 }
 0x1f8   : > { %v1815_v17 = vadd.f32 %v1813_v15, %v1800_v14 }
 0x1fa   : > { %v1818_v18 = vcombine.low %v1814_v16, %v1815_v17 }
 0x1fc   : > { %1820 = vst [vmem:[%s718_s13] sm:$0xff] %v1818_v18 }
 0x1fd PF: > { %p13_p9 = scmp.ge.s32.totalorder %s2308_s25, 4   ;;  %s2761_s21 = smov %s2247_s22 }
 0x1fe   : > { %s2762_s22 = smov %s2317_s28  ;;  %s2763_s23 = smov %s2308_s25 }
 0x1ff   :  { %15 = sbr.rel (!%p13_p9) target bundleno = 2 (0x2), region = 120 }

</bundles_post_ra>
